<compile_context>
chip_gen: v5e
topology: v5e:2x2
jax: 0.10.0
libtpu: 0.0.40
codegen_flags: <defaults>
</compile_context>

<pallas_src>
import math

import jax
import jax.numpy as jnp
from jax.experimental import pallas as pl
from jax.experimental.pallas import tpu as pltpu

B = 2          # batch
S_TGT = 8      # target sequence length
S_SRC = 8      # source (memory) sequence length
D_MODEL = 32   # model dim
N_HEADS = 4
D_K = D_MODEL // N_HEADS
D_FF = 64
EPS = 1e-6
NEG_INF = -1e9
PRECISION = jax.lax.Precision.HIGHEST   # exact f32 matmuls on the MXU (kernel AND reference)

# ---- packed parameter layouts ------------------------------------------------
# W slab  [D_MODEL, 320] columns:
#   [  0: 96] Wq_s|Wk_s|Wv_s (fused self-attn QKV)   [ 96:128] Wo_s
#   [128:160] Wq_c                                    [160:224] Wk_c|Wv_c (fused src-attn KV)
#   [224:256] Wo_c                                    [256:320] W1 (FF up-projection)
W_COLS = 8 * D_MODEL + D_FF   # 320
# vec slab [8, 128] rows:
#   0: bq_s|bk_s|bv_s|bo_s    1: bq_c|bk_c|bv_c|bo_c    2: b1(64)|b2(32)|pad
#   3: g0|be0|g1|be1          4: g2|be2|pad             5..7: pad
VEC_ROWS, VEC_COLS = 8, 128


# ---------------------------------------------------------------------------
# in-kernel math helpers (traced inside the Pallas body)
# ---------------------------------------------------------------------------
def _layer_norm(x, gamma, beta):
    """Custom LayerNorm: a_2 * (x - mean) / (std_unbiased + eps) + b_2."""
    mean = jnp.mean(x, axis=-1, keepdims=True)
    diff = x - mean
    var = jnp.sum(diff * diff, axis=-1, keepdims=True) / (x.shape[-1] - 1)
    inv = pl.reciprocal(jnp.sqrt(var) + EPS, approx=False)   # EUP, exact
    return gamma * (diff * inv) + beta


def _attention(q, k, v, bias, wo, bo):
    """Multi-head attention on batch-flattened activations.

    q: [R, D], k/v: [Rk, D]; bias: [R, Rk] additive mask (0 = keep, -1e9 = drop),
    already block-diagonal over the batch, hoisted out of the head loop.
    wo: [D, D], bo: [1, D].  No transposes, no concatenates: scores use an NT
    dot_general, and the output projection is accumulated per head.
    """
    scale = 1.0 / math.sqrt(D_K)
    out = jnp.zeros((q.shape[0], D_MODEL), dtype=jnp.float32)
    for h in range(N_HEADS):                       # static, 4 iterations
        sl = slice(h * D_K, (h + 1) * D_K)
        qh, kh, vh = q[:, sl], k[:, sl], v[:, sl]
        s = jax.lax.dot_general(qh, kh, (((1,), (1,)), ((), ())),
                                precision=PRECISION,
                                preferred_element_type=jnp.float32) * scale + bias
        m = jnp.max(s, axis=-1, keepdims=True)
        e = jnp.exp(s - m)
        p = e * pl.reciprocal(jnp.sum(e, axis=-1, keepdims=True), approx=False)
        ctx = jnp.dot(p, vh, precision=PRECISION,
                      preferred_element_type=jnp.float32)            # [R, D_K]
        out = out + jnp.dot(ctx, wo[sl, :], precision=PRECISION,
                            preferred_element_type=jnp.float32)       # [R, D]
    return out + bo


# ---------------------------------------------------------------------------
# Pallas kernel: single invocation, everything resident in VMEM
# ---------------------------------------------------------------------------
def decoder_layer_kernel(x_ref, mem_ref, sbias_ref, cbias_ref,
                         w_ref, w2_ref, vec_ref, out_ref):
    x = x_ref[...]          # [B*S, D]
    m = mem_ref[...]        # [B*Sm, D]
    sbias = sbias_ref[...]  # [B*S, B*S]   block-diag + causal (additive)
    cbias = cbias_ref[...]  # [B*S, B*Sm]  block-diag + src mask (additive)
    vec = vec_ref[...]      # [8, 128]     packed biases / LN params

    g0, be0 = vec[3:4, 0:32], vec[3:4, 32:64]
    g1, be1 = vec[3:4, 64:96], vec[3:4, 96:128]
    g2, be2 = vec[4:5, 0:32], vec[4:5, 32:64]

    # ---- sublayer 0: x + self_attn(norm(x), norm(x), norm(x), tgt_mask) ----
    xn = _layer_norm(x, g0, be0)
    qkv = jnp.dot(xn, w_ref[:, 0:96], precision=PRECISION,
                  preferred_element_type=jnp.float32) + vec[0:1, 0:96]
    x = x + _attention(qkv[:, 0:32], qkv[:, 32:64], qkv[:, 64:96],
                       sbias, w_ref[:, 96:128], vec[0:1, 96:128])

    # ---- sublayer 1: x + src_attn(norm(x), m, m, src_mask) -----------------
    xn = _layer_norm(x, g1, be1)
    qc = jnp.dot(xn, w_ref[:, 128:160], precision=PRECISION,
                 preferred_element_type=jnp.float32) + vec[1:2, 0:32]
    kv = jnp.dot(m, w_ref[:, 160:224], precision=PRECISION,
                 preferred_element_type=jnp.float32) + vec[1:2, 32:96]
    x = x + _attention(qc, kv[:, 0:32], kv[:, 32:64],
                       cbias, w_ref[:, 224:256], vec[1:2, 96:128])

    # ---- sublayer 2: x + W2 relu(W1 norm(x)) --------------------------------
    xn = _layer_norm(x, g2, be2)
    h = jnp.maximum(jnp.dot(xn, w_ref[:, 256:320], precision=PRECISION,
                            preferred_element_type=jnp.float32) + vec[2:3, 0:64], 0.0)
    ff = jnp.dot(h, w2_ref[...], precision=PRECISION,
                 preferred_element_type=jnp.float32) + vec[2:3, 64:96]
    out_ref[...] = x + ff


# ---------------------------------------------------------------------------
# wrapper: packing, block-diagonal mask biases, pallas_call
# ---------------------------------------------------------------------------
def _pack_params(params):
    w_slab = jnp.concatenate(
        [params[k] for k in ("wq_s", "wk_s", "wv_s", "wo_s",
                             "wq_c", "wk_c", "wv_c", "wo_c", "w1")], axis=1)

    def row(*vs):
        v = jnp.concatenate([jnp.reshape(u, (-1,)) for u in vs])
        return jnp.pad(v, (0, VEC_COLS - v.shape[0]))

    zero = jnp.zeros((VEC_COLS,), jnp.float32)
    vec_slab = jnp.stack([
        row(params["bq_s"], params["bk_s"], params["bv_s"], params["bo_s"]),
        row(params["bq_c"], params["bk_c"], params["bv_c"], params["bo_c"]),
        row(params["b1"], params["b2"]),
        row(params["g0"], params["be0"], params["g1"], params["be1"]),
        row(params["g2"], params["be2"]),
        zero, zero, zero,
    ])
    return (w_slab.astype(jnp.float32), params["w2"].astype(jnp.float32),
            vec_slab.astype(jnp.float32))


def _block_diag_bias(allow, n_q):
    """allow: [B, q or 1, Sk] with 1.0=keep -> additive bias [B*n_q, B*Sk]."""
    Bb, _, Sk = allow.shape
    allow = jnp.broadcast_to(allow.astype(jnp.float32), (Bb, n_q, Sk))
    big = jnp.zeros((Bb * n_q, Bb * Sk), jnp.float32)
    for b in range(Bb):
        big = big.at[b * n_q:(b + 1) * n_q, b * Sk:(b + 1) * Sk].set(allow[b])
    return (big - 1.0) * (-NEG_INF)      # 1 -> 0.0, 0 -> -1e9


def decoder_layer(x, memory, src_mask, tgt_mask, params):
    Bn, S, D = x.shape
    _, Sm, _ = memory.shape
    R, Rk = Bn * S, Bn * Sm

    x_flat = x.reshape(R, D)                       # pure wrapper reshape (no relayout)
    m_flat = memory.reshape(Rk, D)
    self_bias = _block_diag_bias(tgt_mask, S)      # [R, R]
    cross_bias = _block_diag_bias(src_mask, S)     # [R, Rk]
    w_slab, w2, vec_slab = _pack_params(params)

    def full2d(shape):
        return pl.BlockSpec(shape, lambda i: (0, 0))

    out = pl.pallas_call(
        decoder_layer_kernel,
        out_shape=jax.ShapeDtypeStruct((R, D), jnp.float32),
        grid_spec=pltpu.PrefetchScalarGridSpec(
            num_scalar_prefetch=0,
            grid=(1,),                              # single grid step: one prologue/epilogue
            in_specs=[
                full2d((R, D)),                     # x
                full2d((Rk, D)),                    # memory
                full2d((R, R)),                     # self-attn additive mask bias
                full2d((R, Rk)),                    # src-attn additive mask bias
                full2d((D, W_COLS)),                # packed weight slab
                full2d((D_FF, D)),                  # w2
                full2d((VEC_ROWS, VEC_COLS)),       # packed bias / LN slab
            ],
            out_specs=full2d((R, D)),
        ),
        compiler_params=pltpu.CompilerParams(
            dimension_semantics=("arbitrary",)),
    )(x_flat, m_flat, self_bias, cross_bias, w_slab, w2, vec_slab)
    return out.reshape(Bn, S, D)


# ---------------------------------------------------------------------------
# deterministic parameter init + independent reference (standard formulation)
# ---------------------------------------------------------------------------
def init_params(key):
    shapes = {
        "wq_s": (D_MODEL, D_MODEL), "bq_s": (1, D_MODEL),
        "wk_s": (D_MODEL, D_MODEL), "bk_s": (1, D_MODEL),
        "wv_s": (D_MODEL, D_MODEL), "bv_s": (1, D_MODEL),
        "wo_s": (D_MODEL, D_MODEL), "bo_s": (1, D_MODEL),
        "wq_c": (D_MODEL, D_MODEL), "bq_c": (1, D_MODEL),
        "wk_c": (D_MODEL, D_MODEL), "bk_c": (1, D_MODEL),
        "wv_c": (D_MODEL, D_MODEL), "bv_c": (1, D_MODEL),
        "wo_c": (D_MODEL, D_MODEL), "bo_c": (1, D_MODEL),
        "w1": (D_MODEL, D_FF), "b1": (1, D_FF),
        "w2": (D_FF, D_MODEL), "b2": (1, D_MODEL),
    }
    params = {}
    keys = jax.random.split(key, len(shapes))
    for k, (name, shp) in zip(keys, shapes.items()):
        params[name] = (0.1 * jax.random.normal(k, shp)).astype(jnp.float32)
    for i in range(3):
        params[f"g{i}"] = jnp.ones((1, D_MODEL), jnp.float32) * (1.0 + 0.01 * i)
        params[f"be{i}"] = jnp.full((1, D_MODEL), 0.01 * i, jnp.float32)
    return params


def reference(x, memory, src_mask, tgt_mask, params):
    """Unfused, per-batch, per-head reference (independent of the kernel's algebra)."""
    mm = lambda a, b: jnp.dot(a, b, precision=PRECISION,
                              preferred_element_type=jnp.float32)

    def ln(v, g, b):
        mean = v.mean(-1, keepdims=True)
        std = jnp.sqrt(jnp.sum((v - mean) ** 2, -1, keepdims=True) / (v.shape[-1] - 1))
        return g * (v - mean) / (std + EPS) + b

    def mha(q_in, kv_in, mask, wq, bq, wk, bk, wv, bv, wo, bo):
        q = mm(q_in, wq) + bq
        k = mm(kv_in, wk) + bk
        v = mm(kv_in, wv) + bv
        heads = []
        for h in range(N_HEADS):
            sl = slice(h * D_K, (h + 1) * D_K)
            s = mm(q[:, sl], k[:, sl].T) / math.sqrt(D_K)
            s = jnp.where(mask == 0.0, NEG_INF, s)
            heads.append(mm(jax.nn.softmax(s, axis=-1), v[:, sl]))
        return mm(jnp.concatenate(heads, axis=-1), wo) + bo

    p = params

    def per_batch(xb, mb, smb, tmb):
        xn = ln(xb, p["g0"], p["be0"])
        xb = xb + mha(xn, xn, tmb, p["wq_s"], p["bq_s"], p["wk_s"], p["bk_s"],
                      p["wv_s"], p["bv_s"], p["wo_s"], p["bo_s"])
        xn = ln(xb, p["g1"], p["be1"])
        xb = xb + mha(xn, mb, smb, p["wq_c"], p["bq_c"], p["wk_c"], p["bk_c"],
                      p["wv_c"], p["bv_c"], p["wo_c"], p["bo_c"])
        xn = ln(xb, p["g2"], p["be2"])
        hdn = jnp.maximum(mm(xn, p["w1"]) + p["b1"], 0.0)
        return xb + mm(hdn, p["w2"]) + p["b2"]

    return jax.vmap(per_batch)(x, memory, src_mask, tgt_mask)


if __name__ == "__main__":
    key = jax.random.PRNGKey(0)
    k_x, k_m, k_p = jax.random.split(key, 3)

    x = jax.random.normal(k_x, (B, S_TGT, D_MODEL), dtype=jnp.float32)
    memory = jax.random.normal(k_m, (B, S_SRC, D_MODEL), dtype=jnp.float32)

    # causal target mask [B, S, S]; src mask [B, 1, Sk] with last 2 positions masked
    tgt_mask = jnp.broadcast_to(
        jnp.tril(jnp.ones((S_TGT, S_TGT), jnp.float32)), (B, S_TGT, S_TGT))
    src_row = jnp.concatenate(
        [jnp.ones((S_SRC - 2,), jnp.float32), jnp.zeros((2,), jnp.float32)])
    src_mask = jnp.broadcast_to(src_row[None, None, :], (B, 1, S_SRC))

    params = init_params(k_p)

    out = jax.block_until_ready(decoder_layer(x, memory, src_mask, tgt_mask, params))
    ref = jax.block_until_ready(reference(x, memory, src_mask, tgt_mask, params))

    assert out.shape == (B, S_TGT, D_MODEL)
    assert jnp.allclose(out, ref, rtol=2e-5, atol=2e-5), (
        "mismatch vs reference, max abs err = %g"
        % float(jnp.max(jnp.abs(out - ref))))

    print("KERNEL_OK")
</pallas_src>

<mosaic_0001>
module attributes {stable_mosaic.version = 11 : i64} {
  func.func @decoder_layer_kernel(%arg0: i32, %arg1: memref<16x32xf32, #tpu.memory_space<vmem>>, %arg2: memref<16x32xf32, #tpu.memory_space<vmem>>, %arg3: memref<16x16xf32, #tpu.memory_space<vmem>>, %arg4: memref<16x16xf32, #tpu.memory_space<vmem>>, %arg5: memref<32x320xf32, #tpu.memory_space<vmem>>, %arg6: memref<64x32xf32, #tpu.memory_space<vmem>>, %arg7: memref<8x128xf32, #tpu.memory_space<vmem>>, %arg8: memref<16x32xf32, #tpu.memory_space<vmem>>) attributes {dimension_semantics = [#tpu.dimension_semantics<arbitrary>], iteration_bounds = array<i64: 1>, scalar_prefetch = 0 : i64, scratch_operands = 0 : i64, tpu.core_type = #tpu.core_type<tc>, window_params = [{pipeline_mode = #tpu.pipeline_mode<synchronous>, transform_indices = @transform_0, window_bounds = array<i64: 16, 32>}, {pipeline_mode = #tpu.pipeline_mode<synchronous>, transform_indices = @transform_1, window_bounds = array<i64: 16, 32>}, {pipeline_mode = #tpu.pipeline_mode<synchronous>, transform_indices = @transform_2, window_bounds = array<i64: 16, 16>}, {pipeline_mode = #tpu.pipeline_mode<synchronous>, transform_indices = @transform_3, window_bounds = array<i64: 16, 16>}, {pipeline_mode = #tpu.pipeline_mode<synchronous>, transform_indices = @transform_4, window_bounds = array<i64: 32, 320>}, {pipeline_mode = #tpu.pipeline_mode<synchronous>, transform_indices = @transform_5, window_bounds = array<i64: 64, 32>}, {pipeline_mode = #tpu.pipeline_mode<synchronous>, transform_indices = @transform_6, window_bounds = array<i64: 8, 128>}, {pipeline_mode = #tpu.pipeline_mode<synchronous>, transform_indices = @transform_7, window_bounds = array<i64: 16, 32>}]} {
    %c0 = arith.constant 0 : index
    %c0_0 = arith.constant 0 : index
    %0 = vector.load %arg1[%c0, %c0_0] : memref<16x32xf32, #tpu.memory_space<vmem>>, vector<16x32xf32>
    %c0_1 = arith.constant 0 : index
    %c0_2 = arith.constant 0 : index
    %1 = vector.load %arg2[%c0_1, %c0_2] : memref<16x32xf32, #tpu.memory_space<vmem>>, vector<16x32xf32>
    %c0_3 = arith.constant 0 : index
    %c0_4 = arith.constant 0 : index
    %2 = vector.load %arg3[%c0_3, %c0_4] : memref<16x16xf32, #tpu.memory_space<vmem>>, vector<16x16xf32>
    %c0_5 = arith.constant 0 : index
    %c0_6 = arith.constant 0 : index
    %3 = vector.load %arg4[%c0_5, %c0_6] : memref<16x16xf32, #tpu.memory_space<vmem>>, vector<16x16xf32>
    %c0_7 = arith.constant 0 : index
    %c0_8 = arith.constant 0 : index
    %4 = vector.load %arg7[%c0_7, %c0_8] : memref<8x128xf32, #tpu.memory_space<vmem>>, vector<8x128xf32>
    %5 = vector.extract_strided_slice %4 {offsets = [3, 0], sizes = [1, 32], strides = [1, 1]} : vector<8x128xf32> to vector<1x32xf32>
    %6 = vector.extract_strided_slice %4 {offsets = [3, 32], sizes = [1, 32], strides = [1, 1]} : vector<8x128xf32> to vector<1x32xf32>
    %7 = vector.extract_strided_slice %4 {offsets = [3, 64], sizes = [1, 32], strides = [1, 1]} : vector<8x128xf32> to vector<1x32xf32>
    %8 = vector.extract_strided_slice %4 {offsets = [3, 96], sizes = [1, 32], strides = [1, 1]} : vector<8x128xf32> to vector<1x32xf32>
    %9 = vector.extract_strided_slice %4 {offsets = [4, 0], sizes = [1, 32], strides = [1, 1]} : vector<8x128xf32> to vector<1x32xf32>
    %10 = vector.extract_strided_slice %4 {offsets = [4, 32], sizes = [1, 32], strides = [1, 1]} : vector<8x128xf32> to vector<1x32xf32>
    %cst = arith.constant dense<0.000000e+00> : vector<16xf32>
    %11 = vector.multi_reduction <add>, %0, %cst [1] : vector<16x32xf32> to vector<16xf32>
    %12 = vector.shape_cast %11 : vector<16xf32> to vector<16x1xf32>
    %cst_9 = arith.constant 3.200000e+01 : f32
    %13 = vector.broadcast %cst_9 : f32 to vector<16x1xf32>
    %14 = arith.divf %12, %13 : vector<16x1xf32>
    %15 = vector.broadcast %14 : vector<16x1xf32> to vector<16x32xf32>
    %16 = arith.subf %0, %15 : vector<16x32xf32>
    %17 = arith.mulf %16, %16 : vector<16x32xf32>
    %cst_10 = arith.constant dense<0.000000e+00> : vector<16xf32>
    %18 = vector.multi_reduction <add>, %17, %cst_10 [1] : vector<16x32xf32> to vector<16xf32>
    %19 = vector.shape_cast %18 : vector<16xf32> to vector<16x1xf32>
    %cst_11 = arith.constant 3.100000e+01 : f32
    %20 = vector.broadcast %cst_11 : f32 to vector<16x1xf32>
    %21 = arith.divf %19, %20 : vector<16x1xf32>
    %22 = math.sqrt %21 : vector<16x1xf32>
    %cst_12 = arith.constant 9.99999997E-7 : f32
    %23 = vector.broadcast %cst_12 : f32 to vector<16x1xf32>
    %24 = arith.addf %22, %23 : vector<16x1xf32>
    %25 = tpu.reciprocal %24 : vector<16x1xf32> -> vector<16x1xf32>
    %26 = vector.broadcast %25 : vector<16x1xf32> to vector<16x32xf32>
    %27 = arith.mulf %16, %26 : vector<16x32xf32>
    %28 = vector.broadcast %5 : vector<1x32xf32> to vector<16x32xf32>
    %29 = arith.mulf %28, %27 : vector<16x32xf32>
    %30 = vector.broadcast %6 : vector<1x32xf32> to vector<16x32xf32>
    %31 = arith.addf %29, %30 : vector<16x32xf32>
    %c0_13 = arith.constant 0 : index
    %c0_14 = arith.constant 0 : index
    %32 = vector.load %arg5[%c0_13, %c0_14] : memref<32x320xf32, #tpu.memory_space<vmem>>, vector<32x96xf32>
    %cst_15 = arith.constant dense<0.000000e+00> : vector<16x96xf32>
    %33 = tpu.matmul %31, %32, %cst_15 {dimension_numbers = #tpu.dot_dimension_numbers<[1], [0], [0], [1], [0, 0, 1, 1], [], []>, precision = #tpu.contract_precision<fp32>} : vector<16x32xf32>, vector<32x96xf32>, vector<16x96xf32> -> vector<16x96xf32>
    %34 = vector.extract_strided_slice %4 {offsets = [0, 0], sizes = [1, 96], strides = [1, 1]} : vector<8x128xf32> to vector<1x96xf32>
    %35 = vector.broadcast %34 : vector<1x96xf32> to vector<16x96xf32>
    %36 = arith.addf %33, %35 : vector<16x96xf32>
    %37 = vector.extract_strided_slice %36 {offsets = [0, 0], sizes = [16, 32], strides = [1, 1]} : vector<16x96xf32> to vector<16x32xf32>
    %38 = vector.extract_strided_slice %36 {offsets = [0, 32], sizes = [16, 32], strides = [1, 1]} : vector<16x96xf32> to vector<16x32xf32>
    %39 = vector.extract_strided_slice %36 {offsets = [0, 64], sizes = [16, 32], strides = [1, 1]} : vector<16x96xf32> to vector<16x32xf32>
    %c0_16 = arith.constant 0 : index
    %c96 = arith.constant 96 : index
    %40 = vector.load %arg5[%c0_16, %c96] : memref<32x320xf32, #tpu.memory_space<vmem>>, vector<32x32xf32>
    %41 = vector.extract_strided_slice %4 {offsets = [0, 96], sizes = [1, 32], strides = [1, 1]} : vector<8x128xf32> to vector<1x32xf32>
    %cst_17 = arith.constant 0.000000e+00 : f32
    %42 = vector.broadcast %cst_17 : f32 to vector<16x32xf32>
    %43 = vector.extract_strided_slice %37 {offsets = [0, 0], sizes = [16, 8], strides = [1, 1]} : vector<16x32xf32> to vector<16x8xf32>
    %44 = vector.extract_strided_slice %38 {offsets = [0, 0], sizes = [16, 8], strides = [1, 1]} : vector<16x32xf32> to vector<16x8xf32>
    %45 = vector.extract_strided_slice %39 {offsets = [0, 0], sizes = [16, 8], strides = [1, 1]} : vector<16x32xf32> to vector<16x8xf32>
    %cst_18 = arith.constant dense<0.000000e+00> : vector<16x16xf32>
    %46 = tpu.matmul %43, %44, %cst_18 {dimension_numbers = #tpu.dot_dimension_numbers<[1], [1], [0], [0], [0, 0, 1, 0], [], []>, precision = #tpu.contract_precision<fp32>} : vector<16x8xf32>, vector<16x8xf32>, vector<16x16xf32> -> vector<16x16xf32>
    %cst_19 = arith.constant 0.353553385 : f32
    %47 = vector.broadcast %cst_19 : f32 to vector<16x16xf32>
    %48 = arith.mulf %46, %47 : vector<16x16xf32>
    %49 = arith.addf %48, %2 : vector<16x16xf32>
    %cst_20 = arith.constant dense<0xFF800000> : vector<16xf32>
    %50 = vector.multi_reduction <maximumf>, %49, %cst_20 [1] : vector<16x16xf32> to vector<16xf32>
    %51 = vector.shape_cast %50 : vector<16xf32> to vector<16x1xf32>
    %52 = vector.broadcast %51 : vector<16x1xf32> to vector<16x16xf32>
    %53 = arith.subf %49, %52 : vector<16x16xf32>
    %54 = math.exp %53 : vector<16x16xf32>
    %cst_21 = arith.constant dense<0.000000e+00> : vector<16xf32>
    %55 = vector.multi_reduction <add>, %54, %cst_21 [1] : vector<16x16xf32> to vector<16xf32>
    %56 = vector.shape_cast %55 : vector<16xf32> to vector<16x1xf32>
    %57 = tpu.reciprocal %56 : vector<16x1xf32> -> vector<16x1xf32>
    %58 = vector.broadcast %57 : vector<16x1xf32> to vector<16x16xf32>
    %59 = arith.mulf %54, %58 : vector<16x16xf32>
    %cst_22 = arith.constant dense<0.000000e+00> : vector<16x8xf32>
    %60 = tpu.matmul %59, %45, %cst_22 {dimension_numbers = #tpu.dot_dimension_numbers<[1], [0], [0], [1], [0, 0, 1, 1], [], []>, precision = #tpu.contract_precision<fp32>} : vector<16x16xf32>, vector<16x8xf32>, vector<16x8xf32> -> vector<16x8xf32>
    %61 = vector.extract_strided_slice %40 {offsets = [0, 0], sizes = [8, 32], strides = [1, 1]} : vector<32x32xf32> to vector<8x32xf32>
    %cst_23 = arith.constant dense<0.000000e+00> : vector<16x32xf32>
    %62 = tpu.matmul %60, %61, %cst_23 {dimension_numbers = #tpu.dot_dimension_numbers<[1], [0], [0], [1], [0, 0, 1, 1], [], []>, precision = #tpu.contract_precision<fp32>} : vector<16x8xf32>, vector<8x32xf32>, vector<16x32xf32> -> vector<16x32xf32>
    %63 = arith.addf %42, %62 : vector<16x32xf32>
    %64 = vector.extract_strided_slice %37 {offsets = [0, 8], sizes = [16, 8], strides = [1, 1]} : vector<16x32xf32> to vector<16x8xf32>
    %65 = vector.extract_strided_slice %38 {offsets = [0, 8], sizes = [16, 8], strides = [1, 1]} : vector<16x32xf32> to vector<16x8xf32>
    %66 = vector.extract_strided_slice %39 {offsets = [0, 8], sizes = [16, 8], strides = [1, 1]} : vector<16x32xf32> to vector<16x8xf32>
    %cst_24 = arith.constant dense<0.000000e+00> : vector<16x16xf32>
    %67 = tpu.matmul %64, %65, %cst_24 {dimension_numbers = #tpu.dot_dimension_numbers<[1], [1], [0], [0], [0, 0, 1, 0], [], []>, precision = #tpu.contract_precision<fp32>} : vector<16x8xf32>, vector<16x8xf32>, vector<16x16xf32> -> vector<16x16xf32>
    %cst_25 = arith.constant 0.353553385 : f32
    %68 = vector.broadcast %cst_25 : f32 to vector<16x16xf32>
    %69 = arith.mulf %67, %68 : vector<16x16xf32>
    %70 = arith.addf %69, %2 : vector<16x16xf32>
    %cst_26 = arith.constant dense<0xFF800000> : vector<16xf32>
    %71 = vector.multi_reduction <maximumf>, %70, %cst_26 [1] : vector<16x16xf32> to vector<16xf32>
    %72 = vector.shape_cast %71 : vector<16xf32> to vector<16x1xf32>
    %73 = vector.broadcast %72 : vector<16x1xf32> to vector<16x16xf32>
    %74 = arith.subf %70, %73 : vector<16x16xf32>
    %75 = math.exp %74 : vector<16x16xf32>
    %cst_27 = arith.constant dense<0.000000e+00> : vector<16xf32>
    %76 = vector.multi_reduction <add>, %75, %cst_27 [1] : vector<16x16xf32> to vector<16xf32>
    %77 = vector.shape_cast %76 : vector<16xf32> to vector<16x1xf32>
    %78 = tpu.reciprocal %77 : vector<16x1xf32> -> vector<16x1xf32>
    %79 = vector.broadcast %78 : vector<16x1xf32> to vector<16x16xf32>
    %80 = arith.mulf %75, %79 : vector<16x16xf32>
    %cst_28 = arith.constant dense<0.000000e+00> : vector<16x8xf32>
    %81 = tpu.matmul %80, %66, %cst_28 {dimension_numbers = #tpu.dot_dimension_numbers<[1], [0], [0], [1], [0, 0, 1, 1], [], []>, precision = #tpu.contract_precision<fp32>} : vector<16x16xf32>, vector<16x8xf32>, vector<16x8xf32> -> vector<16x8xf32>
    %82 = vector.extract_strided_slice %40 {offsets = [8, 0], sizes = [8, 32], strides = [1, 1]} : vector<32x32xf32> to vector<8x32xf32>
    %cst_29 = arith.constant dense<0.000000e+00> : vector<16x32xf32>
    %83 = tpu.matmul %81, %82, %cst_29 {dimension_numbers = #tpu.dot_dimension_numbers<[1], [0], [0], [1], [0, 0, 1, 1], [], []>, precision = #tpu.contract_precision<fp32>} : vector<16x8xf32>, vector<8x32xf32>, vector<16x32xf32> -> vector<16x32xf32>
    %84 = arith.addf %63, %83 : vector<16x32xf32>
    %85 = vector.extract_strided_slice %37 {offsets = [0, 16], sizes = [16, 8], strides = [1, 1]} : vector<16x32xf32> to vector<16x8xf32>
    %86 = vector.extract_strided_slice %38 {offsets = [0, 16], sizes = [16, 8], strides = [1, 1]} : vector<16x32xf32> to vector<16x8xf32>
    %87 = vector.extract_strided_slice %39 {offsets = [0, 16], sizes = [16, 8], strides = [1, 1]} : vector<16x32xf32> to vector<16x8xf32>
    %cst_30 = arith.constant dense<0.000000e+00> : vector<16x16xf32>
    %88 = tpu.matmul %85, %86, %cst_30 {dimension_numbers = #tpu.dot_dimension_numbers<[1], [1], [0], [0], [0, 0, 1, 0], [], []>, precision = #tpu.contract_precision<fp32>} : vector<16x8xf32>, vector<16x8xf32>, vector<16x16xf32> -> vector<16x16xf32>
    %cst_31 = arith.constant 0.353553385 : f32
    %89 = vector.broadcast %cst_31 : f32 to vector<16x16xf32>
    %90 = arith.mulf %88, %89 : vector<16x16xf32>
    %91 = arith.addf %90, %2 : vector<16x16xf32>
    %cst_32 = arith.constant dense<0xFF800000> : vector<16xf32>
    %92 = vector.multi_reduction <maximumf>, %91, %cst_32 [1] : vector<16x16xf32> to vector<16xf32>
    %93 = vector.shape_cast %92 : vector<16xf32> to vector<16x1xf32>
    %94 = vector.broadcast %93 : vector<16x1xf32> to vector<16x16xf32>
    %95 = arith.subf %91, %94 : vector<16x16xf32>
    %96 = math.exp %95 : vector<16x16xf32>
    %cst_33 = arith.constant dense<0.000000e+00> : vector<16xf32>
    %97 = vector.multi_reduction <add>, %96, %cst_33 [1] : vector<16x16xf32> to vector<16xf32>
    %98 = vector.shape_cast %97 : vector<16xf32> to vector<16x1xf32>
    %99 = tpu.reciprocal %98 : vector<16x1xf32> -> vector<16x1xf32>
    %100 = vector.broadcast %99 : vector<16x1xf32> to vector<16x16xf32>
    %101 = arith.mulf %96, %100 : vector<16x16xf32>
    %cst_34 = arith.constant dense<0.000000e+00> : vector<16x8xf32>
    %102 = tpu.matmul %101, %87, %cst_34 {dimension_numbers = #tpu.dot_dimension_numbers<[1], [0], [0], [1], [0, 0, 1, 1], [], []>, precision = #tpu.contract_precision<fp32>} : vector<16x16xf32>, vector<16x8xf32>, vector<16x8xf32> -> vector<16x8xf32>
    %103 = vector.extract_strided_slice %40 {offsets = [16, 0], sizes = [8, 32], strides = [1, 1]} : vector<32x32xf32> to vector<8x32xf32>
    %cst_35 = arith.constant dense<0.000000e+00> : vector<16x32xf32>
    %104 = tpu.matmul %102, %103, %cst_35 {dimension_numbers = #tpu.dot_dimension_numbers<[1], [0], [0], [1], [0, 0, 1, 1], [], []>, precision = #tpu.contract_precision<fp32>} : vector<16x8xf32>, vector<8x32xf32>, vector<16x32xf32> -> vector<16x32xf32>
    %105 = arith.addf %84, %104 : vector<16x32xf32>
    %106 = vector.extract_strided_slice %37 {offsets = [0, 24], sizes = [16, 8], strides = [1, 1]} : vector<16x32xf32> to vector<16x8xf32>
    %107 = vector.extract_strided_slice %38 {offsets = [0, 24], sizes = [16, 8], strides = [1, 1]} : vector<16x32xf32> to vector<16x8xf32>
    %108 = vector.extract_strided_slice %39 {offsets = [0, 24], sizes = [16, 8], strides = [1, 1]} : vector<16x32xf32> to vector<16x8xf32>
    %cst_36 = arith.constant dense<0.000000e+00> : vector<16x16xf32>
    %109 = tpu.matmul %106, %107, %cst_36 {dimension_numbers = #tpu.dot_dimension_numbers<[1], [1], [0], [0], [0, 0, 1, 0], [], []>, precision = #tpu.contract_precision<fp32>} : vector<16x8xf32>, vector<16x8xf32>, vector<16x16xf32> -> vector<16x16xf32>
    %cst_37 = arith.constant 0.353553385 : f32
    %110 = vector.broadcast %cst_37 : f32 to vector<16x16xf32>
    %111 = arith.mulf %109, %110 : vector<16x16xf32>
    %112 = arith.addf %111, %2 : vector<16x16xf32>
    %cst_38 = arith.constant dense<0xFF800000> : vector<16xf32>
    %113 = vector.multi_reduction <maximumf>, %112, %cst_38 [1] : vector<16x16xf32> to vector<16xf32>
    %114 = vector.shape_cast %113 : vector<16xf32> to vector<16x1xf32>
    %115 = vector.broadcast %114 : vector<16x1xf32> to vector<16x16xf32>
    %116 = arith.subf %112, %115 : vector<16x16xf32>
    %117 = math.exp %116 : vector<16x16xf32>
    %cst_39 = arith.constant dense<0.000000e+00> : vector<16xf32>
    %118 = vector.multi_reduction <add>, %117, %cst_39 [1] : vector<16x16xf32> to vector<16xf32>
    %119 = vector.shape_cast %118 : vector<16xf32> to vector<16x1xf32>
    %120 = tpu.reciprocal %119 : vector<16x1xf32> -> vector<16x1xf32>
    %121 = vector.broadcast %120 : vector<16x1xf32> to vector<16x16xf32>
    %122 = arith.mulf %117, %121 : vector<16x16xf32>
    %cst_40 = arith.constant dense<0.000000e+00> : vector<16x8xf32>
    %123 = tpu.matmul %122, %108, %cst_40 {dimension_numbers = #tpu.dot_dimension_numbers<[1], [0], [0], [1], [0, 0, 1, 1], [], []>, precision = #tpu.contract_precision<fp32>} : vector<16x16xf32>, vector<16x8xf32>, vector<16x8xf32> -> vector<16x8xf32>
    %124 = vector.extract_strided_slice %40 {offsets = [24, 0], sizes = [8, 32], strides = [1, 1]} : vector<32x32xf32> to vector<8x32xf32>
    %cst_41 = arith.constant dense<0.000000e+00> : vector<16x32xf32>
    %125 = tpu.matmul %123, %124, %cst_41 {dimension_numbers = #tpu.dot_dimension_numbers<[1], [0], [0], [1], [0, 0, 1, 1], [], []>, precision = #tpu.contract_precision<fp32>} : vector<16x8xf32>, vector<8x32xf32>, vector<16x32xf32> -> vector<16x32xf32>
    %126 = arith.addf %105, %125 : vector<16x32xf32>
    %127 = vector.broadcast %41 : vector<1x32xf32> to vector<16x32xf32>
    %128 = arith.addf %126, %127 : vector<16x32xf32>
    %129 = arith.addf %0, %128 : vector<16x32xf32>
    %cst_42 = arith.constant dense<0.000000e+00> : vector<16xf32>
    %130 = vector.multi_reduction <add>, %129, %cst_42 [1] : vector<16x32xf32> to vector<16xf32>
    %131 = vector.shape_cast %130 : vector<16xf32> to vector<16x1xf32>
    %cst_43 = arith.constant 3.200000e+01 : f32
    %132 = vector.broadcast %cst_43 : f32 to vector<16x1xf32>
    %133 = arith.divf %131, %132 : vector<16x1xf32>
    %134 = vector.broadcast %133 : vector<16x1xf32> to vector<16x32xf32>
    %135 = arith.subf %129, %134 : vector<16x32xf32>
    %136 = arith.mulf %135, %135 : vector<16x32xf32>
    %cst_44 = arith.constant dense<0.000000e+00> : vector<16xf32>
    %137 = vector.multi_reduction <add>, %136, %cst_44 [1] : vector<16x32xf32> to vector<16xf32>
    %138 = vector.shape_cast %137 : vector<16xf32> to vector<16x1xf32>
    %cst_45 = arith.constant 3.100000e+01 : f32
    %139 = vector.broadcast %cst_45 : f32 to vector<16x1xf32>
    %140 = arith.divf %138, %139 : vector<16x1xf32>
    %141 = math.sqrt %140 : vector<16x1xf32>
    %cst_46 = arith.constant 9.99999997E-7 : f32
    %142 = vector.broadcast %cst_46 : f32 to vector<16x1xf32>
    %143 = arith.addf %141, %142 : vector<16x1xf32>
    %144 = tpu.reciprocal %143 : vector<16x1xf32> -> vector<16x1xf32>
    %145 = vector.broadcast %144 : vector<16x1xf32> to vector<16x32xf32>
    %146 = arith.mulf %135, %145 : vector<16x32xf32>
    %147 = vector.broadcast %7 : vector<1x32xf32> to vector<16x32xf32>
    %148 = arith.mulf %147, %146 : vector<16x32xf32>
    %149 = vector.broadcast %8 : vector<1x32xf32> to vector<16x32xf32>
    %150 = arith.addf %148, %149 : vector<16x32xf32>
    %c0_47 = arith.constant 0 : index
    %c128 = arith.constant 128 : index
    %151 = vector.load %arg5[%c0_47, %c128] : memref<32x320xf32, #tpu.memory_space<vmem>>, vector<32x32xf32>
    %cst_48 = arith.constant dense<0.000000e+00> : vector<16x32xf32>
    %152 = tpu.matmul %150, %151, %cst_48 {dimension_numbers = #tpu.dot_dimension_numbers<[1], [0], [0], [1], [0, 0, 1, 1], [], []>, precision = #tpu.contract_precision<fp32>} : vector<16x32xf32>, vector<32x32xf32>, vector<16x32xf32> -> vector<16x32xf32>
    %153 = vector.extract_strided_slice %4 {offsets = [1, 0], sizes = [1, 32], strides = [1, 1]} : vector<8x128xf32> to vector<1x32xf32>
    %154 = vector.broadcast %153 : vector<1x32xf32> to vector<16x32xf32>
    %155 = arith.addf %152, %154 : vector<16x32xf32>
    %c0_49 = arith.constant 0 : index
    %c160 = arith.constant 160 : index
    %156 = vector.load %arg5[%c0_49, %c160] : memref<32x320xf32, #tpu.memory_space<vmem>>, vector<32x64xf32>
    %cst_50 = arith.constant dense<0.000000e+00> : vector<16x64xf32>
    %157 = tpu.matmul %1, %156, %cst_50 {dimension_numbers = #tpu.dot_dimension_numbers<[1], [0], [0], [1], [0, 0, 1, 1], [], []>, precision = #tpu.contract_precision<fp32>} : vector<16x32xf32>, vector<32x64xf32>, vector<16x64xf32> -> vector<16x64xf32>
    %158 = vector.extract_strided_slice %4 {offsets = [1, 32], sizes = [1, 64], strides = [1, 1]} : vector<8x128xf32> to vector<1x64xf32>
    %159 = vector.broadcast %158 : vector<1x64xf32> to vector<16x64xf32>
    %160 = arith.addf %157, %159 : vector<16x64xf32>
    %161 = vector.extract_strided_slice %160 {offsets = [0, 0], sizes = [16, 32], strides = [1, 1]} : vector<16x64xf32> to vector<16x32xf32>
    %162 = vector.extract_strided_slice %160 {offsets = [0, 32], sizes = [16, 32], strides = [1, 1]} : vector<16x64xf32> to vector<16x32xf32>
    %c0_51 = arith.constant 0 : index
    %c224 = arith.constant 224 : index
    %163 = vector.load %arg5[%c0_51, %c224] : memref<32x320xf32, #tpu.memory_space<vmem>>, vector<32x32xf32>
    %164 = vector.extract_strided_slice %4 {offsets = [1, 96], sizes = [1, 32], strides = [1, 1]} : vector<8x128xf32> to vector<1x32xf32>
    %cst_52 = arith.constant 0.000000e+00 : f32
    %165 = vector.broadcast %cst_52 : f32 to vector<16x32xf32>
    %166 = vector.extract_strided_slice %155 {offsets = [0, 0], sizes = [16, 8], strides = [1, 1]} : vector<16x32xf32> to vector<16x8xf32>
    %167 = vector.extract_strided_slice %161 {offsets = [0, 0], sizes = [16, 8], strides = [1, 1]} : vector<16x32xf32> to vector<16x8xf32>
    %168 = vector.extract_strided_slice %162 {offsets = [0, 0], sizes = [16, 8], strides = [1, 1]} : vector<16x32xf32> to vector<16x8xf32>
    %cst_53 = arith.constant dense<0.000000e+00> : vector<16x16xf32>
    %169 = tpu.matmul %166, %167, %cst_53 {dimension_numbers = #tpu.dot_dimension_numbers<[1], [1], [0], [0], [0, 0, 1, 0], [], []>, precision = #tpu.contract_precision<fp32>} : vector<16x8xf32>, vector<16x8xf32>, vector<16x16xf32> -> vector<16x16xf32>
    %cst_54 = arith.constant 0.353553385 : f32
    %170 = vector.broadcast %cst_54 : f32 to vector<16x16xf32>
    %171 = arith.mulf %169, %170 : vector<16x16xf32>
    %172 = arith.addf %171, %3 : vector<16x16xf32>
    %cst_55 = arith.constant dense<0xFF800000> : vector<16xf32>
    %173 = vector.multi_reduction <maximumf>, %172, %cst_55 [1] : vector<16x16xf32> to vector<16xf32>
    %174 = vector.shape_cast %173 : vector<16xf32> to vector<16x1xf32>
    %175 = vector.broadcast %174 : vector<16x1xf32> to vector<16x16xf32>
    %176 = arith.subf %172, %175 : vector<16x16xf32>
    %177 = math.exp %176 : vector<16x16xf32>
    %cst_56 = arith.constant dense<0.000000e+00> : vector<16xf32>
    %178 = vector.multi_reduction <add>, %177, %cst_56 [1] : vector<16x16xf32> to vector<16xf32>
    %179 = vector.shape_cast %178 : vector<16xf32> to vector<16x1xf32>
    %180 = tpu.reciprocal %179 : vector<16x1xf32> -> vector<16x1xf32>
    %181 = vector.broadcast %180 : vector<16x1xf32> to vector<16x16xf32>
    %182 = arith.mulf %177, %181 : vector<16x16xf32>
    %cst_57 = arith.constant dense<0.000000e+00> : vector<16x8xf32>
    %183 = tpu.matmul %182, %168, %cst_57 {dimension_numbers = #tpu.dot_dimension_numbers<[1], [0], [0], [1], [0, 0, 1, 1], [], []>, precision = #tpu.contract_precision<fp32>} : vector<16x16xf32>, vector<16x8xf32>, vector<16x8xf32> -> vector<16x8xf32>
    %184 = vector.extract_strided_slice %163 {offsets = [0, 0], sizes = [8, 32], strides = [1, 1]} : vector<32x32xf32> to vector<8x32xf32>
    %cst_58 = arith.constant dense<0.000000e+00> : vector<16x32xf32>
    %185 = tpu.matmul %183, %184, %cst_58 {dimension_numbers = #tpu.dot_dimension_numbers<[1], [0], [0], [1], [0, 0, 1, 1], [], []>, precision = #tpu.contract_precision<fp32>} : vector<16x8xf32>, vector<8x32xf32>, vector<16x32xf32> -> vector<16x32xf32>
    %186 = arith.addf %165, %185 : vector<16x32xf32>
    %187 = vector.extract_strided_slice %155 {offsets = [0, 8], sizes = [16, 8], strides = [1, 1]} : vector<16x32xf32> to vector<16x8xf32>
    %188 = vector.extract_strided_slice %161 {offsets = [0, 8], sizes = [16, 8], strides = [1, 1]} : vector<16x32xf32> to vector<16x8xf32>
    %189 = vector.extract_strided_slice %162 {offsets = [0, 8], sizes = [16, 8], strides = [1, 1]} : vector<16x32xf32> to vector<16x8xf32>
    %cst_59 = arith.constant dense<0.000000e+00> : vector<16x16xf32>
    %190 = tpu.matmul %187, %188, %cst_59 {dimension_numbers = #tpu.dot_dimension_numbers<[1], [1], [0], [0], [0, 0, 1, 0], [], []>, precision = #tpu.contract_precision<fp32>} : vector<16x8xf32>, vector<16x8xf32>, vector<16x16xf32> -> vector<16x16xf32>
    %cst_60 = arith.constant 0.353553385 : f32
    %191 = vector.broadcast %cst_60 : f32 to vector<16x16xf32>
    %192 = arith.mulf %190, %191 : vector<16x16xf32>
    %193 = arith.addf %192, %3 : vector<16x16xf32>
    %cst_61 = arith.constant dense<0xFF800000> : vector<16xf32>
    %194 = vector.multi_reduction <maximumf>, %193, %cst_61 [1] : vector<16x16xf32> to vector<16xf32>
    %195 = vector.shape_cast %194 : vector<16xf32> to vector<16x1xf32>
    %196 = vector.broadcast %195 : vector<16x1xf32> to vector<16x16xf32>
    %197 = arith.subf %193, %196 : vector<16x16xf32>
    %198 = math.exp %197 : vector<16x16xf32>
    %cst_62 = arith.constant dense<0.000000e+00> : vector<16xf32>
    %199 = vector.multi_reduction <add>, %198, %cst_62 [1] : vector<16x16xf32> to vector<16xf32>
    %200 = vector.shape_cast %199 : vector<16xf32> to vector<16x1xf32>
    %201 = tpu.reciprocal %200 : vector<16x1xf32> -> vector<16x1xf32>
    %202 = vector.broadcast %201 : vector<16x1xf32> to vector<16x16xf32>
    %203 = arith.mulf %198, %202 : vector<16x16xf32>
    %cst_63 = arith.constant dense<0.000000e+00> : vector<16x8xf32>
    %204 = tpu.matmul %203, %189, %cst_63 {dimension_numbers = #tpu.dot_dimension_numbers<[1], [0], [0], [1], [0, 0, 1, 1], [], []>, precision = #tpu.contract_precision<fp32>} : vector<16x16xf32>, vector<16x8xf32>, vector<16x8xf32> -> vector<16x8xf32>
    %205 = vector.extract_strided_slice %163 {offsets = [8, 0], sizes = [8, 32], strides = [1, 1]} : vector<32x32xf32> to vector<8x32xf32>
    %cst_64 = arith.constant dense<0.000000e+00> : vector<16x32xf32>
    %206 = tpu.matmul %204, %205, %cst_64 {dimension_numbers = #tpu.dot_dimension_numbers<[1], [0], [0], [1], [0, 0, 1, 1], [], []>, precision = #tpu.contract_precision<fp32>} : vector<16x8xf32>, vector<8x32xf32>, vector<16x32xf32> -> vector<16x32xf32>
    %207 = arith.addf %186, %206 : vector<16x32xf32>
    %208 = vector.extract_strided_slice %155 {offsets = [0, 16], sizes = [16, 8], strides = [1, 1]} : vector<16x32xf32> to vector<16x8xf32>
    %209 = vector.extract_strided_slice %161 {offsets = [0, 16], sizes = [16, 8], strides = [1, 1]} : vector<16x32xf32> to vector<16x8xf32>
    %210 = vector.extract_strided_slice %162 {offsets = [0, 16], sizes = [16, 8], strides = [1, 1]} : vector<16x32xf32> to vector<16x8xf32>
    %cst_65 = arith.constant dense<0.000000e+00> : vector<16x16xf32>
    %211 = tpu.matmul %208, %209, %cst_65 {dimension_numbers = #tpu.dot_dimension_numbers<[1], [1], [0], [0], [0, 0, 1, 0], [], []>, precision = #tpu.contract_precision<fp32>} : vector<16x8xf32>, vector<16x8xf32>, vector<16x16xf32> -> vector<16x16xf32>
    %cst_66 = arith.constant 0.353553385 : f32
    %212 = vector.broadcast %cst_66 : f32 to vector<16x16xf32>
    %213 = arith.mulf %211, %212 : vector<16x16xf32>
    %214 = arith.addf %213, %3 : vector<16x16xf32>
    %cst_67 = arith.constant dense<0xFF800000> : vector<16xf32>
    %215 = vector.multi_reduction <maximumf>, %214, %cst_67 [1] : vector<16x16xf32> to vector<16xf32>
    %216 = vector.shape_cast %215 : vector<16xf32> to vector<16x1xf32>
    %217 = vector.broadcast %216 : vector<16x1xf32> to vector<16x16xf32>
    %218 = arith.subf %214, %217 : vector<16x16xf32>
    %219 = math.exp %218 : vector<16x16xf32>
    %cst_68 = arith.constant dense<0.000000e+00> : vector<16xf32>
    %220 = vector.multi_reduction <add>, %219, %cst_68 [1] : vector<16x16xf32> to vector<16xf32>
    %221 = vector.shape_cast %220 : vector<16xf32> to vector<16x1xf32>
    %222 = tpu.reciprocal %221 : vector<16x1xf32> -> vector<16x1xf32>
    %223 = vector.broadcast %222 : vector<16x1xf32> to vector<16x16xf32>
    %224 = arith.mulf %219, %223 : vector<16x16xf32>
    %cst_69 = arith.constant dense<0.000000e+00> : vector<16x8xf32>
    %225 = tpu.matmul %224, %210, %cst_69 {dimension_numbers = #tpu.dot_dimension_numbers<[1], [0], [0], [1], [0, 0, 1, 1], [], []>, precision = #tpu.contract_precision<fp32>} : vector<16x16xf32>, vector<16x8xf32>, vector<16x8xf32> -> vector<16x8xf32>
    %226 = vector.extract_strided_slice %163 {offsets = [16, 0], sizes = [8, 32], strides = [1, 1]} : vector<32x32xf32> to vector<8x32xf32>
    %cst_70 = arith.constant dense<0.000000e+00> : vector<16x32xf32>
    %227 = tpu.matmul %225, %226, %cst_70 {dimension_numbers = #tpu.dot_dimension_numbers<[1], [0], [0], [1], [0, 0, 1, 1], [], []>, precision = #tpu.contract_precision<fp32>} : vector<16x8xf32>, vector<8x32xf32>, vector<16x32xf32> -> vector<16x32xf32>
    %228 = arith.addf %207, %227 : vector<16x32xf32>
    %229 = vector.extract_strided_slice %155 {offsets = [0, 24], sizes = [16, 8], strides = [1, 1]} : vector<16x32xf32> to vector<16x8xf32>
    %230 = vector.extract_strided_slice %161 {offsets = [0, 24], sizes = [16, 8], strides = [1, 1]} : vector<16x32xf32> to vector<16x8xf32>
    %231 = vector.extract_strided_slice %162 {offsets = [0, 24], sizes = [16, 8], strides = [1, 1]} : vector<16x32xf32> to vector<16x8xf32>
    %cst_71 = arith.constant dense<0.000000e+00> : vector<16x16xf32>
    %232 = tpu.matmul %229, %230, %cst_71 {dimension_numbers = #tpu.dot_dimension_numbers<[1], [1], [0], [0], [0, 0, 1, 0], [], []>, precision = #tpu.contract_precision<fp32>} : vector<16x8xf32>, vector<16x8xf32>, vector<16x16xf32> -> vector<16x16xf32>
    %cst_72 = arith.constant 0.353553385 : f32
    %233 = vector.broadcast %cst_72 : f32 to vector<16x16xf32>
    %234 = arith.mulf %232, %233 : vector<16x16xf32>
    %235 = arith.addf %234, %3 : vector<16x16xf32>
    %cst_73 = arith.constant dense<0xFF800000> : vector<16xf32>
    %236 = vector.multi_reduction <maximumf>, %235, %cst_73 [1] : vector<16x16xf32> to vector<16xf32>
    %237 = vector.shape_cast %236 : vector<16xf32> to vector<16x1xf32>
    %238 = vector.broadcast %237 : vector<16x1xf32> to vector<16x16xf32>
    %239 = arith.subf %235, %238 : vector<16x16xf32>
    %240 = math.exp %239 : vector<16x16xf32>
    %cst_74 = arith.constant dense<0.000000e+00> : vector<16xf32>
    %241 = vector.multi_reduction <add>, %240, %cst_74 [1] : vector<16x16xf32> to vector<16xf32>
    %242 = vector.shape_cast %241 : vector<16xf32> to vector<16x1xf32>
    %243 = tpu.reciprocal %242 : vector<16x1xf32> -> vector<16x1xf32>
    %244 = vector.broadcast %243 : vector<16x1xf32> to vector<16x16xf32>
    %245 = arith.mulf %240, %244 : vector<16x16xf32>
    %cst_75 = arith.constant dense<0.000000e+00> : vector<16x8xf32>
    %246 = tpu.matmul %245, %231, %cst_75 {dimension_numbers = #tpu.dot_dimension_numbers<[1], [0], [0], [1], [0, 0, 1, 1], [], []>, precision = #tpu.contract_precision<fp32>} : vector<16x16xf32>, vector<16x8xf32>, vector<16x8xf32> -> vector<16x8xf32>
    %247 = vector.extract_strided_slice %163 {offsets = [24, 0], sizes = [8, 32], strides = [1, 1]} : vector<32x32xf32> to vector<8x32xf32>
    %cst_76 = arith.constant dense<0.000000e+00> : vector<16x32xf32>
    %248 = tpu.matmul %246, %247, %cst_76 {dimension_numbers = #tpu.dot_dimension_numbers<[1], [0], [0], [1], [0, 0, 1, 1], [], []>, precision = #tpu.contract_precision<fp32>} : vector<16x8xf32>, vector<8x32xf32>, vector<16x32xf32> -> vector<16x32xf32>
    %249 = arith.addf %228, %248 : vector<16x32xf32>
    %250 = vector.broadcast %164 : vector<1x32xf32> to vector<16x32xf32>
    %251 = arith.addf %249, %250 : vector<16x32xf32>
    %252 = arith.addf %129, %251 : vector<16x32xf32>
    %cst_77 = arith.constant dense<0.000000e+00> : vector<16xf32>
    %253 = vector.multi_reduction <add>, %252, %cst_77 [1] : vector<16x32xf32> to vector<16xf32>
    %254 = vector.shape_cast %253 : vector<16xf32> to vector<16x1xf32>
    %cst_78 = arith.constant 3.200000e+01 : f32
    %255 = vector.broadcast %cst_78 : f32 to vector<16x1xf32>
    %256 = arith.divf %254, %255 : vector<16x1xf32>
    %257 = vector.broadcast %256 : vector<16x1xf32> to vector<16x32xf32>
    %258 = arith.subf %252, %257 : vector<16x32xf32>
    %259 = arith.mulf %258, %258 : vector<16x32xf32>
    %cst_79 = arith.constant dense<0.000000e+00> : vector<16xf32>
    %260 = vector.multi_reduction <add>, %259, %cst_79 [1] : vector<16x32xf32> to vector<16xf32>
    %261 = vector.shape_cast %260 : vector<16xf32> to vector<16x1xf32>
    %cst_80 = arith.constant 3.100000e+01 : f32
    %262 = vector.broadcast %cst_80 : f32 to vector<16x1xf32>
    %263 = arith.divf %261, %262 : vector<16x1xf32>
    %264 = math.sqrt %263 : vector<16x1xf32>
    %cst_81 = arith.constant 9.99999997E-7 : f32
    %265 = vector.broadcast %cst_81 : f32 to vector<16x1xf32>
    %266 = arith.addf %264, %265 : vector<16x1xf32>
    %267 = tpu.reciprocal %266 : vector<16x1xf32> -> vector<16x1xf32>
    %268 = vector.broadcast %267 : vector<16x1xf32> to vector<16x32xf32>
    %269 = arith.mulf %258, %268 : vector<16x32xf32>
    %270 = vector.broadcast %9 : vector<1x32xf32> to vector<16x32xf32>
    %271 = arith.mulf %270, %269 : vector<16x32xf32>
    %272 = vector.broadcast %10 : vector<1x32xf32> to vector<16x32xf32>
    %273 = arith.addf %271, %272 : vector<16x32xf32>
    %c0_82 = arith.constant 0 : index
    %c256 = arith.constant 256 : index
    %274 = vector.load %arg5[%c0_82, %c256] : memref<32x320xf32, #tpu.memory_space<vmem>>, vector<32x64xf32>
    %cst_83 = arith.constant dense<0.000000e+00> : vector<16x64xf32>
    %275 = tpu.matmul %273, %274, %cst_83 {dimension_numbers = #tpu.dot_dimension_numbers<[1], [0], [0], [1], [0, 0, 1, 1], [], []>, precision = #tpu.contract_precision<fp32>} : vector<16x32xf32>, vector<32x64xf32>, vector<16x64xf32> -> vector<16x64xf32>
    %276 = vector.extract_strided_slice %4 {offsets = [2, 0], sizes = [1, 64], strides = [1, 1]} : vector<8x128xf32> to vector<1x64xf32>
    %277 = vector.broadcast %276 : vector<1x64xf32> to vector<16x64xf32>
    %278 = arith.addf %275, %277 : vector<16x64xf32>
    %cst_84 = arith.constant 0.000000e+00 : f32
    %279 = vector.broadcast %cst_84 : f32 to vector<16x64xf32>
    %280 = arith.maximumf %278, %279 : vector<16x64xf32>
    %c0_85 = arith.constant 0 : index
    %c0_86 = arith.constant 0 : index
    %281 = vector.load %arg6[%c0_85, %c0_86] : memref<64x32xf32, #tpu.memory_space<vmem>>, vector<64x32xf32>
    %cst_87 = arith.constant dense<0.000000e+00> : vector<16x32xf32>
    %282 = tpu.matmul %280, %281, %cst_87 {dimension_numbers = #tpu.dot_dimension_numbers<[1], [0], [0], [1], [0, 0, 1, 1], [], []>, precision = #tpu.contract_precision<fp32>} : vector<16x64xf32>, vector<64x32xf32>, vector<16x32xf32> -> vector<16x32xf32>
    %283 = vector.extract_strided_slice %4 {offsets = [2, 64], sizes = [1, 32], strides = [1, 1]} : vector<8x128xf32> to vector<1x32xf32>
    %284 = vector.broadcast %283 : vector<1x32xf32> to vector<16x32xf32>
    %285 = arith.addf %282, %284 : vector<16x32xf32>
    %286 = arith.addf %252, %285 : vector<16x32xf32>
    %c0_88 = arith.constant 0 : index
    %c0_89 = arith.constant 0 : index
    %287 = vector.load %arg8[%c0_88, %c0_89] : memref<16x32xf32, #tpu.memory_space<vmem>>, vector<16x32xf32>
    tpu.vector_store %arg8[%c0_88, %c0_89], %286 {strides = array<i32>} : memref<16x32xf32, #tpu.memory_space<vmem>>, vector<16x32xf32>,
    return
  }
  func.func @transform_0(%arg0: i32) -> (i32, i32) {
    %c0_i32 = arith.constant 0 : i32
    %c0_i32_0 = arith.constant 0 : i32
    %c0_i32_1 = arith.constant 0 : i32
    return %c0_i32, %c0_i32_0 : i32, i32
  }
  func.func @transform_1(%arg0: i32) -> (i32, i32) {
    %c0_i32 = arith.constant 0 : i32
    %c0_i32_0 = arith.constant 0 : i32
    %c0_i32_1 = arith.constant 0 : i32
    return %c0_i32, %c0_i32_0 : i32, i32
  }
  func.func @transform_2(%arg0: i32) -> (i32, i32) {
    %c0_i32 = arith.constant 0 : i32
    %c0_i32_0 = arith.constant 0 : i32
    %c0_i32_1 = arith.constant 0 : i32
    return %c0_i32, %c0_i32_0 : i32, i32
  }
  func.func @transform_3(%arg0: i32) -> (i32, i32) {
    %c0_i32 = arith.constant 0 : i32
    %c0_i32_0 = arith.constant 0 : i32
    %c0_i32_1 = arith.constant 0 : i32
    return %c0_i32, %c0_i32_0 : i32, i32
  }
  func.func @transform_4(%arg0: i32) -> (i32, i32) {
    %c0_i32 = arith.constant 0 : i32
    %c0_i32_0 = arith.constant 0 : i32
    %c0_i32_1 = arith.constant 0 : i32
    return %c0_i32, %c0_i32_0 : i32, i32
  }
  func.func @transform_5(%arg0: i32) -> (i32, i32) {
    %c0_i32 = arith.constant 0 : i32
    %c0_i32_0 = arith.constant 0 : i32
    %c0_i32_1 = arith.constant 0 : i32
    return %c0_i32, %c0_i32_0 : i32, i32
  }
  func.func @transform_6(%arg0: i32) -> (i32, i32) {
    %c0_i32 = arith.constant 0 : i32
    %c0_i32_0 = arith.constant 0 : i32
    %c0_i32_1 = arith.constant 0 : i32
    return %c0_i32, %c0_i32_0 : i32, i32
  }
  func.func @transform_7(%arg0: i32) -> (i32, i32) {
    %c0_i32 = arith.constant 0 : i32
    %c0_i32_0 = arith.constant 0 : i32
    %c0_i32_1 = arith.constant 0 : i32
    return %c0_i32, %c0_i32_0 : i32, i32
  }
}

</mosaic_0001>

<bundles_post_ra>
// kernel: tpu_custom_call.1
= control target key start
LH: loop header
LB: loop body
LE: loop exit
PB: predicated region body
PF: predicated region fallthrough
CT: control target
= control target key end

     0   :  { %12 = vsyncpa [#allocation3], 0  ;;  %s8235_s0 = inlined_call_operand.hbm [shape: f32[16,32], index: 0, kind: input, shape index: {}]   ;;  %s8236_s1 = inlined_call_operand.hbm [shape: f32[16,32], index: 1, kind: input, shape index: {}]   ;;  %s8237_s2 = inlined_call_operand.hbm [shape: f32[16,16], index: 2, kind: input, shape index: {}]   ;;  %s8238_s3 = inlined_call_operand.hbm [shape: f32[16,16], index: 3, kind: input, shape index: {}]   ;;  %s8239_s4 = inlined_call_operand.vmem [shape: f32[32,320], index: 4, kind: input, shape index: {}]   ;;  %s8240_s5 = inlined_call_operand.vmem [shape: f32[64,32], index: 5, kind: input, shape index: {}]   ;;  %s8241_s6 = inlined_call_operand.hbm [shape: f32[8,128], index: 6, kind: input, shape index: {}]   ;;  %s8242_s7 = inlined_call_operand.hbm [shape: f32[16,32], index: 7, kind: output, shape index: {}]  }
   0x1   :  { %13 = vsyncpa [#allocation6], 0 }
   0x2   :  { %14 = vsyncpa [#allocation9], 0 }
   0x3   :  { %15 = vsyncpa [#allocation4], 0  ;;  %s33_s26 = sshll.u32 %s8236_s1, 4  ;;  %s7103_s27 = smov [#allocation5]   ;;  %s34_s26 = int_to_ptr.hbm [resolvable:$true] %s33_s26 }
   0x4   :  { %s35_s28 = sshll.u32 %s7103_s27, 4  ;;  %s59_s8 = sshll.u32 %s8238_s3, 4  ;;  %s36_s28 = int_to_ptr.vmem [resolvable:$true] %s35_s28  ;;  %s60_s8 = int_to_ptr.hbm [resolvable:$true] %s59_s8 }
   0x5   :  { %s7104_s9 = smov 128   ;;  %s7105_s10 = smov 8  }
   0x6   :  { %41 = dma.hbm_to_vmem [thread:$0]  %s34_s26, 256, %s36_s28, [#allocation6], %s7104_s9, %s7104_s9, %s7105_s10  }
   0x7   :  { %s7106_s11 = smov [#allocation8]   ;;  %s20_s1 = sshll.u32 %s8235_s0, 4  ;;  %s21_s1 = int_to_ptr.hbm [resolvable:$true] %s20_s1 }
   0x8   :  { %s61_s12 = sshll.u32 %s7106_s11, 4  ;;  %s46_s16 = sshll.u32 %s8237_s2, 4  ;;  %s62_s12 = int_to_ptr.vmem [resolvable:$true] %s61_s12  ;;  %s47_s16 = int_to_ptr.hbm [resolvable:$true] %s46_s16 }
   0x9   :  { %67 = dma.hbm_to_vmem [thread:$0]  %s60_s8, 256, %s62_s12, [#allocation9], %s7104_s9, %s7104_s9, %s7105_s10  }
   0xa   :  { %s7107_s17 = smov [#allocation2]   ;;  %s7108_s19 = smov [#allocation7]  }
   0xb   :  { %s22_s18 = sshll.u32 %s7107_s17, 4  ;;  %s48_s0 = sshll.u32 %s7108_s19, 4  ;;  %s23_s18 = int_to_ptr.vmem [resolvable:$true] %s22_s18  ;;  %s49_s0 = int_to_ptr.vmem [resolvable:$true] %s48_s0 }
   0xc   :  { %28 = dma.hbm_to_vmem [thread:$0]  %s21_s1, 256, %s23_s18, [#allocation3], %s7104_s9, %s7104_s9, %s7105_s10  }
   0xd   :  { %s77_s22 = sshll.u32 %s8241_s6, 4  ;;  %s7109_s2 = smov [#allocation10]   ;;  %s78_s22 = int_to_ptr.hbm [resolvable:$true] %s77_s22 }
   0xe   :  { %54 = dma.hbm_to_vmem [thread:$0]  %s47_s16, 256, %s49_s0, [#allocation6], %s7104_s9, %s7104_s9, %s7105_s10  }
   0xf   :  { %s79_s23 = sshll.u32 %s7109_s2, 4  ;;  %s80_s23 = int_to_ptr.vmem [resolvable:$true] %s79_s23 }
  0x10   :  { %82 = dma.hbm_to_vmem [thread:$0]  %s78_s22, 128, %s80_s23, [#allocation9]  }
  0x11   :  { %7095 = dma.done.wait [#allocation3], 256  }
  0x12   :  { %7096 = vsyncadd [#allocation3], 4294967040 }
  0x13   :  { %7097 = dma.done.wait [#allocation6], 512  }
  0x14   :  { %7098 = vsyncadd [#allocation6], 4294966784 }
  0x15   :  { %7099 = dma.done.wait [#allocation9], 384  }
  0x16   :  { %7100 = vsyncadd [#allocation9], 4294966912  ;;  %vm112_vm0 = vcmask 261120   ;;  %v104_v0 = vld [vmem:[#allocation2 + $0x8] sm:$0xff]  ;;  %v103_v2 = vld [vmem:[#allocation2] sm:$0xff]  ;;  %v7110_v4 = vmov 32.0  }
  0x17   :  { %v116_v1 = vsel %vm112_vm0, %v104_v0, 0.0  ;;  %v113_v3 = vsel %vm112_vm0, %v103_v2, 0.0  ;;  %6847 = vrcp.f32 %v7110_v4  ;;  %v7194_v7 = vld [vmem:[#allocation10] sm:$0xff]  ;;  %s7111_s6 = smov 96   ;;  %v7112_v23 = vmov 31.0   ;;  %v215_v30 = vld [vmem:[%s8239_s4 + $0x48] sm:$0xff] }
  0x18   :  { %117 = vadd.xlane.f32.xlu0 %v116_v1  ;;  %v7197_v8 = vperm.slane %v7194_v7, 3  ;;  %6849 = vrcp.f32 %v7112_v23  ;;  %v7220_v31 = vand.u32 4294901760, %v215_v30  ;;  %v214_v36 = vld [vmem:[%s8239_s4 + $0x30] sm:$0xff]  ;;  %v7235_v39 = vld [vmem:[%s8239_s4 + $0x18] sm:$0xff]  ;;  %v7244_v46 = vld [vmem:[%s8239_s4] sm:$0xff]  ;;  %s7113_s11 = smov 64  }
  0x19   :  { %v237_v38 = vand.u32 4294901760, %v214_v36  ;;  %v239_v43 = vand.u32 4294901760, %v7235_v39  ;;  %v241_v50 = vand.u32 4294901760, %v7244_v46  ;;  %s7114_s12 = smov 88   ;;  %s7115_s13 = smov 120   ;;  %vm445_vm15 = vcmask 64512  }
  0x1a   :  { %8247 = vst [vmem:[#allocation16_spill] sm:$0xff] %v7197_v8  ;;  %207 = vrot.lane.b32.xlu2 %v7197_v8, %s7111_s6  ;;  %v273_v34 = vsub.f32 %v215_v30, %v7220_v31  ;;  %6817 = vmatpush.msra.mxu2 %v7220_v31  ;;  %s7116_s14 = smov 56   ;;  %s7117_s1 = smov 32  }
  0x1b   :  { %236 = vmatpush.msra.mxu0 %v7220_v31  ;;  %v279_v42 = vsub.f32 %v214_v36, %v237_v38  ;;  %v285_v49 = vsub.f32 %v7235_v39, %v239_v43  ;;  %v291_v54 = vsub.f32 %v7244_v46, %v241_v50  ;;  %s7118_s3 = smov 80   ;;  %s7119_s15 = smov 112  }
  0x1c   :  { %v274_v35 = vand.u32 4294901760, %v273_v34  ;;  %6818 = vmatpush.msra.mxu2 %v237_v38  ;;  %s7120_s16 = smov 48   ;;  %s7121_s17 = smov 72  }
  0x1d   :  { %v6848_v5 = vpop.eup %6847  ;;  %238 = vmatpush.msra.mxu0 %v237_v38  ;;  %v280_v48 = vand.u32 4294901760, %v279_v42  ;;  %v286_v53 = vand.u32 4294901760, %v285_v49  ;;  %v292_v58 = vand.u32 4294901760, %v291_v54  ;;  %s7122_s18 = smov 104   ;;  %s7123_s20 = smov 40  }
  0x1e   :  { %v120_v6 = vmul.f32 32.0, %v6848_v5  ;;  %vm124_vm1 = vweird.f32 %v6848_v5  ;;  %v6850_v24 = vpop.eup %6849  ;;  %v275_v37 = vsub.f32 %v273_v34, %v274_v35  ;;  %6819 = vmatpush.msra.mxu2 %v239_v43 }
  0x1f   :  { %v139_v25 = vmul.f32 31.0, %v6850_v24  ;;  %vm143_vm2 = vweird.f32 %v6850_v24  ;;  %240 = vmatpush.msra.mxu0 %v239_v43  ;;  %v281_v52 = vsub.f32 %v279_v42, %v280_v48  ;;  %v287_v57 = vsub.f32 %v285_v49, %v286_v53 }
  0x20   :  { %114 = vadd.xlane.f32.xlu0 %v113_v3  ;;  %v121_v9 = vsub.f32 1.0, %v120_v6  ;;  %v276_v41 = vand.u32 4294901760, %v275_v37  ;;  %6820 = vmatpush.msra.mxu2 %v241_v50  ;;  %v293_v61 = vsub.f32 %v291_v54, %v292_v58 }
  0x21   :  { %v140_v26 = vsub.f32 1.0, %v139_v25  ;;  %242 = vmatpush.msra.mxu0 %v241_v50  ;;  %v282_v56 = vand.u32 4294901760, %v281_v52  ;;  %v288_v60 = vand.u32 4294901760, %v287_v57 }
  0x22   :  { %v122_v10 = vmul.f32 %v6848_v5, %v121_v9  ;;  %6821 = vmatpush.msra.mxu3 %v276_v41  ;;  %277 = vmatpush.msra.mxu1 %v276_v41  ;;  %v294_v1 = vand.u32 4294901760, %v293_v61 }
  0x23   :  { %v141_v27 = vmul.f32 %v6850_v24, %v140_v26  ;;  %319 = vmatpush.msrb.mxu2 %v273_v34  ;;  %388 = vmatpush.msrb.mxu0 %v274_v35 }
  0x24   :  { %v123_v11 = vadd.f32 %v6848_v5, %v122_v10  ;;  %6822 = vmatpush.msra.mxu3 %v282_v56  ;;  %283 = vmatpush.msra.mxu1 %v282_v56 }
  0x25   :  { %v142_v28 = vadd.f32 %v6850_v24, %v141_v27  ;;  %322 = vmatpush.msrb.mxu2 %v279_v42  ;;  %392 = vmatpush.msrb.mxu0 %v280_v48 }
  0x26   :  { %v7201_v12 = vsel %vm124_vm1, %v6848_v5, %v123_v11  ;;  %6823 = vmatpush.msra.mxu3 %v288_v60  ;;  %289 = vmatpush.msra.mxu1 %v288_v60  ;;  %vm648_vm1 = vcmask 130048  }
  0x27   :  { %v7215_v29 = vsel %vm143_vm2, %v6850_v24, %v142_v28  ;;  %325 = vmatpush.msrb.mxu2 %v285_v49  ;;  %396 = vmatpush.msrb.mxu0 %v286_v53 }
  0x28   :  { %6824 = vmatpush.msra.mxu3 %v294_v1  ;;  %295 = vmatpush.msra.mxu1 %v294_v1 }
  0x29   :  { %328 = vmatpush.msrb.mxu2 %v291_v54  ;;  %400 = vmatpush.msrb.mxu0 %v292_v58 }
  0x2a   :  { %353 = vmatpush.msrb.mxu3 %v7220_v31  ;;  %423 = vmatpush.msrb.mxu1 %v7220_v31 }
  0x2c   :  { %355 = vmatpush.msrb.mxu3 %v237_v38  ;;  %425 = vmatpush.msrb.mxu1 %v237_v38 }
  0x2e   :  { %357 = vmatpush.msrb.mxu3 %v239_v43  ;;  %427 = vmatpush.msrb.mxu1 %v239_v43 }
  0x30   :  { %359 = vmatpush.msrb.mxu3 %v241_v50  ;;  %429 = vmatpush.msrb.mxu1 %v241_v50 }
  0x74   :  { %v7265_v36 = vpop.permute.xlu2 %207 }
  0x75   :  { %8248 = vst [vmem:[#allocation17_spill] sm:$0xff] %v7265_v36 }
  0x8b   :  { %v118_v13 = vpop.xlane.xlu0 %117 }
  0x8c   :  { %v127_v14 = vmul.f32 %v7201_v12, %v118_v13 }
  0x8e   :  { %v7204_v15 = vsub.f32 %v104_v0, %v127_v14 }
  0x90   :  { %v131_v16 = vmul.f32 %v7204_v15, %v7204_v15 }
  0x92   :  { %v135_v17 = vsel %vm112_vm0, %v131_v16, 0.0 }
  0x93   :  { %136 = vadd.xlane.f32.xlu1 %v135_v17  ;;  %v115_v18 = vpop.xlane.xlu0 %114 }
  0x94   :  { %v126_v19 = vmul.f32 %v7201_v12, %v115_v18 }
  0x96   :  { %v7210_v20 = vsub.f32 %v103_v2, %v126_v19 }
  0x98   :  { %v130_v21 = vmul.f32 %v7210_v20, %v7210_v20 }
  0x9a   :  { %v132_v22 = vsel %vm112_vm0, %v130_v21, 0.0 }
  0x9b   :  { %133 = vadd.xlane.f32.xlu1 %v132_v22 }
 0x106   :  { %v137_v32 = vpop.xlane.xlu1 %136 }
 0x107   :  { %v7223_v33 = vmul.f32 %v7215_v29, %v137_v32 }
 0x109   :  { %6851 = vrsqrt.f32 %v7223_v33  ;;  %vm166_vm3 = vcmp.eq.f32.partialorder %v7223_v33, inf  ;;  %v169_v4 = vand.u32 2147483648, %v7223_v33  ;;  %vm168_vm4 = vcmp.eq.f32.partialorder %v7223_v33, 0.0 }
 0x10e   :  { %v134_v40 = vpop.xlane.xlu1 %133 }
 0x10f   :  { %v6852_v44 = vpop.eup %6851  ;;  %v7239_v45 = vmul.f32 %v7215_v29, %v134_v40 }
 0x110   :  { %v160_v47 = vmul.f32 %v6852_v44, %v7223_v33 }
 0x111   :  { %6853 = vrsqrt.f32 %v7239_v45  ;;  %vm154_vm5 = vcmp.eq.f32.partialorder %v7239_v45, inf  ;;  %v157_v16 = vand.u32 2147483648, %v7239_v45  ;;  %vm156_vm6 = vcmp.eq.f32.partialorder %v7239_v45, 0.0 }
 0x112   :  { %v161_v51 = vmul.f32 %v6852_v44, %v160_v47 }
 0x114   :  { %v162_v55 = vmul.f32 0.5, %v161_v51 }
 0x116   :  { %v163_v59 = vsub.f32 1.5, %v162_v55 }
 0x117   :  { %v6854_v62 = vpop.eup %6853 }
 0x118   :  { %v164_v63 = vmul.f32 %v6852_v44, %v163_v59  ;;  %v148_v0 = vmul.f32 %v6854_v62, %v7239_v45 }
 0x11a   :  { %v165_v2 = vmul.f32 %v164_v63, %v7223_v33  ;;  %v149_v3 = vmul.f32 %v6854_v62, %v148_v0  ;;  %v7275_v63 = vperm.slane %v7194_v7, 0 }
 0x11c   :  { %v167_v5 = vsel %vm166_vm3, %v7223_v33, %v165_v2  ;;  %v150_v6 = vmul.f32 0.5, %v149_v3 }
 0x11d   :  { %v170_v9 = vsel %vm168_vm4, %v169_v4, %v167_v5 }
 0x11e   :  { %v151_v10 = vsub.f32 1.5, %v150_v6  ;;  %v172_v11 = vadd.f32 1e-06, %v170_v9 }
 0x120   :  { %v152_v13 = vmul.f32 %v6854_v62, %v151_v10  ;;  %6855 = vrcp.f32 %v172_v11  ;;  %v198_v24 = vand.u32 2147483648, %v172_v11  ;;  %v196_v26 = vand.u32 2147483647, %v172_v11 }
 0x121   :  { %vm192_vm8 = vweird.f32 %v172_v11 }
 0x122   :  { %v153_v14 = vmul.f32 %v152_v13, %v7239_v45  ;;  %v199_v30 = vor.u32 1.1754944e-38, %v198_v24  ;;  %vm197_vm10 = vcmp.eq.f32.partialorder %v196_v26, 8.507059e+37 }
 0x124   :  { %v155_v17 = vsel %vm154_vm5, %v7239_v45, %v153_v14 }
 0x125   :  { %v158_v18 = vsel %vm156_vm6, %v157_v16, %v155_v17 }
 0x126   :  { %v6856_v19 = vpop.eup %6855  ;;  %v171_v21 = vadd.f32 1e-06, %v158_v18 }
 0x127   :  { %v188_v22 = vmul.f32 %v6856_v19, %v172_v11  ;;  %vm193_vm7 = vweird.f32 %v6856_v19 }
 0x128   :  { %6857 = vrcp.f32 %v171_v21  ;;  %vm194_vm9 = vmor %vm192_vm8, %vm193_vm7  ;;  %v184_v37 = vand.u32 2147483648, %v171_v21  ;;  %v182_v40 = vand.u32 2147483647, %v171_v21  ;;  %vm178_vm12 = vweird.f32 %v171_v21 }
 0x129   :  { %v189_v23 = vsub.f32 1.0, %v188_v22 }
 0x12a   :  { %v185_v44 = vor.u32 1.1754944e-38, %v184_v37  ;;  %vm183_vm14 = vcmp.eq.f32.partialorder %v182_v40, 8.507059e+37 }
 0x12b   :  { %v190_v25 = vmul.f32 %v6856_v19, %v189_v23 }
 0x12d   :  { %v191_v27 = vadd.f32 %v6856_v19, %v190_v25 }
 0x12e   :  { %v6858_v28 = vpop.eup %6857 }
 0x12f   :  { %v174_v31 = vmul.f32 %v6858_v28, %v171_v21  ;;  %v195_v32 = vsel %vm194_vm9, %v6856_v19, %v191_v27  ;;  %vm179_vm11 = vweird.f32 %v6858_v28 }
 0x130   :  { %v200_v33 = vsel %vm197_vm10, %v199_v30, %v195_v32  ;;  %vm180_vm13 = vmor %vm178_vm12, %vm179_vm11 }
 0x131   :  { %v175_v34 = vsub.f32 1.0, %v174_v31  ;;  %v202_v35 = vmul.f32 %v200_v33, %v7204_v15 }
 0x133   :  { %v176_v38 = vmul.f32 %v6858_v28, %v175_v34  ;;  %v205_v41 = vmul.f32 %v7197_v8, %v202_v35 }
 0x135   :  { %v177_v42 = vadd.f32 %v6858_v28, %v176_v38  ;;  %v211_v43 = vadd.f32 %v7265_v36, %v205_v41 }
 0x137   :  { %v181_v45 = vsel %vm180_vm13, %v6858_v28, %v177_v42  ;;  %v221_v47 = vsel %vm112_vm0, %v211_v43, 0 }
 0x138   :  { %v186_v48 = vsel %vm183_vm14, %v185_v44, %v181_v45  ;;  %v251_v15 = vand.u32 4294901760, %v221_v47 }
 0x139   :  { %v201_v49 = vmul.f32 %v186_v48, %v7210_v20 }
 0x13a   :  { %301 = vmatmul.f32.vlgmr.msra.gmra.mxu3 %v251_v15  ;;  %v252_v50 = vsub.f32 %v221_v47, %v251_v15 }
 0x13b   :  { %v204_v51 = vmul.f32 %v7197_v8, %v201_v49 }
 0x13c   :  { %v253_v52 = vand.u32 4294901760, %v252_v50 }
 0x13d   :  { %v210_v53 = vadd.f32 %v7265_v36, %v204_v51 }
 0x13e   :  { %v254_v54 = vsub.f32 %v252_v50, %v253_v52 }
 0x13f   :  { %v218_v55 = vsel %vm112_vm0, %v210_v53, 0 }
 0x140   :  { %v255_v56 = vand.u32 4294901760, %v254_v54  ;;  %v243_v57 = vand.u32 4294901760, %v218_v55 }
 0x142   :  { %256 = vmatmul.f32.vlgmr.msra.gmra.mxu2 %v255_v56  ;;  %297 = vmatmul.f32.vlgmr.msra.gmra.mxu1 %v243_v57  ;;  %v244_v58 = vsub.f32 %v218_v55, %v243_v57 }
 0x144   :  { %v245_v59 = vand.u32 4294901760, %v244_v58 }
 0x146   :  { %363 = vmatmul.f32.vlgmr.msrb.gmra.mxu3 %v245_v59  ;;  %v246_v60 = vsub.f32 %v244_v58, %v245_v59 }
 0x148   :  { %v247_v61 = vand.u32 4294901760, %v246_v60 }
 0x14a   :  { %248 = vmatmul.f32.vlgmr.msra.gmra.mxu0 %v247_v61  ;;  %331 = vmatmul.f32.vlgmr.msrb.gmra.mxu2 %v244_v58 }
 0x14b   :  { %431 = vmatmul.f32.vlgmr.msrb.gmra.mxu1 %v243_v57 }
 0x14e   :  { %369 = vmatmul.f32.gmra.mxu3 %v253_v52 }
 0x152   :  { %336 = vmatmul.f32.gmra.mxu2 %v252_v50  ;;  %402 = vmatmul.f32.vlgmr.msrb.gmra.mxu0 %v243_v57 }
 0x153   :  { %435 = vmatmul.f32.gmra.mxu1 %v251_v15 }
 0x15a   :  { %406 = vmatmul.f32.gmra.mxu0 %v251_v15 }
 0x1bd   :  { %v302_v20 = vpop.f32.mrf.mxu3 }
 0x1bf   :  { %v298_v0 = vpop.f32.mrf.mxu1 }
 0x1c5   :  { %v257_v62 = vpop.f32.mrf.mxu2 }
 0x1c6   :  { %v258_v10 = vadd.f32 %v257_v62, %v7275_v63 }
 0x1c7   :  { %v249_v1 = vpop.f32.mrf.mxu0 }
 0x1c8   :  { %v250_v2 = vadd.f32 %v249_v1, %v7275_v63  ;;  %v432_v13 = vpop.f32.mrf.mxu1  ;;  %v303_v17 = vadd.f32 %v302_v20, %v258_v10 }
 0x1c9   :  { %v364_v4 = vpop.f32.mrf.mxu3 }
 0x1ca   :  { %v299_v3 = vadd.f32 %v298_v0, %v250_v2 }
 0x1cd   :  { %v332_v5 = vpop.f32.mrf.mxu2 }
 0x1ce   :  { %v333_v6 = vadd.f32 %v332_v5, %v299_v3 }
 0x1cf   :  { %v403_v9 = vpop.f32.mrf.mxu0 }
 0x1d0   :  { %v365_v11 = vadd.f32 %v364_v4, %v333_v6  ;;  %v436_v24 = vpop.f32.mrf.mxu1 }
 0x1d1   :  { %v370_v19 = vpop.f32.mrf.mxu3 }
 0x1d2   :  { %v404_v14 = vadd.f32 %v403_v9, %v365_v11 }
 0x1d4   :  { %v7279_v16 = vadd.f32 %v432_v13, %v404_v14 }
 0x1d5   :  { %v337_v18 = vpop.f32.mrf.mxu2 }
 0x1d6   :  { %v338_v7 = vadd.f32 %v337_v18, %v303_v17  ;;  %441 = vrot.lane.b32.xlu0 %v7279_v16, %s7111_s6  ;;  %v446_v30 = vsel %vm445_vm15, %v7279_v16, 0  ;;  %v7313_v18 = vld [vmem:[#allocation7] sm:$0xff] }
 0x1d7   :  { %v407_v22 = vpop.f32.mrf.mxu0  ;;  %v472_v32 = vand.u32 4294901760, %v446_v30 }
 0x1d8   :  { %v371_v21 = vadd.f32 %v370_v19, %v338_v7 }
 0x1d9   :  { %v473_v35 = vsub.f32 %v446_v30, %v472_v32  ;;  %v7317_v30 = vld [vmem:[#allocation7 + $0x8] sm:$0xff] }
 0x1da   :  { %v408_v23 = vadd.f32 %v407_v22, %v371_v21 }
 0x1db   :  { %v474_v40 = vand.u32 4294901760, %v473_v35 }
 0x1dc   :  { %v7283_v25 = vadd.f32 %v436_v24, %v408_v23 }
 0x1dd   :  { %v475_v44 = vsub.f32 %v473_v35, %v474_v40 }
 0x1de   :  { %443 = vrot.lane.b32.xlu2 %v7283_v25, %s7111_s6  ;;  %699 = vrot.lane.b32.xlu0 %v7283_v25, %s7113_s11  ;;  %v448_v38 = vsel %vm445_vm15, %v7283_v25, 0 }
 0x1df   :  { %v480_v41 = vand.u32 4294901760, %v448_v38  ;;  %v476_v15 = vand.u32 4294901760, %v475_v44 }
 0x1e1   :  { %v481_v45 = vsub.f32 %v448_v38, %v480_v41 }
 0x1e3   :  { %v482_v49 = vand.u32 4294901760, %v481_v45 }
 0x1e5   :  { %v483_v54 = vsub.f32 %v481_v45, %v482_v49 }
 0x1e6   :  { %905 = vrot.lane.b32.xlu0 %v7283_v25, %s7114_s12 }
 0x1e7   :  { %v484_v58 = vand.u32 4294901760, %v483_v54 }
 0x1ee   :  { %903 = vrot.lane.b32.xlu0 %v7279_v16, %s7114_s12 }
 0x1f6   :  { %901 = vrot.lane.b32.xlu0 %v7283_v25, %s7115_s13 }
 0x238   :  { %v444_v26 = vpop.permute.xlu2 %443 }
 0x239   :  { %v452_v27 = vsel %vm445_vm15, %v444_v26, 0 }
 0x23a   :  { %v468_v28 = vand.u32 4294901760, %v452_v27 }
 0x23c   :  { %v504_v31 = vsub.f32 %v452_v27, %v468_v28  ;;  %469 = vmatpush.xpose.msra.mxu2 %v468_v28  ;;  %570 = vmatpush.xpose.msra.mxu1 %v468_v28 }
 0x23e   :  { %v505_v33 = vand.u32 4294901760, %v504_v31  ;;  %540 = vmatpush.xpose.msra.mxu0 %v504_v31 }
 0x240   :  { %v506_v34 = vsub.f32 %v504_v31, %v505_v33 }
 0x242   :  { %v507_v37 = vand.u32 4294901760, %v506_v34 }
 0x244   :  { %508 = vmatpush.xpose.msra.mxu3 %v507_v37 }
 0x248   :  { %v442_v42 = vpop.permute.xlu0 %441 }
 0x249   :  { %v450_v43 = vsel %vm445_vm15, %v442_v42, 0 }
 0x24a   :  { %v470_v47 = vand.u32 4294901760, %v450_v43 }
 0x24c   :  { %v510_v48 = vsub.f32 %v450_v43, %v470_v47  ;;  %471 = vmatpush.xpose.msra.mxu2 %v470_v47  ;;  %572 = vmatpush.xpose.msra.mxu1 %v470_v47 }
 0x24e   :  { %543 = vmatpush.xpose.msra.mxu0 %v510_v48  ;;  %v511_v50 = vand.u32 4294901760, %v510_v48 }
 0x24f   :  { %477 = vmatmul.f32.vlgmr.msra.gmra.mxu2 %v476_v15  ;;  %576 = vmatmul.f32.vlgmr.msra.gmra.mxu1 %v474_v40 }
 0x250   :  { %603 = vmatpush.xpose.msrb.mxu2 %v505_v33  ;;  %v700_v51 = vpop.permute.xlu0 %699  ;;  %v512_v52 = vsub.f32 %v510_v48, %v511_v50 }
 0x251   :  { %v7301_v53 = vand.u32 4294901760, %v700_v51  ;;  %546 = vmatmul.f32.vlgmr.msra.gmra.mxu0 %v473_v35 }
 0x252   :  { %v513_v55 = vand.u32 4294901760, %v512_v52 }
 0x253   :  { %v7304_v56 = vsub.f32 %v700_v51, %v7301_v53  ;;  %724 = vmatpush.msrb.mxu0 %v7301_v53 }
 0x254   :  { %607 = vmatpush.xpose.msrb.mxu2 %v511_v50  ;;  %514 = vmatpush.xpose.msra.mxu3 %v513_v55 }
 0x255   :  { %v760_v57 = vand.u32 4294901760, %v7304_v56 }
 0x257   :  { %v761_v59 = vsub.f32 %v7304_v56, %v760_v57  ;;  %485 = vmatmul.f32.gmra.mxu2 %v484_v58  ;;  %516 = vmatmul.f32.vlgmr.msra.gmra.mxu3 %v472_v32 }
 0x258   :  { %632 = vmatpush.xpose.msrb.mxu3 %v468_v28  ;;  %795 = vmatpush.msra.mxu2 %v7304_v56  ;;  %v906_v48 = vpop.permute.xlu0 %905 }
 0x259   :  { %582 = vmatmul.f32.gmra.mxu1 %v482_v49  ;;  %v762_v60 = vand.u32 4294901760, %v761_v59  ;;  %551 = vmatmul.f32.gmra.mxu0 %v481_v45 }
 0x25b   :  { %763 = vmatpush.msrb.mxu1 %v762_v60 }
 0x25c   :  { %634 = vmatpush.xpose.msrb.mxu3 %v470_v47 }
 0x25f   :  { %520 = vmatmul.f32.gmra.mxu3 %v480_v41  ;;  %609 = vmatmul.f32.vlgmr.msrb.gmra.mxu2 %v472_v32 }
 0x260   :  { %825 = vmatpush.msra.mxu3 %v7301_v53 }
 0x267   :  { %613 = vmatmul.f32.gmra.mxu2 %v480_v41  ;;  %636 = vmatmul.f32.vlgmr.msrb.gmra.mxu3 %v472_v32 }
 0x26f   :  { %640 = vmatmul.f32.gmra.mxu3 %v480_v41 }
 0x2cc   :  { %v577_v4 = vpop.f32.mrf.mxu1 }
 0x2ce   :  { %v547_v1 = vpop.f32.mrf.mxu0 }
 0x2d2   :  { %v478_v61 = vpop.f32.mrf.mxu2 }
 0x2d6   :  { %v552_v11 = vpop.f32.mrf.mxu0  ;;  %v583_v19 = vpop.f32.mrf.mxu1 }
 0x2da   :  { %v486_v20 = vpop.f32.mrf.mxu2  ;;  %v517_v62 = vpop.f32.mrf.mxu3 }
 0x2db   :  { %v518_v0 = vadd.f32 %v517_v62, %v478_v61  ;;  %v913_v61 = vsel %vm445_vm15, %v906_v48, 0 }
 0x2dd   :  { %v548_v3 = vadd.f32 %v547_v1, %v518_v0 }
 0x2df   :  { %v578_v9 = vadd.f32 %v577_v4, %v548_v3  ;;  %v7328_v4 = vand.u32 4294901760, %v913_v61 }
 0x2e2   :  { %v521_v2 = vpop.f32.mrf.mxu3  ;;  %v610_v5 = vpop.f32.mrf.mxu2 }
 0x2e3   :  { %v522_v6 = vadd.f32 %v521_v2, %v486_v20  ;;  %v611_v10 = vadd.f32 %v610_v5, %v578_v9  ;;  %v904_v20 = vpop.permute.xlu0 %903 }
 0x2e4   :  { %v911_v5 = vsel %vm445_vm15, %v904_v20, 0 }
 0x2e5   :  { %v553_v14 = vadd.f32 %v552_v11, %v522_v6 }
 0x2e7   :  { %v584_v22 = vadd.f32 %v583_v19, %v553_v14 }
 0x2ea   :  { %v637_v13 = vpop.f32.mrf.mxu3  ;;  %v614_v21 = vpop.f32.mrf.mxu2 }
 0x2eb   :  { %v638_v17 = vadd.f32 %v637_v13, %v611_v10  ;;  %v615_v24 = vadd.f32 %v614_v21, %v584_v22 }
 0x2ed   :  { %v644_v7 = vmul.f32 0.35355338, %v638_v17  ;;  %v965_v17 = vsub.f32 %v913_v61, %v7328_v4 }
 0x2ef   :  { %v646_v23 = vadd.f32 %v644_v7, %v7313_v18  ;;  %v7335_v7 = vand.u32 4294901760, %v911_v5 }
 0x2f1   :  { %v649_v26 = vsel %vm648_vm1, %v646_v23, -inf }
 0x2f2   :  { %v641_v27 = vpop.f32.mrf.mxu3  ;;  %650 = vmax.xlane.f32.xlu1 %v649_v26 }
 0x2f3   :  { %v642_v28 = vadd.f32 %v641_v27, %v615_v24  ;;  %v966_v27 = vand.u32 4294901760, %v965_v17 }
 0x2f5   :  { %v645_v31 = vmul.f32 0.35355338, %v642_v28  ;;  %v971_v28 = vsub.f32 %v911_v5, %v7335_v7 }
 0x2f7   :  { %v647_v32 = vadd.f32 %v645_v31, %v7317_v30 }
 0x2f9   :  { %v652_v33 = vsel %vm648_vm1, %v647_v32, -inf }
 0x2fa   :  { %653 = vmax.xlane.f32.xlu2 %v652_v33 }
 0x312   :  { %899 = vrot.lane.b32.xlu2 %v7279_v16, %s7115_s13 }
 0x365   :  { %v651_v34 = vpop.xlane.xlu1 %650 }
 0x366   :  { %v655_v35 = vsub.f32 %v646_v23, %v651_v34  ;;  %v967_v34 = vsub.f32 %v965_v17, %v966_v27 }
 0x368   :  { %v657_v37 = vmul.f32 1.442695, %v655_v35  ;;  %v972_v35 = vand.u32 4294901760, %v971_v28 }
 0x36a   :  { %6859 = vpow2.f32 %v657_v37  ;;  %v973_v48 = vsub.f32 %v971_v28, %v972_v35 }
 0x36d   :  { %v654_v38 = vpop.xlane.xlu2 %653 }
 0x36e   :  { %v656_v40 = vsub.f32 %v647_v32, %v654_v38 }
 0x370   :  { %v6860_v41 = vpop.eup %6859  ;;  %v659_v42 = vmul.f32 1.442695, %v656_v40 }
 0x371   :  { %v661_v43 = vsel %vm648_vm1, %v6860_v41, 0.0 }
 0x372   :  { %6861 = vpow2.f32 %v659_v42  ;;  %662 = vadd.xlane.f32.xlu1 %v661_v43 }
 0x375   :  { %v900_v38 = vpop.permute.xlu2 %899 }
 0x378   :  { %v6862_v44 = vpop.eup %6861 }
 0x379   :  { %v664_v45 = vsel %vm648_vm1, %v6862_v44, 0.0 }
 0x37a   :  { %665 = vadd.xlane.f32.xlu1 %v664_v45  ;;  %v968_v45 = vand.u32 4294901760, %v967_v34 }
 0x393   :  { %697 = vrot.lane.b32.xlu1 %v7279_v16, %s7113_s11 }
 0x3e5   :  { %v663_v47 = vpop.xlane.xlu1 %662 }
 0x3e6   :  { %6863 = vrcp.f32 %v663_v47  ;;  %v678_v52 = vand.u32 2147483648, %v663_v47  ;;  %v676_v55 = vand.u32 2147483647, %v663_v47  ;;  %vm672_vm3 = vweird.f32 %v663_v47 }
 0x3e8   :  { %v679_v60 = vor.u32 1.1754944e-38, %v678_v52  ;;  %vm677_vm5 = vcmp.eq.f32.partialorder %v676_v55, 8.507059e+37 }
 0x3ec   :  { %v6864_v15 = vpop.eup %6863 }
 0x3ed   :  { %v668_v49 = vmul.f32 %v6864_v15, %v663_v47  ;;  %v666_v50 = vpop.xlane.xlu1 %665  ;;  %vm673_vm2 = vweird.f32 %v6864_v15 }
 0x3ee   :  { %6865 = vrcp.f32 %v666_v50  ;;  %vm674_vm4 = vmor %vm672_vm3, %vm673_vm2  ;;  %v692_v6 = vand.u32 2147483648, %v666_v50  ;;  %v690_v10 = vand.u32 2147483647, %v666_v50  ;;  %vm686_vm7 = vweird.f32 %v666_v50 }
 0x3ef   :  { %v669_v51 = vsub.f32 1.0, %v668_v49 }
 0x3f0   :  { %v693_v19 = vor.u32 1.1754944e-38, %v692_v6  ;;  %vm691_vm9 = vcmp.eq.f32.partialorder %v690_v10, 8.507059e+37 }
 0x3f1   :  { %v670_v54 = vmul.f32 %v6864_v15, %v669_v51  ;;  %v974_v51 = vand.u32 4294901760, %v973_v48 }
 0x3f3   :  { %v671_v58 = vadd.f32 %v6864_v15, %v670_v54  ;;  %v902_v54 = vpop.permute.xlu0 %901 }
 0x3f4   :  { %v6866_v59 = vpop.eup %6865 }
 0x3f5   :  { %v675_v62 = vsel %vm674_vm4, %v6864_v15, %v671_v58  ;;  %v682_v0 = vmul.f32 %v6866_v59, %v666_v50  ;;  %vm687_vm6 = vweird.f32 %v6866_v59 }
 0x3f6   :  { %v680_v1 = vsel %vm677_vm5, %v679_v60, %v675_v62  ;;  %vm688_vm8 = vmor %vm686_vm7, %vm687_vm6 }
 0x3f7   :  { %v695_v2 = vmul.f32 %v6860_v41, %v680_v1  ;;  %v683_v3 = vsub.f32 1.0, %v682_v0 }
 0x3f9   :  { %v684_v9 = vmul.f32 %v6866_v59, %v683_v3  ;;  %v704_v11 = vsel %vm648_vm1, %v695_v2, 0 }
 0x3fa   :  { %v7332_v13 = vand.u32 4294901760, %v704_v11 }
 0x3fb   :  { %v685_v14 = vadd.f32 %v6866_v59, %v684_v9 }
 0x3fc   :  { %v728_v21 = vsub.f32 %v704_v11, %v7332_v13 }
 0x3fd   :  { %v689_v22 = vsel %vm688_vm8, %v6866_v59, %v685_v14 }
 0x3fe   :  { %v694_v23 = vsel %vm691_vm9, %v693_v19, %v689_v22  ;;  %v729_v24 = vand.u32 4294901760, %v728_v21 }
 0x3ff   :  { %v696_v26 = vmul.f32 %v6862_v44, %v694_v23  ;;  %v907_v44 = vsel %vm445_vm15, %v900_v38, 0 }
 0x400   :  { %v730_v33 = vsub.f32 %v728_v21, %v729_v24  ;;  %v933_v49 = vand.u32 4294901760, %v907_v44 }
 0x401   :  { %v707_v31 = vsel %vm648_vm1, %v696_v26, 0 }
 0x402   :  { %v7340_v32 = vand.u32 4294901760, %v707_v31  ;;  %v731_v42 = vand.u32 4294901760, %v730_v33  ;;  %v934_v58 = vsub.f32 %v907_v44, %v933_v49 }
 0x404   :  { %v736_v37 = vsub.f32 %v707_v31, %v7340_v32  ;;  %v935_v60 = vand.u32 4294901760, %v934_v58 }
 0x405   :  { %v698_v40 = vpop.permute.xlu1 %697 }
 0x406   :  { %v725_v41 = vand.u32 4294901760, %v698_v40  ;;  %v737_v43 = vand.u32 4294901760, %v736_v37  ;;  %v936_v20 = vsub.f32 %v934_v58, %v935_v60 }
 0x408   :  { %v765_v47 = vsub.f32 %v698_v40, %v725_v41  ;;  %726 = vmatpush.msrb.mxu0 %v725_v41  ;;  %827 = vmatpush.msra.mxu3 %v725_v41  ;;  %v738_v50 = vsub.f32 %v736_v37, %v737_v43  ;;  %v937_v62 = vand.u32 4294901760, %v936_v20 }
 0x409   :  { %732 = vmatmul.f32.vlgmr.msrb.gmra.mxu0 %v731_v42  ;;  %831 = vmatmul.f32.vlgmr.msra.gmra.mxu3 %v729_v24 }
 0x40a   :  { %858 = vmatpush.msra.mxu0 %v760_v57  ;;  %969 = vmatpush.xpose.msrb.mxu3 %v968_v45  ;;  %v766_v15 = vand.u32 4294901760, %v765_v47  ;;  %v739_v56 = vand.u32 4294901760, %v738_v50  ;;  %v909_v57 = vsel %vm445_vm15, %v902_v54, 0 }
 0x40b   :  { %798 = vmatpush.msra.mxu2 %v765_v47  ;;  %v941_v59 = vand.u32 4294901760, %v909_v57 }
 0x40c   :  { %801 = vmatmul.f32.vlgmr.msra.gmra.mxu2 %v728_v21  ;;  %862 = vmatpush.msra.mxu0 %v766_v15  ;;  %v767_v52 = vsub.f32 %v765_v47, %v766_v15 }
 0x40d   :  { %930 = vmatpush.xpose.msrb.mxu2 %v7328_v4  ;;  %v942_v61 = vsub.f32 %v909_v57, %v941_v59 }
 0x40e   :  { %1001 = vmatpush.xpose.msrb.mxu0 %v965_v17  ;;  %975 = vmatpush.xpose.msrb.mxu3 %v974_v51  ;;  %v768_v55 = vand.u32 4294901760, %v767_v52 }
 0x40f   :  { %v943_v0 = vand.u32 4294901760, %v942_v61 }
 0x410   :  { %769 = vmatpush.msrb.mxu1 %v768_v55 }
 0x411   :  { %932 = vmatpush.xpose.msrb.mxu2 %v7335_v7  ;;  %740 = vmatmul.f32.gmra.mxu0 %v739_v56 }
 0x412   :  { %1093 = vmatpush.xpose.msra.mxu3 %v7328_v4  ;;  %771 = vmatmul.f32.vlgmr.msrb.gmra.mxu1 %v7332_v13 }
 0x413   :  { %837 = vmatmul.f32.gmra.mxu3 %v737_v43  ;;  %887 = vmatpush.msra.mxu1 %v7301_v53  ;;  %v944_v53 = vsub.f32 %v942_v61, %v943_v0 }
 0x414   :  { %1004 = vmatpush.xpose.msrb.mxu0 %v971_v28  ;;  %806 = vmatmul.f32.gmra.mxu2 %v736_v37 }
 0x415   :  { %1064 = vmatpush.xpose.msra.mxu2 %v966_v27  ;;  %889 = vmatpush.msra.mxu1 %v725_v41  ;;  %v945_v1 = vand.u32 4294901760, %v944_v53 }
 0x416   :  { %1095 = vmatpush.xpose.msra.mxu3 %v7335_v7 }
 0x417   :  { %1031 = vmatpush.xpose.msrb.mxu1 %v7328_v4 }
 0x419   :  { %1068 = vmatpush.xpose.msra.mxu2 %v972_v35  ;;  %864 = vmatmul.f32.vlgmr.msra.gmra.mxu0 %v7332_v13 }
 0x41a   :  { %775 = vmatmul.f32.gmra.mxu1 %v7340_v32 }
 0x41b   :  { %1033 = vmatpush.xpose.msrb.mxu1 %v7335_v7  ;;  %977 = vmatmul.f32.vlgmr.msrb.gmra.mxu3 %v933_v49 }
 0x41c   :  { %938 = vmatmul.f32.vlgmr.msrb.gmra.mxu2 %v937_v62 }
 0x421   :  { %868 = vmatmul.f32.gmra.mxu0 %v7340_v32 }
 0x422   :  { %891 = vmatmul.f32.vlgmr.msra.gmra.mxu1 %v7332_v13 }
 0x423   :  { %981 = vmatmul.f32.gmra.mxu3 %v941_v59 }
 0x424   :  { %946 = vmatmul.f32.gmra.mxu2 %v945_v1 }
 0x429   :  { %1007 = vmatmul.f32.vlgmr.msrb.gmra.mxu0 %v934_v58 }
 0x42a   :  { %895 = vmatmul.f32.gmra.mxu1 %v7340_v32 }
 0x42b   :  { %1097 = vmatmul.f32.vlgmr.msra.gmra.mxu3 %v933_v49 }
 0x42c   :  { %1070 = vmatmul.f32.vlgmr.msra.gmra.mxu2 %v933_v49 }
 0x431   :  { %1012 = vmatmul.f32.gmra.mxu0 %v942_v61 }
 0x432   :  { %1037 = vmatmul.f32.vlgmr.msrb.gmra.mxu1 %v935_v60 }
 0x433   :  { %1101 = vmatmul.f32.gmra.mxu3 %v941_v59 }
 0x434   :  { %1074 = vmatmul.f32.gmra.mxu2 %v941_v59 }
 0x43a   :  { %1043 = vmatmul.f32.gmra.mxu1 %v943_v0 }
 0x486   :  { %v7360_v2 = vpop.f32.mrf.mxu0 }
 0x48c   :  { %v7362_v3 = vpop.f32.mrf.mxu3 }
 0x48e   :  { %v7364_v4 = vpop.f32.mrf.mxu0 }
 0x48f   :  { %v7366_v5 = vpop.f32.mrf.mxu1  ;;  %v7368_v6 = vpop.f32.mrf.mxu2 }
 0x496   :  { %v7370_v9 = vpop.f32.mrf.mxu3  ;;  %v7372_v10 = vpop.f32.mrf.mxu0 }
 0x497   :  { %v7374_v11 = vpop.f32.mrf.mxu1  ;;  %v7376_v13 = vpop.f32.mrf.mxu2 }
 0x49e   :  { %v978_v14 = vpop.f32.mrf.mxu3  ;;  %v7378_v17 = vpop.f32.mrf.mxu0 }
 0x49f   :  { %v7380_v7 = vpop.f32.mrf.mxu1  ;;  %v939_v19 = vpop.f32.mrf.mxu2 }
 0x4a0   :  { %v979_v26 = vadd.f32 %v978_v14, %v939_v19 }
 0x4a6   :  { %v982_v21 = vpop.f32.mrf.mxu3  ;;  %v1008_v24 = vpop.f32.mrf.mxu0 }
 0x4a7   :  { %v7382_v22 = vpop.f32.mrf.mxu1  ;;  %v947_v23 = vpop.f32.mrf.mxu2  ;;  %v1009_v27 = vadd.f32 %v1008_v24, %v979_v26 }
 0x4a8   :  { %v983_v37 = vadd.f32 %v982_v21, %v947_v23 }
 0x4ae   :  { %v1098_v33 = vpop.f32.mrf.mxu3  ;;  %v1013_v35 = vpop.f32.mrf.mxu0 }
 0x4af   :  { %v1038_v28 = vpop.f32.mrf.mxu1  ;;  %v1071_v31 = vpop.f32.mrf.mxu2  ;;  %v1014_v40 = vadd.f32 %v1013_v35, %v983_v37 }
 0x4b0   :  { %v1039_v32 = vadd.f32 %v1038_v28, %v1009_v27 }
 0x4b2   :  { %v1072_v34 = vadd.f32 %v1071_v31, %v1039_v32 }
 0x4b4   :  { %v1099_v38 = vadd.f32 %v1098_v33, %v1072_v34 }
 0x4b6   :  { %v1105_v41 = vmul.f32 0.35355338, %v1099_v38  ;;  %v1102_v15 = vpop.f32.mrf.mxu3 }
 0x4b7   :  { %v1044_v42 = vpop.f32.mrf.mxu1  ;;  %v1075_v44 = vpop.f32.mrf.mxu2 }
 0x4b8   :  { %v1045_v43 = vadd.f32 %v1044_v42, %v1014_v40  ;;  %v1107_v45 = vadd.f32 %v1105_v41, %v7313_v18 }
 0x4ba   :  { %v1076_v47 = vadd.f32 %v1075_v44, %v1045_v43  ;;  %v1109_v48 = vsel %vm648_vm1, %v1107_v45, -inf }
 0x4bb   :  { %1110 = vmax.xlane.f32.xlu1 %v1109_v48 }
 0x4bc   :  { %v1103_v49 = vadd.f32 %v1102_v15, %v1076_v47 }
 0x4be   :  { %v1106_v50 = vmul.f32 0.35355338, %v1103_v49 }
 0x4c0   :  { %v1108_v51 = vadd.f32 %v1106_v50, %v7317_v30 }
 0x4c2   :  { %v1112_v52 = vsel %vm648_vm1, %v1108_v51, -inf }
 0x4c3   :  { %1113 = vmax.xlane.f32.xlu0 %v1112_v52 }
 0x4d7   :  { %1159 = vrot.lane.b32.xlu0 %v7283_v25, %s7116_s14 }
 0x4df   :  { %1547 = vrot.lane.b32.xlu0 %v7244_v46, %s7117_s1 }
 0x4e7   :  { %1739 = vrot.lane.b32.xlu0 %v7283_v25, %s7118_s3 }
 0x4ef   :  { %1733 = vrot.lane.b32.xlu0 %v7279_v16, %s7119_s15 }
 0x52e   :  { %v1111_v54 = vpop.xlane.xlu1 %1110 }
 0x52f   :  { %v1115_v55 = vsub.f32 %v1107_v45, %v1111_v54 }
 0x531   :  { %v1117_v58 = vmul.f32 1.442695, %v1115_v55 }
 0x533   :  { %6867 = vpow2.f32 %v1117_v58 }
 0x536   :  { %v1114_v56 = vpop.xlane.xlu0 %1113 }
 0x537   :  { %v1116_v57 = vsub.f32 %v1108_v51, %v1114_v56 }
 0x539   :  { %v6868_v59 = vpop.eup %6867  ;;  %v1119_v60 = vmul.f32 1.442695, %v1116_v57 }
 0x53a   :  { %v1121_v61 = vsel %vm648_vm1, %v6868_v59, 0.0 }
 0x53b   :  { %6869 = vpow2.f32 %v1119_v60  ;;  %1122 = vadd.xlane.f32.xlu2 %v1121_v61 }
 0x541   :  { %v6870_v46 = vpop.eup %6869 }
 0x542   :  { %v1124_v20 = vsel %vm648_vm1, %v6870_v46, 0.0 }
 0x543   :  { %1125 = vadd.xlane.f32.xlu1 %v1124_v20 }
 0x549   :  { %v1160_v62 = vpop.permute.xlu0 %1159 }
 0x54a   :  { %v7398_v0 = vand.u32 4294901760, %v1160_v62 }
 0x54c   :  { %v7401_v53 = vsub.f32 %v1160_v62, %v7398_v0  ;;  %1184 = vmatpush.msra.mxu0 %v7398_v0  ;;  %1285 = vmatpush.msrb.mxu3 %v7398_v0 }
 0x54e   :  { %v1220_v1 = vand.u32 4294901760, %v7401_v53  ;;  %1255 = vmatpush.msrb.mxu2 %v7401_v53 }
 0x550   :  { %v1221_v14 = vsub.f32 %v7401_v53, %v1220_v1 }
 0x552   :  { %v1222_v19 = vand.u32 4294901760, %v1221_v14 }
 0x553   :  { %1360 = vrot.lane.b32.xlu2 %v7235_v39, %s7117_s1 }
 0x554   :  { %1223 = vmatpush.msra.mxu1 %v1222_v19 }
 0x55b   :  { %1735 = vrot.lane.b32.xlu2 %v7283_v25, %s7119_s15 }
 0x55c   :  { %1157 = vrot.lane.b32.xlu1 %v7279_v16, %s7116_s14  ;;  %s6802_s14 = sshll.u32 %s8242_s7, 4  ;;  %s6803_s14 = int_to_ptr.hbm [resolvable:$true] %s6802_s14 }
 0x564   :  { %1737 = vrot.lane.b32.xlu1 %v7279_v16, %s7118_s3 }
 0x5ae   :  { %v1123_v21 = vpop.xlane.xlu2 %1122 }
 0x5af   :  { %6871 = vrcp.f32 %v1123_v21  ;;  %v1138_v28 = vand.u32 2147483648, %v1123_v21  ;;  %v1136_v39 = vand.u32 2147483647, %v1123_v21  ;;  %vm1132_vm11 = vweird.f32 %v1123_v21 }
 0x5b1   :  { %v1139_v34 = vor.u32 1.1754944e-38, %v1138_v28  ;;  %vm1137_vm13 = vcmp.eq.f32.partialorder %v1136_v39, 8.507059e+37 }
 0x5b5   :  { %v6872_v23 = vpop.eup %6871 }
 0x5b6   :  { %v1128_v24 = vmul.f32 %v6872_v23, %v1123_v21  ;;  %v1126_v26 = vpop.xlane.xlu1 %1125  ;;  %vm1133_vm10 = vweird.f32 %v6872_v23  ;;  %v1361_v40 = vpop.permute.xlu2 %1360 }
 0x5b7   :  { %6873 = vrcp.f32 %v1126_v26  ;;  %vm1134_vm12 = vmor %vm1132_vm11, %vm1133_vm10  ;;  %v1384_v42 = vand.u32 4294901760, %v1361_v40  ;;  %v1152_v45 = vand.u32 2147483648, %v1126_v26  ;;  %v1150_v47 = vand.u32 2147483647, %v1126_v26 }
 0x5b8   :  { %v1129_v27 = vsub.f32 1.0, %v1128_v24  ;;  %vm1146_vm2 = vweird.f32 %v1126_v26 }
 0x5b9   :  { %v1419_v49 = vsub.f32 %v1361_v40, %v1384_v42  ;;  %v1153_v51 = vor.u32 1.1754944e-38, %v1152_v45  ;;  %vm1151_vm4 = vcmp.eq.f32.partialorder %v1150_v47, 8.507059e+37 }
 0x5ba   :  { %v1130_v31 = vmul.f32 %v6872_v23, %v1129_v27 }
 0x5bb   :  { %v1420_v58 = vand.u32 4294901760, %v1419_v49 }
 0x5bc   :  { %v1131_v32 = vadd.f32 %v6872_v23, %v1130_v31  ;;  %v1548_v31 = vpop.permute.xlu0 %1547 }
 0x5bd   :  { %v6874_v33 = vpop.eup %6873  ;;  %v1421_v61 = vsub.f32 %v1419_v49, %v1420_v58  ;;  %v7422_v39 = vand.u32 4294901760, %v1548_v31 }
 0x5be   :  { %v1135_v35 = vsel %vm1134_vm12, %v6872_v23, %v1131_v32  ;;  %v1142_v37 = vmul.f32 %v6874_v33, %v1126_v26  ;;  %vm1147_vm14 = vweird.f32 %v6874_v33 }
 0x5bf   :  { %v1140_v38 = vsel %vm1137_vm13, %v1139_v34, %v1135_v35  ;;  %vm1148_vm3 = vmor %vm1146_vm2, %vm1147_vm14  ;;  %v1422_v21 = vand.u32 4294901760, %v1421_v61  ;;  %v7425_v53 = vsub.f32 %v1548_v31, %v7422_v39 }
 0x5c0   :  { %v1155_v41 = vmul.f32 %v6868_v59, %v1140_v38  ;;  %v1143_v43 = vsub.f32 1.0, %v1142_v37 }
 0x5c2   :  { %v1144_v44 = vmul.f32 %v6874_v33, %v1143_v43  ;;  %v1164_v48 = vsel %vm648_vm1, %v1155_v41, 0 }
 0x5c3   :  { %v1187_v15 = vand.u32 4294901760, %v1164_v48 }
 0x5c4   :  { %v1145_v50 = vadd.f32 %v6874_v33, %v1144_v44 }
 0x5c5   :  { %v1188_v52 = vsub.f32 %v1164_v48, %v1187_v15 }
 0x5c6   :  { %v1149_v54 = vsel %vm1148_vm3, %v6874_v33, %v1145_v50 }
 0x5c7   :  { %v1154_v55 = vsel %vm1151_vm4, %v1153_v51, %v1149_v54  ;;  %v1189_v56 = vand.u32 4294901760, %v1188_v52 }
 0x5c8   :  { %v1156_v57 = vmul.f32 %v6870_v46, %v1154_v55 }
 0x5c9   :  { %v1190_v20 = vsub.f32 %v1188_v52, %v1189_v56 }
 0x5ca   :  { %v1167_v59 = vsel %vm648_vm1, %v1156_v57, 0 }
 0x5cb   :  { %v1195_v60 = vand.u32 4294901760, %v1167_v59  ;;  %v1191_v23 = vand.u32 4294901760, %v1190_v20 }
 0x5cd   :  { %v1196_v62 = vsub.f32 %v1167_v59, %v1195_v60 }
 0x5ce   :  { %v1158_v14 = vpop.permute.xlu1 %1157 }
 0x5cf   :  { %v1185_v19 = vand.u32 4294901760, %v1158_v14  ;;  %v1197_v24 = vand.u32 4294901760, %v1196_v62 }
 0x5d1   :  { %v1225_v26 = vsub.f32 %v1158_v14, %v1185_v19  ;;  %1186 = vmatpush.msra.mxu0 %v1185_v19  ;;  %1287 = vmatpush.msrb.mxu3 %v1185_v19  ;;  %v1198_v27 = vsub.f32 %v1196_v62, %v1197_v24 }
 0x5d2   :  { %1192 = vmatmul.f32.vlgmr.msra.gmra.mxu0 %v1191_v23  ;;  %1291 = vmatmul.f32.vlgmr.msrb.gmra.mxu3 %v1189_v56 }
 0x5d3   :  { %1318 = vmatpush.msrb.mxu0 %v1220_v1  ;;  %1258 = vmatpush.msrb.mxu2 %v1225_v26  ;;  %v1226_v46 = vand.u32 4294901760, %v1225_v26  ;;  %v1199_v33 = vand.u32 4294901760, %v1198_v27  ;;  %v1607_v1 = vand.u32 4294901760, %v7425_v53 }
 0x5d4   :  { %1261 = vmatmul.f32.vlgmr.msrb.gmra.mxu2 %v1188_v52  ;;  %1423 = vmatpush.msra.mxu3 %v1422_v21 }
 0x5d5   :  { %1322 = vmatpush.msrb.mxu0 %v1226_v46  ;;  %v1227_v28 = vsub.f32 %v1225_v26, %v1226_v46  ;;  %1385 = vmatpush.msra.mxu2 %v1384_v42  ;;  %v1608_v34 = vsub.f32 %v7425_v53, %v1607_v1 }
 0x5d6   :  { %1536 = vmatpush.msrb.mxu3 %v1384_v42 }
 0x5d7   :  { %1450 = vmatpush.msra.mxu0 %v1419_v49  ;;  %v1228_v32 = vand.u32 4294901760, %v1227_v28  ;;  %1510 = vmatpush.msrb.mxu2 %v1420_v58  ;;  %v1609_v35 = vand.u32 4294901760, %v1608_v34  ;;  %v777_v49 = vadd.f32 %v7374_v11, %v7364_v4  ;;  %v1738_v11 = vpop.permute.xlu1 %1737 }
 0x5d9   :  { %1229 = vmatpush.msra.mxu1 %v1228_v32  ;;  %v808_v54 = vadd.f32 %v7376_v13, %v777_v49 }
 0x5da   :  { %1200 = vmatmul.f32.gmra.mxu0 %v1199_v33  ;;  %1231 = vmatmul.f32.vlgmr.msra.gmra.mxu1 %v1187_v15 }
 0x5db   :  { %1297 = vmatmul.f32.gmra.mxu3 %v1197_v24  ;;  %1347 = vmatpush.msrb.mxu1 %v7398_v0  ;;  %v773_v0 = vadd.f32 %v7366_v5, %v7360_v2  ;;  %v1740_v5 = vpop.permute.xlu0 %1739  ;;  %v839_v4 = vadd.f32 %v7370_v9, %v808_v54 }
 0x5dc   :  { %1266 = vmatmul.f32.gmra.mxu2 %v1196_v62  ;;  %v1747_v59 = vsel %vm445_vm15, %v1740_v5, 0  ;;  %v1736_v5 = vpop.permute.xlu2 %1735 }
 0x5dd   :  { %1349 = vmatpush.msrb.mxu1 %v1185_v19  ;;  %v803_v43 = vadd.f32 %v7368_v6, %v773_v0  ;;  %v7445_v20 = vand.u32 4294901760, %v1747_v59  ;;  %v1745_v19 = vsel %vm445_vm15, %v1738_v11, 0 }
 0x5df   :  { %1478 = vmatpush.msra.mxu1 %v1384_v42  ;;  %v7453_v46 = vsub.f32 %v1747_v59, %v7445_v20 }
 0x5e2   :  { %1235 = vmatmul.f32.gmra.mxu1 %v1195_v60  ;;  %1324 = vmatmul.f32.vlgmr.msrb.gmra.mxu0 %v1187_v15 }
 0x5e3   :  { %1572 = vmatpush.msrb.mxu0 %v7422_v39 }
 0x5ea   :  { %1328 = vmatmul.f32.gmra.mxu0 %v1195_v60  ;;  %1351 = vmatmul.f32.vlgmr.msrb.gmra.mxu1 %v1187_v15  ;;  %v833_v15 = vadd.f32 %v7362_v3, %v803_v43 }
 0x5eb   :  { %1610 = vmatpush.msrb.mxu1 %v1609_v35  ;;  %v1800_v35 = vand.u32 4294901760, %v7453_v46 }
 0x5ec   :  { %v866_v50 = vadd.f32 %v7372_v10, %v833_v15 }
 0x5ee   :  { %v893_v2 = vadd.f32 %v7380_v7, %v866_v50  ;;  %v870_v7 = vadd.f32 %v7378_v17, %v839_v4  ;;  %v1765_v17 = vand.u32 4294901760, %v1745_v19 }
 0x5f0   :  { %v1551_v3 = vsel %vm445_vm15, %v893_v2, 0  ;;  %v897_v9 = vadd.f32 %v7382_v22, %v870_v7 }
 0x5f1   :  { %v7447_v14 = vand.u32 4294901760, %v1551_v3 }
 0x5f2   :  { %1355 = vmatmul.f32.gmra.mxu1 %v1195_v60  ;;  %v1554_v32 = vsel %vm445_vm15, %v897_v9, 0 }
 0x5f3   :  { %v1574_v28 = vsub.f32 %v1551_v3, %v7447_v14 }
 0x64f   :  { %v1193_v37 = vpop.f32.mrf.mxu0 }
 0x655   :  { %v1292_v47 = vpop.f32.mrf.mxu3 }
 0x657   :  { %v1201_v38 = vpop.f32.mrf.mxu0  ;;  %v1232_v40 = vpop.f32.mrf.mxu1 }
 0x658   :  { %v1233_v41 = vadd.f32 %v1232_v40, %v1193_v37  ;;  %v1262_v42 = vpop.f32.mrf.mxu2  ;;  %v1805_v37 = vsub.f32 %v1745_v19, %v1765_v17  ;;  %v1581_v40 = vand.u32 4294901760, %v1554_v32 }
 0x65a   :  { %v1263_v44 = vadd.f32 %v1262_v42, %v1233_v41  ;;  %v1801_v41 = vsub.f32 %v7453_v46, %v1800_v35  ;;  %v1806_v42 = vand.u32 4294901760, %v1805_v37  ;;  %v1582_v43 = vsub.f32 %v1554_v32, %v1581_v40 }
 0x65c   :  { %v1293_v52 = vadd.f32 %v1292_v47, %v1263_v44  ;;  %v1802_v47 = vand.u32 4294901760, %v1801_v41  ;;  %v1583_v15 = vand.u32 4294901760, %v1582_v43 }
 0x65e   :  { %v1298_v60 = vpop.f32.mrf.mxu3  ;;  %v1584_v50 = vsub.f32 %v1582_v43, %v1583_v15 }
 0x65f   :  { %v1236_v45 = vpop.f32.mrf.mxu1  ;;  %v1325_v48 = vpop.f32.mrf.mxu0 }
 0x660   :  { %v1237_v51 = vadd.f32 %v1236_v45, %v1201_v38  ;;  %v1326_v55 = vadd.f32 %v1325_v48, %v1293_v52  ;;  %v1267_v6 = vpop.f32.mrf.mxu2  ;;  %v1575_v38 = vand.u32 4294901760, %v1574_v28  ;;  %v1807_v48 = vsub.f32 %v1805_v37, %v1806_v42  ;;  %v1734_v52 = vpop.permute.xlu0 %1733 }
 0x661   :  { %v1741_v54 = vsel %vm445_vm15, %v1734_v52, 0 }
 0x662   :  { %v1268_v56 = vadd.f32 %v1267_v6, %v1237_v51  ;;  %v1576_v45 = vsub.f32 %v1574_v28, %v1575_v38  ;;  %v1585_v51 = vand.u32 4294901760, %v1584_v50  ;;  %v1767_v2 = vand.u32 4294901760, %v1741_v54 }
 0x663   :  { %v1743_v6 = vsel %vm445_vm15, %v1736_v5, 0 }
 0x664   :  { %v1299_v62 = vadd.f32 %v1298_v60, %v1268_v56  ;;  %v1577_v49 = vand.u32 4294901760, %v1576_v45  ;;  %v1775_v56 = vand.u32 4294901760, %v1743_v6 }
 0x666   :  { %v1776_v59 = vsub.f32 %v1743_v6, %v1775_v56 }
 0x667   :  { %v1352_v58 = vpop.f32.mrf.mxu1  ;;  %v1329_v61 = vpop.f32.mrf.mxu0 }
 0x668   :  { %v1353_v57 = vadd.f32 %v1352_v58, %v1326_v55  ;;  %v1330_v23 = vadd.f32 %v1329_v61, %v1299_v62  ;;  %v1768_v55 = vsub.f32 %v1741_v54, %v1767_v2  ;;  %v1777_v3 = vand.u32 4294901760, %v1776_v59 }
 0x66a   :  { %v1364_v10 = vsel %vm445_vm15, %v1353_v57, 0  ;;  %v1769_v58 = vand.u32 4294901760, %v1768_v55  ;;  %v1778_v11 = vsub.f32 %v1776_v59, %v1777_v3 }
 0x66b   :  { %v1386_v13 = vand.u32 4294901760, %v1364_v10 }
 0x66c   :  { %v1770_v57 = vsub.f32 %v1768_v55, %v1769_v58 }
 0x66d   :  { %v1387_v21 = vsub.f32 %v1364_v10, %v1386_v13  ;;  %1425 = vmatmul.f32.vlgmr.msra.gmra.mxu3 %v1386_v13  ;;  %v1779_v10 = vand.u32 4294901760, %v1778_v11 }
 0x66e   :  { %1665 = vmatpush.msra.mxu3 %v7422_v39  ;;  %v1771_v4 = vand.u32 4294901760, %v1770_v57 }
 0x66f   :  { %v1356_v24 = vpop.f32.mrf.mxu1  ;;  %1453 = vmatmul.f32.vlgmr.msra.gmra.mxu0 %v1387_v21  ;;  %v1388_v26 = vand.u32 4294901760, %v1387_v21 }
 0x670   :  { %v1357_v27 = vadd.f32 %v1356_v24, %v1330_v23  ;;  %1697 = vmatpush.msra.mxu0 %v1607_v1 }
 0x671   :  { %1482 = vmatmul.f32.vlgmr.msra.gmra.mxu1 %v1388_v26  ;;  %v1389_v31 = vsub.f32 %v1387_v21, %v1388_v26 }
 0x672   :  { %v1367_v22 = vsel %vm445_vm15, %v1357_v27, 0  ;;  %1723 = vmatpush.msra.mxu1 %v7422_v39 }
 0x673   :  { %v1394_v33 = vand.u32 4294901760, %v1367_v22  ;;  %v1390_v34 = vand.u32 4294901760, %v1389_v31 }
 0x675   :  { %1391 = vmatmul.f32.vlgmr.msra.gmra.mxu2 %v1390_v34  ;;  %1429 = vmatmul.f32.gmra.mxu3 %v1394_v33  ;;  %v1395_v1 = vsub.f32 %v1367_v22, %v1394_v33 }
 0x676   :  { %1637 = vmatpush.msra.mxu2 %v7425_v53  ;;  %v1808_v53 = vand.u32 4294901760, %v1807_v48 }
 0x677   :  { %1458 = vmatmul.f32.gmra.mxu0 %v1395_v1  ;;  %v1396_v0 = vand.u32 4294901760, %v1395_v1 }
 0x679   :  { %1488 = vmatmul.f32.gmra.mxu1 %v1396_v0  ;;  %v1397_v39 = vsub.f32 %v1395_v1, %v1396_v0 }
 0x67b   :  { %v1398_v44 = vand.u32 4294901760, %v1397_v39 }
 0x67d   :  { %1399 = vmatmul.f32.gmra.mxu2 %v1398_v44  ;;  %1538 = vmatmul.f32.vlgmr.msrb.gmra.mxu3 %v1386_v13 }
 0x67e   :  { %1803 = vmatpush.xpose.msrb.mxu3 %v1802_v47 }
 0x67f   :  { %1578 = vmatmul.f32.vlgmr.msrb.gmra.mxu0 %v1577_v49 }
 0x680   :  { %1835 = vmatpush.xpose.msrb.mxu0 %v7453_v46 }
 0x681   :  { %1612 = vmatmul.f32.vlgmr.msrb.gmra.mxu1 %v7447_v14 }
 0x682   :  { %1809 = vmatpush.xpose.msrb.mxu3 %v1808_v53  ;;  %1865 = vmatpush.xpose.msrb.mxu1 %v7445_v20 }
 0x684   :  { %1838 = vmatpush.xpose.msrb.mxu0 %v1805_v37 }
 0x685   :  { %1512 = vmatmul.f32.vlgmr.msrb.gmra.mxu2 %v1386_v13  ;;  %1542 = vmatmul.f32.gmra.mxu3 %v1394_v33 }
 0x686   :  { %1764 = vmatpush.xpose.msrb.mxu2 %v7445_v20  ;;  %1867 = vmatpush.xpose.msrb.mxu1 %v1765_v17 }
 0x687   :  { %1586 = vmatmul.f32.gmra.mxu0 %v1585_v51 }
 0x689   :  { %1616 = vmatmul.f32.gmra.mxu1 %v1581_v40 }
 0x68a   :  { %1766 = vmatpush.xpose.msrb.mxu2 %v1765_v17 }
 0x68d   :  { %1516 = vmatmul.f32.gmra.mxu2 %v1394_v33  ;;  %1669 = vmatmul.f32.vlgmr.msra.gmra.mxu3 %v1575_v38 }
 0x68e   :  { %1927 = vmatpush.xpose.msra.mxu3 %v7445_v20 }
 0x68f   :  { %1699 = vmatmul.f32.vlgmr.msra.gmra.mxu0 %v7447_v14 }
 0x691   :  { %1725 = vmatmul.f32.vlgmr.msra.gmra.mxu1 %v7447_v14 }
 0x692   :  { %1929 = vmatpush.xpose.msra.mxu3 %v1765_v17 }
 0x695   :  { %1640 = vmatmul.f32.vlgmr.msra.gmra.mxu2 %v1574_v28  ;;  %1675 = vmatmul.f32.gmra.mxu3 %v1583_v15 }
 0x696   :  { %1898 = vmatpush.xpose.msra.mxu2 %v1800_v35 }
 0x697   :  { %1703 = vmatmul.f32.gmra.mxu0 %v1581_v40 }
 0x699   :  { %1729 = vmatmul.f32.gmra.mxu1 %v1581_v40 }
 0x69a   :  { %1902 = vmatpush.xpose.msra.mxu2 %v1806_v42 }
 0x69d   :  { %1645 = vmatmul.f32.gmra.mxu2 %v1582_v43  ;;  %1811 = vmatmul.f32.vlgmr.msrb.gmra.mxu3 %v1767_v2 }
 0x69f   :  { %1841 = vmatmul.f32.vlgmr.msrb.gmra.mxu0 %v1768_v55 }
 0x6a1   :  { %1871 = vmatmul.f32.vlgmr.msrb.gmra.mxu1 %v1769_v58 }
 0x6a5   :  { %1772 = vmatmul.f32.vlgmr.msrb.gmra.mxu2 %v1771_v4  ;;  %1815 = vmatmul.f32.gmra.mxu3 %v1775_v56 }
 0x6a7   :  { %1846 = vmatmul.f32.gmra.mxu0 %v1776_v59 }
 0x6a9   :  { %1877 = vmatmul.f32.gmra.mxu1 %v1777_v3 }
 0x6ad   :  { %1780 = vmatmul.f32.gmra.mxu2 %v1779_v10  ;;  %1931 = vmatmul.f32.vlgmr.msra.gmra.mxu3 %v1767_v2 }
 0x6b5   :  { %1904 = vmatmul.f32.vlgmr.msra.gmra.mxu2 %v1767_v2  ;;  %1935 = vmatmul.f32.gmra.mxu3 %v1775_v56 }
 0x6bd   :  { %1908 = vmatmul.f32.gmra.mxu2 %v1775_v56 }
 0x6ec   :  { %v7473_v61 = vpop.f32.mrf.mxu0 }
 0x6ee   :  { %v7475_v13 = vpop.f32.mrf.mxu1 }
 0x6f0   :  { %v7471_v60 = vpop.f32.mrf.mxu3 }
 0x6f4   :  { %v7481_v62 = vpop.f32.mrf.mxu0 }
 0x6f6   :  { %v7487_v21 = vpop.f32.mrf.mxu1 }
 0x6f8   :  { %v7477_v7 = vpop.f32.mrf.mxu2  ;;  %v7479_v20 = vpop.f32.mrf.mxu3 }
 0x6fc   :  { %v7489_v9 = vpop.f32.mrf.mxu0 }
 0x6fe   :  { %v7495_v26 = vpop.f32.mrf.mxu1 }
 0x700   :  { %v7483_v14 = vpop.f32.mrf.mxu2  ;;  %v7485_v19 = vpop.f32.mrf.mxu3 }
 0x704   :  { %v7501_v27 = vpop.f32.mrf.mxu0 }
 0x706   :  { %v7503_v28 = vpop.f32.mrf.mxu1 }
 0x708   :  { %v7491_v23 = vpop.f32.mrf.mxu2  ;;  %v7493_v24 = vpop.f32.mrf.mxu3 }
 0x70c   :  { %v7509_v22 = vpop.f32.mrf.mxu0 }
 0x70e   :  { %v7511_v33 = vpop.f32.mrf.mxu1 }
 0x710   :  { %v7497_v46 = vpop.f32.mrf.mxu2  ;;  %v7499_v17 = vpop.f32.mrf.mxu3 }
 0x714   :  { %v7515_v37 = vpop.f32.mrf.mxu0 }
 0x716   :  { %v7517_v40 = vpop.f32.mrf.mxu1 }
 0x718   :  { %v7505_v31 = vpop.f32.mrf.mxu2  ;;  %v7507_v32 = vpop.f32.mrf.mxu3 }
 0x71c   :  { %v1842_v41 = vpop.f32.mrf.mxu0 }
 0x71e   :  { %v1872_v39 = vpop.f32.mrf.mxu1 }
 0x720   :  { %v7513_v34 = vpop.f32.mrf.mxu2  ;;  %v1812_v35 = vpop.f32.mrf.mxu3 }
 0x724   :  { %v1847_v15 = vpop.f32.mrf.mxu0 }
 0x726   :  { %v1878_v52 = vpop.f32.mrf.mxu1 }
 0x728   :  { %v1773_v38 = vpop.f32.mrf.mxu2  ;;  %v1816_v1 = vpop.f32.mrf.mxu3 }
 0x729   :  { %v1813_v0 = vadd.f32 %v1812_v35, %v1773_v38 }
 0x72b   :  { %v1843_v43 = vadd.f32 %v1842_v41, %v1813_v0 }
 0x72d   :  { %v1873_v44 = vadd.f32 %v1872_v39, %v1843_v43 }
 0x730   :  { %v1781_v42 = vpop.f32.mrf.mxu2  ;;  %v1932_v47 = vpop.f32.mrf.mxu3 }
 0x731   :  { %v1817_v45 = vadd.f32 %v1816_v1, %v1781_v42  ;;  %v6939_v42 = vld [vmem:[%s8239_s4 + $0x30] sm:$0xff] }
 0x733   :  { %v1848_v53 = vadd.f32 %v1847_v15, %v1817_v45 }
 0x735   :  { %v1879_v54 = vadd.f32 %v1878_v52, %v1848_v53 }
 0x738   :  { %v1905_v48 = vpop.f32.mrf.mxu2  ;;  %v1936_v58 = vpop.f32.mrf.mxu3 }
 0x739   :  { %v1906_v49 = vadd.f32 %v1905_v48, %v1873_v44 }
 0x73b   :  { %v1933_v50 = vadd.f32 %v1932_v47, %v1906_v49 }
 0x73d   :  { %v1939_v51 = vmul.f32 0.35355338, %v1933_v50 }
 0x73f   :  { %v1941_v2 = vadd.f32 %v1939_v51, %v7313_v18 }
 0x740   :  { %v1909_v5 = vpop.f32.mrf.mxu2 }
 0x741   :  { %v1910_v55 = vadd.f32 %v1909_v5, %v1879_v54  ;;  %v1943_v6 = vsel %vm648_vm1, %v1941_v2, -inf }
 0x742   :  { %1944 = vmax.xlane.f32.xlu1 %v1943_v6 }
 0x743   :  { %v1937_v56 = vadd.f32 %v1936_v58, %v1910_v55 }
 0x745   :  { %v1940_v57 = vmul.f32 0.35355338, %v1937_v56 }
 0x747   :  { %v1942_v59 = vadd.f32 %v1940_v57, %v7317_v30 }
 0x749   :  { %v1946_v4 = vsel %vm648_vm1, %v1942_v59, -inf }
 0x74a   :  { %1947 = vmax.xlane.f32.xlu0 %v1946_v4 }
 0x75e   :  { %1991 = vrot.lane.b32.xlu0 %v7279_v16, %s7120_s16 }
 0x766   :  { %2388 = vrot.lane.b32.xlu0 %v7283_v25, %s7121_s17 }
 0x76e   :  { %2384 = vrot.lane.b32.xlu0 %v7283_v25, %s7122_s18 }
 0x7b5   :  { %v1945_v18 = vpop.xlane.xlu1 %1944 }
 0x7b6   :  { %v1949_v3 = vsub.f32 %v1941_v2, %v1945_v18 }
 0x7b8   :  { %v1951_v11 = vmul.f32 1.442695, %v1949_v3 }
 0x7ba   :  { %6875 = vpow2.f32 %v1951_v11 }
 0x7bd   :  { %v1948_v10 = vpop.xlane.xlu0 %1947 }
 0x7be   :  { %v1950_v30 = vsub.f32 %v1942_v59, %v1948_v10 }
 0x7c0   :  { %v6876_v35 = vpop.eup %6875  ;;  %v1953_v38 = vmul.f32 1.442695, %v1950_v30 }
 0x7c1   :  { %v1955_v1 = vsel %vm648_vm1, %v6876_v35, 0.0 }
 0x7c2   :  { %6877 = vpow2.f32 %v1953_v38  ;;  %1956 = vadd.xlane.f32.xlu2 %v1955_v1 }
 0x7c8   :  { %v7529_v0 = vpop.eup %6877 }
 0x7c9   :  { %v1958_v41 = vsel %vm648_vm1, %v7529_v0, 0.0 }
 0x7ca   :  { %1959 = vadd.xlane.f32.xlu1 %v1958_v41 }
 0x7d0   :  { %v1992_v43 = vpop.permute.xlu0 %1991 }
 0x7d1   :  { %v2019_v45 = vand.u32 4294901760, %v1992_v43 }
 0x7d3   :  { %v2059_v47 = vsub.f32 %v1992_v43, %v2019_v45 }
 0x7d5   :  { %v2060_v54 = vand.u32 4294901760, %v2059_v47 }
 0x7d7   :  { %v2061_v59 = vsub.f32 %v2059_v47, %v2060_v54 }
 0x7d8   :  { %v2389_v4 = vpop.permute.xlu0 %2388 }
 0x7d9   :  { %v2396_v1 = vsel %vm445_vm15, %v2389_v4, 0 }
 0x7da   :  { %1993 = vrot.lane.b32.xlu2 %v7283_v25, %s7120_s16 }
 0x7e2   :  { %2386 = vrot.lane.b32.xlu2 %v7279_v16, %s7121_s17 }
 0x7e3   :  { %2194 = vrot.lane.b32.xlu1 %v6939_v42, %s7117_s1  ;;  %v2062_v42 = vand.u32 4294901760, %v2061_v59 }
 0x7eb   :  { %2382 = vrot.lane.b32.xlu1 %v7279_v16, %s7122_s18 }
 0x835   :  { %v1957_v39 = vpop.xlane.xlu2 %1956 }
 0x836   :  { %6879 = vrcp.f32 %v1957_v39  ;;  %v1972_v51 = vand.u32 2147483648, %v1957_v39  ;;  %v1970_v5 = vand.u32 2147483647, %v1957_v39  ;;  %vm1966_vm6 = vweird.f32 %v1957_v39 }
 0x838   :  { %v1973_v56 = vor.u32 1.1754944e-38, %v1972_v51  ;;  %vm1971_vm8 = vcmp.eq.f32.partialorder %v1970_v5, 8.507059e+37 }
 0x83c   :  { %v6880_v44 = vpop.eup %6879 }
 0x83d   :  { %v1962_v48 = vmul.f32 %v6880_v44, %v1957_v39  ;;  %v1994_v49 = vpop.permute.xlu2 %1993  ;;  %v1960_v15 = vpop.xlane.xlu1 %1959  ;;  %vm1967_vm5 = vweird.f32 %v6880_v44 }
 0x83e   :  { %v2017_v53 = vand.u32 4294901760, %v1994_v49  ;;  %6881 = vrcp.f32 %v1960_v15  ;;  %vm1968_vm7 = vmor %vm1966_vm6, %vm1967_vm5  ;;  %v1986_v41 = vand.u32 2147483648, %v1960_v15  ;;  %v1984_v39 = vand.u32 2147483647, %v1960_v15 }
 0x83f   :  { %v1963_v50 = vsub.f32 1.0, %v1962_v48  ;;  %vm1980_vm10 = vweird.f32 %v1960_v15 }
 0x840   :  { %v2053_v52 = vsub.f32 %v1994_v49, %v2017_v53  ;;  %2018 = vmatpush.msra.mxu0 %v2017_v53  ;;  %2119 = vmatpush.msrb.mxu3 %v2017_v53  ;;  %v7544_v49 = vand.u32 4294901760, %v2396_v1  ;;  %vm1985_vm12 = vcmp.eq.f32.partialorder %v1984_v39, 8.507059e+37 }
 0x841   :  { %v1964_v2 = vmul.f32 %v6880_v44, %v1963_v50 }
 0x842   :  { %v2054_v55 = vand.u32 4294901760, %v2053_v52  ;;  %2020 = vmatpush.msra.mxu0 %v2019_v45  ;;  %2089 = vmatpush.msrb.mxu2 %v2053_v52 }
 0x843   :  { %v1965_v6 = vadd.f32 %v6880_v44, %v1964_v2  ;;  %2121 = vmatpush.msrb.mxu3 %v2019_v45 }
 0x844   :  { %v6882_v58 = vpop.eup %6881  ;;  %v2055_v57 = vsub.f32 %v2053_v52, %v2054_v55  ;;  %2092 = vmatpush.msrb.mxu2 %v2059_v47  ;;  %2152 = vmatpush.msrb.mxu0 %v2054_v55  ;;  %v7548_v55 = vsub.f32 %v2396_v1, %v7544_v49 }
 0x845   :  { %v1969_v18 = vsel %vm1968_vm7, %v6880_v44, %v1965_v6  ;;  %v1976_v3 = vmul.f32 %v6882_v58, %v1960_v15  ;;  %vm1981_vm9 = vweird.f32 %v6882_v58  ;;  %v2387_v48 = vpop.permute.xlu2 %2386 }
 0x846   :  { %v1974_v11 = vsel %vm1971_vm8, %v1973_v56, %v1969_v18  ;;  %v2056_v10 = vand.u32 4294901760, %v2055_v57  ;;  %2156 = vmatpush.msrb.mxu0 %v2060_v54  ;;  %vm1982_vm11 = vmor %vm1980_vm10, %vm1981_vm9  ;;  %v2394_v51 = vsel %vm445_vm15, %v2387_v48, 0 }
 0x847   :  { %v1977_v30 = vsub.f32 1.0, %v1976_v3  ;;  %v1989_v38 = vmul.f32 %v6876_v35, %v1974_v11  ;;  %v1987_v35 = vor.u32 1.1754944e-38, %v1986_v41  ;;  %v7550_v6 = vand.u32 4294901760, %v2394_v51 }
 0x848   :  { %2057 = vmatpush.msra.mxu1 %v2056_v10 }
 0x849   :  { %v1978_v43 = vmul.f32 %v6882_v58, %v1977_v30  ;;  %v1998_v47 = vsel %vm648_vm1, %v1989_v38, 0 }
 0x84a   :  { %2063 = vmatpush.msra.mxu1 %v2062_v42  ;;  %v2021_v44 = vand.u32 4294901760, %v1998_v47 }
 0x84b   :  { %v1979_v50 = vadd.f32 %v6882_v58, %v1978_v43 }
 0x84c   :  { %2181 = vmatpush.msrb.mxu1 %v2017_v53  ;;  %v2022_v52 = vsub.f32 %v1998_v47, %v2021_v44 }
 0x84d   :  { %2065 = vmatmul.f32.vlgmr.msra.gmra.mxu1 %v2021_v44  ;;  %v1983_v54 = vsel %vm1982_vm11, %v6882_v58, %v1979_v50  ;;  %v2449_v58 = vand.u32 4294901760, %v7548_v55 }
 0x84e   :  { %2183 = vmatpush.msrb.mxu1 %v2019_v45  ;;  %v1988_v2 = vsel %vm1985_vm12, %v1987_v35, %v1983_v54  ;;  %2095 = vmatmul.f32.vlgmr.msrb.gmra.mxu2 %v2022_v52  ;;  %v2023_v5 = vand.u32 4294901760, %v2022_v52  ;;  %v7556_v45 = vsub.f32 %v2394_v51, %v7550_v6 }
 0x84f   :  { %v1990_v15 = vmul.f32 %v7529_v0, %v1988_v2  ;;  %v2450_v0 = vsub.f32 %v7548_v55, %v2449_v58 }
 0x850   :  { %2125 = vmatmul.f32.vlgmr.msrb.gmra.mxu3 %v2023_v5  ;;  %v2024_v53 = vsub.f32 %v2022_v52, %v2023_v5  ;;  %v2455_v10 = vand.u32 4294901760, %v7556_v45 }
 0x851   :  { %v2001_v56 = vsel %vm648_vm1, %v1990_v15, 0  ;;  %v2451_v42 = vand.u32 4294901760, %v2450_v0 }
 0x852   :  { %v2025_v57 = vand.u32 4294901760, %v2024_v53  ;;  %v2029_v59 = vand.u32 4294901760, %v2001_v56  ;;  %v2456_v43 = vsub.f32 %v7556_v45, %v2455_v10 }
 0x854   :  { %2026 = vmatmul.f32.vlgmr.msra.gmra.mxu0 %v2025_v57  ;;  %v2030_v4 = vsub.f32 %v2001_v56, %v2029_v59  ;;  %v2457_v47 = vand.u32 4294901760, %v2456_v43 }
 0x855   :  { %2069 = vmatmul.f32.gmra.mxu1 %v2029_v59  ;;  %v2195_v18 = vpop.permute.xlu1 %2194 }
 0x856   :  { %v2218_v3 = vand.u32 4294901760, %v2195_v18  ;;  %2100 = vmatmul.f32.gmra.mxu2 %v2030_v4  ;;  %v2031_v11 = vand.u32 4294901760, %v2030_v4 }
 0x858   :  { %v2253_v30 = vsub.f32 %v2195_v18, %v2218_v3  ;;  %2131 = vmatmul.f32.gmra.mxu3 %v2031_v11  ;;  %2312 = vmatpush.msra.mxu1 %v2218_v3  ;;  %v2032_v38 = vsub.f32 %v2030_v4, %v2031_v11 }
 0x859   :  { %2219 = vmatpush.msra.mxu2 %v2218_v3 }
 0x85a   :  { %v2254_v1 = vand.u32 4294901760, %v2253_v30  ;;  %v2033_v41 = vand.u32 4294901760, %v2032_v38  ;;  %2284 = vmatpush.msra.mxu0 %v2253_v30 }
 0x85c   :  { %v2255_v39 = vsub.f32 %v2253_v30, %v2254_v1  ;;  %2034 = vmatmul.f32.gmra.mxu0 %v2033_v41  ;;  %2344 = vmatpush.msrb.mxu2 %v2254_v1 }
 0x85d   :  { %2185 = vmatmul.f32.vlgmr.msrb.gmra.mxu1 %v2021_v44 }
 0x85e   :  { %2452 = vmatpush.xpose.msrb.mxu1 %v2451_v42  ;;  %v2256_v48 = vand.u32 4294901760, %v2255_v39 }
 0x860   :  { %2257 = vmatpush.msra.mxu3 %v2256_v48 }
 0x862   :  { %2458 = vmatpush.xpose.msrb.mxu1 %v2457_v47  ;;  %2370 = vmatpush.msrb.mxu3 %v2218_v3  ;;  %v2385_v47 = vpop.permute.xlu0 %2384 }
 0x864   :  { %2158 = vmatmul.f32.vlgmr.msrb.gmra.mxu0 %v2021_v44  ;;  %v2383_v44 = vpop.permute.xlu1 %2382 }
 0x865   :  { %2189 = vmatmul.f32.gmra.mxu1 %v2029_v59  ;;  %2413 = vmatpush.xpose.msrb.mxu0 %v7544_v49  ;;  %v2390_v30 = vsel %vm445_vm15, %v2383_v44, 0 }
 0x866   :  { %v2416_v42 = vand.u32 4294901760, %v2390_v30 }
 0x869   :  { %2415 = vmatpush.xpose.msrb.mxu0 %v7550_v6 }
 0x86c   :  { %2162 = vmatmul.f32.gmra.mxu0 %v2029_v59 }
 0x8ca   :  { %v2066_v50 = vpop.f32.mrf.mxu1 }
 0x8d1   :  { %v2027_v35 = vpop.f32.mrf.mxu0  ;;  %v2096_v54 = vpop.f32.mrf.mxu2 }
 0x8d2   :  { %v2070_v51 = vpop.f32.mrf.mxu1  ;;  %v2067_v52 = vadd.f32 %v2066_v50, %v2027_v35 }
 0x8d3   :  { %v2126_v15 = vpop.f32.mrf.mxu3 }
 0x8d4   :  { %v2097_v5 = vadd.f32 %v2096_v54, %v2067_v52  ;;  %v2417_v52 = vsub.f32 %v2390_v30, %v2416_v42 }
 0x8d6   :  { %v2127_v53 = vadd.f32 %v2126_v15, %v2097_v5 }
 0x8d9   :  { %v2035_v2 = vpop.f32.mrf.mxu0  ;;  %v2101_v3 = vpop.f32.mrf.mxu2 }
 0x8da   :  { %v2071_v56 = vadd.f32 %v2070_v51, %v2035_v2  ;;  %v2186_v57 = vpop.f32.mrf.mxu1  ;;  %v2392_v2 = vsel %vm445_vm15, %v2385_v47, 0 }
 0x8db   :  { %v2132_v38 = vpop.f32.mrf.mxu3 }
 0x8dc   :  { %v2102_v11 = vadd.f32 %v2101_v3, %v2071_v56  ;;  %v2424_v56 = vand.u32 4294901760, %v2392_v2 }
 0x8de   :  { %v2133_v41 = vadd.f32 %v2132_v38, %v2102_v11 }
 0x8e1   :  { %v2159_v4 = vpop.f32.mrf.mxu0 }
 0x8e2   :  { %v2160_v18 = vadd.f32 %v2159_v4, %v2127_v53  ;;  %v2190_v35 = vpop.f32.mrf.mxu1 }
 0x8e4   :  { %v2187_v0 = vadd.f32 %v2186_v57, %v2160_v18  ;;  %v2418_v57 = vand.u32 4294901760, %v2417_v52  ;;  %v2425_v18 = vsub.f32 %v2392_v2, %v2424_v56 }
 0x8e6   :  { %v2198_v59 = vsel %vm445_vm15, %v2187_v0, 0  ;;  %v2419_v44 = vsub.f32 %v2417_v52, %v2418_v57  ;;  %v2426_v11 = vand.u32 4294901760, %v2425_v18 }
 0x8e7   :  { %v2220_v1 = vand.u32 4294901760, %v2198_v59 }
 0x8e8   :  { %v2427_v0 = vsub.f32 %v2425_v18, %v2426_v11 }
 0x8e9   :  { %v2221_v43 = vsub.f32 %v2198_v59, %v2220_v1  ;;  %v2163_v39 = vpop.f32.mrf.mxu0  ;;  %2259 = vmatmul.f32.vlgmr.msra.gmra.mxu3 %v2220_v1 }
 0x8ea   :  { %v2164_v48 = vadd.f32 %v2163_v39, %v2133_v41  ;;  %2514 = vmatpush.xpose.msra.mxu3 %v7544_v49 }
 0x8eb   :  { %v2222_v50 = vand.u32 4294901760, %v2221_v43  ;;  %2287 = vmatmul.f32.vlgmr.msra.gmra.mxu0 %v2221_v43 }
 0x8ec   :  { %v2191_v51 = vadd.f32 %v2190_v35, %v2164_v48  ;;  %2547 = vmatpush.xpose.msra.mxu0 %v2449_v58 }
 0x8ed   :  { %v2223_v54 = vsub.f32 %v2221_v43, %v2222_v50  ;;  %2316 = vmatmul.f32.vlgmr.msra.gmra.mxu1 %v2222_v50 }
 0x8ee   :  { %v2201_v5 = vsel %vm445_vm15, %v2191_v51, 0  ;;  %2516 = vmatpush.xpose.msra.mxu3 %v7550_v6  ;;  %2576 = vmatpush.xpose.msra.mxu1 %v7544_v49 }
 0x8ef   :  { %v2224_v15 = vand.u32 4294901760, %v2223_v54  ;;  %v2228_v53 = vand.u32 4294901760, %v2201_v5 }
 0x8f0   :  { %2551 = vmatpush.xpose.msra.mxu0 %v2455_v10  ;;  %v2420_v10 = vand.u32 4294901760, %v2419_v44 }
 0x8f1   :  { %2225 = vmatmul.f32.vlgmr.msra.gmra.mxu2 %v2224_v15  ;;  %2263 = vmatmul.f32.gmra.mxu3 %v2228_v53  ;;  %v2229_v58 = vsub.f32 %v2201_v5, %v2228_v53 }
 0x8f2   :  { %2484 = vmatpush.xpose.msra.mxu2 %v7548_v55  ;;  %2578 = vmatpush.xpose.msra.mxu1 %v7550_v6  ;;  %v2428_v55 = vand.u32 4294901760, %v2427_v0  ;;  %v6940_v0 = vld [vmem:[#allocation7] sm:$0xff] }
 0x8f3   :  { %2292 = vmatmul.f32.gmra.mxu0 %v2229_v58  ;;  %v2230_v4 = vand.u32 4294901760, %v2229_v58 }
 0x8f5   :  { %2322 = vmatmul.f32.gmra.mxu1 %v2230_v4  ;;  %v2231_v49 = vsub.f32 %v2229_v58, %v2230_v4 }
 0x8f6   :  { %2487 = vmatpush.xpose.msra.mxu2 %v7556_v45 }
 0x8f7   :  { %v2232_v3 = vand.u32 4294901760, %v2231_v49 }
 0x8f9   :  { %2233 = vmatmul.f32.gmra.mxu2 %v2232_v3  ;;  %2372 = vmatmul.f32.vlgmr.msrb.gmra.mxu3 %v2220_v1 }
 0x8fb   :  { %2421 = vmatmul.f32.vlgmr.msrb.gmra.mxu0 %v2420_v10 }
 0x8fd   :  { %2460 = vmatmul.f32.vlgmr.msrb.gmra.mxu1 %v2416_v42 }
 0x901   :  { %2346 = vmatmul.f32.vlgmr.msrb.gmra.mxu2 %v2220_v1  ;;  %2376 = vmatmul.f32.gmra.mxu3 %v2228_v53 }
 0x903   :  { %2429 = vmatmul.f32.gmra.mxu0 %v2428_v55 }
 0x905   :  { %2464 = vmatmul.f32.gmra.mxu1 %v2424_v56 }
 0x909   :  { %2350 = vmatmul.f32.gmra.mxu2 %v2228_v53  ;;  %2520 = vmatmul.f32.vlgmr.msra.gmra.mxu3 %v2418_v57 }
 0x90b   :  { %2553 = vmatmul.f32.vlgmr.msra.gmra.mxu0 %v2416_v42 }
 0x90d   :  { %2580 = vmatmul.f32.vlgmr.msra.gmra.mxu1 %v2416_v42 }
 0x911   :  { %2490 = vmatmul.f32.vlgmr.msra.gmra.mxu2 %v2417_v52  ;;  %2526 = vmatmul.f32.gmra.mxu3 %v2426_v11 }
 0x913   :  { %2557 = vmatmul.f32.gmra.mxu0 %v2424_v56 }
 0x915   :  { %2584 = vmatmul.f32.gmra.mxu1 %v2424_v56 }
 0x919   :  { %2495 = vmatmul.f32.gmra.mxu2 %v2425_v18 }
 0x968   :  { %v7583_v45 = vpop.f32.mrf.mxu0 }
 0x96a   :  { %v7585_v30 = vpop.f32.mrf.mxu1 }
 0x96c   :  { %v7581_v6 = vpop.f32.mrf.mxu3 }
 0x970   :  { %v7591_v1 = vpop.f32.mrf.mxu0 }
 0x972   :  { %v7593_v41 = vpop.f32.mrf.mxu1 }
 0x974   :  { %v7587_v59 = vpop.f32.mrf.mxu2  ;;  %v7589_v38 = vpop.f32.mrf.mxu3 }
 0x978   :  { %v2422_v39 = vpop.f32.mrf.mxu0 }
 0x97a   :  { %v2461_v48 = vpop.f32.mrf.mxu1 }
 0x97b   :  { %v2462_v54 = vadd.f32 %v2461_v48, %v2422_v39 }
 0x97c   :  { %v7595_v42 = vpop.f32.mrf.mxu2  ;;  %v7597_v43 = vpop.f32.mrf.mxu3 }
 0x980   :  { %v2430_v35 = vpop.f32.mrf.mxu0 }
 0x982   :  { %v2465_v52 = vpop.f32.mrf.mxu1 }
 0x983   :  { %v2466_v4 = vadd.f32 %v2465_v52, %v2430_v35 }
 0x984   :  { %v7599_v47 = vpop.f32.mrf.mxu2  ;;  %v7601_v50 = vpop.f32.mrf.mxu3 }
 0x988   :  { %v2554_v53 = vpop.f32.mrf.mxu0 }
 0x98a   :  { %v2581_v57 = vpop.f32.mrf.mxu1 }
 0x98c   :  { %v7603_v51 = vpop.f32.mrf.mxu2  ;;  %v2521_v2 = vpop.f32.mrf.mxu3 }
 0x990   :  { %v2558_v36 = vpop.f32.mrf.mxu0 }
 0x992   :  { %v2585_v48 = vpop.f32.mrf.mxu1 }
 0x994   :  { %v2491_v5 = vpop.f32.mrf.mxu2  ;;  %v2527_v11 = vpop.f32.mrf.mxu3 }
 0x995   :  { %v2492_v15 = vadd.f32 %v2491_v5, %v2462_v54 }
 0x997   :  { %v2522_v56 = vadd.f32 %v2521_v2, %v2492_v15  ;;  %v6941_v2 = vld [vmem:[#allocation7 + $0x8] sm:$0xff] }
 0x999   :  { %v2555_v58 = vadd.f32 %v2554_v53, %v2522_v56 }
 0x99b   :  { %v2582_v18 = vadd.f32 %v2581_v57, %v2555_v58 }
 0x99c   :  { %v2496_v44 = vpop.f32.mrf.mxu2 }
 0x99d   :  { %v2497_v49 = vadd.f32 %v2496_v44, %v2466_v4  ;;  %v2588_v3 = vmul.f32 0.35355338, %v2582_v18 }
 0x99f   :  { %v2528_v10 = vadd.f32 %v2527_v11, %v2497_v49  ;;  %v2590_v55 = vadd.f32 %v6940_v0, %v2588_v3 }
 0x9a1   :  { %v2559_v8 = vadd.f32 %v2558_v36, %v2528_v10  ;;  %v2592_v39 = vsel %vm648_vm1, %v2590_v55, -inf }
 0x9a2   :  { %2593 = vmax.xlane.f32.xlu2 %v2592_v39 }
 0x9a3   :  { %v2586_v54 = vadd.f32 %v2585_v48, %v2559_v8 }
 0x9a5   :  { %v2589_v5 = vmul.f32 0.35355338, %v2586_v54 }
 0x9a7   :  { %v2591_v15 = vadd.f32 %v6941_v2, %v2589_v5 }
 0x9a9   :  { %v2595_v35 = vsel %vm648_vm1, %v2591_v15, -inf }
 0x9aa   :  { %2596 = vmax.xlane.f32.xlu1 %v2595_v35 }
 0x9c3   :  { %2642 = vrot.lane.b32.xlu1 %v7283_v25, %s7123_s20 }
 0xa15   :  { %v2594_v52 = vpop.xlane.xlu2 %2593 }
 0xa16   :  { %v2598_v53 = vsub.f32 %v2590_v55, %v2594_v52  ;;  %v6942_v55 = vld [vmem:[%s8239_s4 + $0x48] sm:$0xff] }
 0xa18   :  { %v2600_v56 = vmul.f32 1.442695, %v2598_v53 }
 0xa1a   :  { %6883 = vpow2.f32 %v2600_v56 }
 0xa1d   :  { %v2597_v57 = vpop.xlane.xlu1 %2596 }
 0xa1e   :  { %v2599_v36 = vsub.f32 %v2591_v15, %v2597_v57 }
 0xa20   :  { %v6884_v58 = vpop.eup %6883  ;;  %v2602_v4 = vmul.f32 1.442695, %v2599_v36 }
 0xa21   :  { %v2604_v18 = vsel %vm648_vm1, %v6884_v58, 0.0 }
 0xa22   :  { %6885 = vpow2.f32 %v2602_v4  ;;  %2605 = vadd.xlane.f32.xlu0 %v2604_v18 }
 0xa28   :  { %v7609_v8 = vpop.eup %6885 }
 0xa29   :  { %v2607_v44 = vsel %vm648_vm1, %v7609_v8, 0.0 }
 0xa2a   :  { %2608 = vadd.xlane.f32.xlu2 %v2607_v44 }
 0xa35   :  { %v2643_v49 = vpop.permute.xlu1 %2642 }
 0xa36   :  { %v7613_v25 = vand.u32 4294901760, %v2643_v49  ;;  %2640 = vrot.lane.b32.xlu0 %v7279_v16, %s7123_s20 }
 0xa38   :  { %v2702_v3 = vsub.f32 %v2643_v49, %v7613_v25  ;;  %2667 = vmatpush.msrb.mxu2 %v7613_v25  ;;  %2768 = vmatpush.msrb.mxu1 %v7613_v25 }
 0xa3a   :  { %v2703_v11 = vand.u32 4294901760, %v2702_v3  ;;  %2738 = vmatpush.msrb.mxu0 %v2702_v3 }
 0xa3c   :  { %v2704_v10 = vsub.f32 %v2702_v3, %v2703_v11 }
 0xa3e   :  { %v2705_v0 = vand.u32 4294901760, %v2704_v10  ;;  %3032 = vrot.lane.b32.xlu0 %v7275_v63, %s7117_s1 }
 0xa40   :  { %2706 = vmatpush.msrb.mxu3 %v2705_v0 }
 0xa42   :  { %2843 = vrot.lane.b32.xlu2 %v6942_v55, %s7117_s1 }
 0xa95   :  { %v2606_v16 = vpop.xlane.xlu0 %2605 }
 0xa96   :  { %6887 = vrcp.f32 %v2606_v16  ;;  %v2621_v2 = vand.u32 2147483648, %v2606_v16  ;;  %v2619_v35 = vand.u32 2147483647, %v2606_v16  ;;  %vm2615_vm14 = vweird.f32 %v2606_v16 }
 0xa98   :  { %v2622_v53 = vor.u32 1.1754944e-38, %v2621_v2  ;;  %vm2620_vm3 = vcmp.eq.f32.partialorder %v2619_v35, 8.507059e+37 }
 0xa9c   :  { %v6888_v39 = vpop.eup %6887 }
 0xa9d   :  { %v2611_v48 = vmul.f32 %v6888_v39, %v2606_v16  ;;  %v2609_v54 = vpop.xlane.xlu2 %2608  ;;  %vm2616_vm13 = vweird.f32 %v6888_v39 }
 0xa9e   :  { %6889 = vrcp.f32 %v2609_v54  ;;  %vm2617_vm2 = vmor %vm2615_vm14, %vm2616_vm13  ;;  %v2633_v44 = vand.u32 2147483647, %v2609_v54  ;;  %v2635_v49 = vand.u32 2147483648, %v2609_v54  ;;  %vm2629_vm5 = vweird.f32 %v2609_v54 }
 0xa9f   :  { %v2612_v5 = vsub.f32 1.0, %v2611_v48 }
 0xaa0   :  { %vm2634_vm7 = vcmp.eq.f32.partialorder %v2633_v44, 8.507059e+37 }
 0xaa1   :  { %v2613_v15 = vmul.f32 %v6888_v39, %v2612_v5 }
 0xaa3   :  { %v2614_v52 = vadd.f32 %v6888_v39, %v2613_v15 }
 0xaa4   :  { %v6890_v63 = vpop.eup %6889 }
 0xaa5   :  { %v2618_v56 = vsel %vm2617_vm2, %v6888_v39, %v2614_v52  ;;  %v2625_v57 = vmul.f32 %v6890_v63, %v2609_v54  ;;  %vm2630_vm4 = vweird.f32 %v6890_v63  ;;  %v2636_v39 = vor.u32 1.1754944e-38, %v2635_v49 }
 0xaa6   :  { %v2623_v36 = vsel %vm2620_vm3, %v2622_v53, %v2618_v56  ;;  %vm2631_vm6 = vmor %vm2629_vm5, %vm2630_vm4 }
 0xaa7   :  { %v2638_v4 = vmul.f32 %v6884_v58, %v2623_v36  ;;  %v2626_v18 = vsub.f32 1.0, %v2625_v57 }
 0xaa8   :  { %v2641_v3 = vpop.permute.xlu0 %2640 }
 0xaa9   :  { %v2627_v10 = vmul.f32 %v6890_v63, %v2626_v18  ;;  %v2668_v0 = vand.u32 4294901760, %v2641_v3  ;;  %v2647_v55 = vsel %vm648_vm1, %v2638_v4, 0 }
 0xaaa   :  { %v2670_v48 = vand.u32 4294901760, %v2647_v55 }
 0xaab   :  { %v2628_v5 = vadd.f32 %v6890_v63, %v2627_v10  ;;  %v2708_v16 = vsub.f32 %v2641_v3, %v2668_v0  ;;  %2669 = vmatpush.msrb.mxu2 %v2668_v0  ;;  %2770 = vmatpush.msrb.mxu1 %v2668_v0 }
 0xaac   :  { %v2671_v2 = vsub.f32 %v2647_v55, %v2670_v48 }
 0xaad   :  { %2801 = vmatpush.msra.mxu2 %v2703_v11  ;;  %2741 = vmatpush.msrb.mxu0 %v2708_v16  ;;  %v2709_v58 = vand.u32 4294901760, %v2708_v16  ;;  %v2632_v15 = vsel %vm2631_vm6, %v6890_v63, %v2628_v5 }
 0xaae   :  { %2744 = vmatmul.f32.vlgmr.msrb.gmra.mxu0 %v2671_v2  ;;  %v2672_v35 = vand.u32 4294901760, %v2671_v2  ;;  %v2637_v52 = vsel %vm2634_vm7, %v2636_v39, %v2632_v15 }
 0xaaf   :  { %2805 = vmatpush.msra.mxu2 %v2709_v58  ;;  %v2710_v53 = vsub.f32 %v2708_v16, %v2709_v58  ;;  %v2639_v56 = vmul.f32 %v7609_v8, %v2637_v52  ;;  %v2844_v8 = vpop.permute.xlu2 %2843 }
 0xab0   :  { %2774 = vmatmul.f32.vlgmr.msrb.gmra.mxu1 %v2672_v35  ;;  %v2673_v54 = vsub.f32 %v2671_v2, %v2672_v35  ;;  %v2867_v3 = vand.u32 4294901760, %v2844_v8 }
 0xab1   :  { %v2711_v57 = vand.u32 4294901760, %v2710_v53  ;;  %v2650_v36 = vsel %vm648_vm1, %v2639_v56, 0 }
 0xab2   :  { %v2674_v4 = vand.u32 4294901760, %v2673_v54  ;;  %v2678_v18 = vand.u32 4294901760, %v2650_v36  ;;  %v2902_v10 = vsub.f32 %v2844_v8, %v2867_v3  ;;  %2868 = vmatpush.msra.mxu0 %v2867_v3 }
 0xab3   :  { %2712 = vmatpush.msrb.mxu3 %v2711_v57 }
 0xab4   :  { %2675 = vmatmul.f32.vlgmr.msrb.gmra.mxu2 %v2674_v4  ;;  %2714 = vmatmul.f32.vlgmr.msrb.gmra.mxu3 %v2670_v48  ;;  %v2679_v11 = vsub.f32 %v2650_v36, %v2678_v18  ;;  %v2903_v55 = vand.u32 4294901760, %v2902_v10 }
 0xab5   :  { %2830 = vmatpush.msra.mxu3 %v7613_v25  ;;  %2933 = vmatpush.msrb.mxu2 %v2902_v10 }
 0xab6   :  { %2749 = vmatmul.f32.gmra.mxu0 %v2679_v11  ;;  %v2680_v63 = vand.u32 4294901760, %v2679_v11  ;;  %v2904_v25 = vsub.f32 %v2902_v10, %v2903_v55 }
 0xab7   :  { %2832 = vmatpush.msra.mxu3 %v2668_v0  ;;  %2993 = vmatpush.msrb.mxu0 %v2903_v55 }
 0xab8   :  { %2780 = vmatmul.f32.gmra.mxu1 %v2680_v63  ;;  %v2681_v44 = vsub.f32 %v2679_v11, %v2680_v63  ;;  %v2905_v5 = vand.u32 4294901760, %v2904_v25 }
 0xab9   :  { %2961 = vmatpush.msrb.mxu3 %v2867_v3 }
 0xaba   :  { %v2682_v49 = vand.u32 4294901760, %v2681_v44  ;;  %2906 = vmatpush.msra.mxu1 %v2905_v5 }
 0xabc   :  { %2683 = vmatmul.f32.gmra.mxu2 %v2682_v49  ;;  %2718 = vmatmul.f32.gmra.mxu3 %v2678_v18 }
 0xabd   :  { %3019 = vmatpush.msrb.mxu1 %v2867_v3 }
 0xac4   :  { %2807 = vmatmul.f32.vlgmr.msra.gmra.mxu2 %v2670_v48  ;;  %2834 = vmatmul.f32.vlgmr.msra.gmra.mxu3 %v2670_v48 }
 0xacc   :  { %2811 = vmatmul.f32.gmra.mxu2 %v2678_v18  ;;  %2838 = vmatmul.f32.gmra.mxu3 %v2678_v18 }
 0xb2b   :  { %v2745_v39 = vpop.f32.mrf.mxu0 }
 0xb2d   :  { %v2775_v35 = vpop.f32.mrf.mxu1 }
 0xb33   :  { %v2750_v36 = vpop.f32.mrf.mxu0 }
 0xb35   :  { %v2781_v63 = vpop.f32.mrf.mxu1 }
 0xb37   :  { %v2676_v0 = vpop.f32.mrf.mxu2  ;;  %v2715_v16 = vpop.f32.mrf.mxu3 }
 0xb38   :  { %v2716_v2 = vadd.f32 %v2715_v16, %v2676_v0 }
 0xb3a   :  { %v2746_v15 = vadd.f32 %v2745_v39, %v2716_v2 }
 0xb3c   :  { %v2776_v53 = vadd.f32 %v2775_v35, %v2746_v15 }
 0xb3f   :  { %v2684_v58 = vpop.f32.mrf.mxu2  ;;  %v2719_v48 = vpop.f32.mrf.mxu3 }
 0xb40   :  { %v2720_v52 = vadd.f32 %v2719_v48, %v2684_v58 }
 0xb42   :  { %v2751_v4 = vadd.f32 %v2750_v36, %v2720_v52  ;;  %v1427_v52 = vadd.f32 %v7471_v60, %v7477_v7 }
 0xb44   :  { %v2782_v49 = vadd.f32 %v2781_v63, %v2751_v4 }
 0xb47   :  { %v2808_v56 = vpop.f32.mrf.mxu2  ;;  %v2835_v54 = vpop.f32.mrf.mxu3 }
 0xb48   :  { %v2809_v57 = vadd.f32 %v2808_v56, %v2776_v53  ;;  %v1455_v53 = vadd.f32 %v7473_v61, %v1427_v52  ;;  %v1431_v56 = vadd.f32 %v7479_v20, %v7483_v14  ;;  %v2261_v61 = vadd.f32 %v7581_v6, %v7587_v59 }
 0xb4a   :  { %v2836_v18 = vadd.f32 %v2835_v54, %v2809_v57  ;;  %v1484_v54 = vadd.f32 %v7475_v13, %v1455_v53  ;;  %v1460_v36 = vadd.f32 %v7481_v62, %v1431_v56  ;;  %v2289_v62 = vadd.f32 %v7583_v45, %v2261_v61 }
 0xb4c   :  { %v2847_v11 = vsel %vm445_vm15, %v2836_v18, 0  ;;  %v1514_v57 = vadd.f32 %v7491_v23, %v1484_v54  ;;  %v2318_v6 = vadd.f32 %v7585_v30, %v2289_v62 }
 0xb4d   :  { %v2869_v44 = vand.u32 4294901760, %v2847_v11 }
 0xb4e   :  { %v1540_v4 = vadd.f32 %v7485_v19, %v1514_v57  ;;  %v6944_v57 = vld [vmem:[#allocation2 + $0x8] sm:$0xff] }
 0xb4f   :  { %v2870_v8 = vsub.f32 %v2847_v11, %v2869_v44  ;;  %v2812_v3 = vpop.f32.mrf.mxu2  ;;  %2908 = vmatmul.f32.vlgmr.msra.gmra.mxu1 %v2869_v44  ;;  %v2839_v25 = vpop.f32.mrf.mxu3  ;;  %v1490_v11 = vadd.f32 %v7487_v21, %v1460_v36 }
 0xb50   :  { %v2813_v10 = vadd.f32 %v2812_v3, %v2782_v49  ;;  %v1580_v60 = vadd.f32 %v7489_v9, %v1540_v4  ;;  %v2265_v49 = vadd.f32 %v7589_v38, %v7595_v42 }
 0xb51   :  { %v2871_v55 = vand.u32 4294901760, %v2870_v8  ;;  %2936 = vmatmul.f32.vlgmr.msrb.gmra.mxu2 %v2870_v8  ;;  %v1518_v63 = vadd.f32 %v7497_v46, %v1490_v11 }
 0xb52   :  { %v2840_v5 = vadd.f32 %v2839_v25, %v2813_v10  ;;  %v1614_v13 = vadd.f32 %v7495_v26, %v1580_v60  ;;  %v2348_v26 = vadd.f32 %v7599_v47, %v2318_v6 }
 0xb53   :  { %v2872_v0 = vsub.f32 %v2870_v8, %v2871_v55  ;;  %2965 = vmatmul.f32.vlgmr.msrb.gmra.mxu3 %v2871_v55  ;;  %v1544_v20 = vadd.f32 %v7493_v24, %v1518_v63  ;;  %v2294_v8 = vadd.f32 %v7591_v1, %v2265_v49  ;;  %v3033_v1 = vpop.permute.xlu0 %3032 }
 0xb54   :  { %v2850_v16 = vsel %vm445_vm15, %v2840_v5, 0  ;;  %v1642_v14 = vadd.f32 %v7505_v31, %v1614_v13  ;;  %v2374_v3 = vadd.f32 %v7597_v43, %v2348_v26 }
 0xb55   :  { %v2873_v39 = vand.u32 4294901760, %v2872_v0  ;;  %v2877_v2 = vand.u32 4294901760, %v2850_v16  ;;  %v1588_v23 = vadd.f32 %v7501_v27, %v1544_v20 }
 0xb56   :  { %v1671_v9 = vadd.f32 %v7499_v17, %v1642_v14 }
 0xb57   :  { %2874 = vmatmul.f32.vlgmr.msra.gmra.mxu0 %v2873_v39  ;;  %2912 = vmatmul.f32.gmra.mxu1 %v2877_v2  ;;  %v2878_v58 = vsub.f32 %v2850_v16, %v2877_v2  ;;  %v1618_v24 = vadd.f32 %v7503_v28, %v1588_v23  ;;  %v2324_v28 = vadd.f32 %v7593_v41, %v2294_v8 }
 0xb58   :  { %v1701_v45 = vadd.f32 %v7509_v22, %v1671_v9 }
 0xb59   :  { %2941 = vmatmul.f32.gmra.mxu2 %v2878_v58  ;;  %v2879_v48 = vand.u32 4294901760, %v2878_v58  ;;  %v1647_v27 = vadd.f32 %v7513_v34, %v1618_v24  ;;  %v2352_v22 = vadd.f32 %v7603_v51, %v2324_v28 }
 0xb5a   :  { %v1727_v47 = vadd.f32 %v7511_v33, %v1701_v45 }
 0xb5b   :  { %2971 = vmatmul.f32.gmra.mxu3 %v2879_v48  ;;  %v2880_v15 = vsub.f32 %v2878_v58, %v2879_v48  ;;  %v1677_v30 = vadd.f32 %v7507_v32, %v1647_v27 }
 0xb5c   :  { %v2380_v0 = vadd.f32 %v2374_v3, %v1727_v47 }
 0xb5d   :  { %v2881_v35 = vand.u32 4294901760, %v2880_v15  ;;  %v1705_v43 = vadd.f32 %v7515_v37, %v1677_v30  ;;  %v6943_v15 = vld [vmem:[#allocation2] sm:$0xff] }
 0xb5f   :  { %2882 = vmatmul.f32.gmra.mxu0 %v2881_v35  ;;  %3021 = vmatmul.f32.vlgmr.msrb.gmra.mxu1 %v2869_v44  ;;  %v1731_v41 = vadd.f32 %v7517_v40, %v1705_v43 }
 0xb67   :  { %2995 = vmatmul.f32.vlgmr.msrb.gmra.mxu0 %v2869_v44  ;;  %3025 = vmatmul.f32.gmra.mxu1 %v2877_v2 }
 0xb6f   :  { %2999 = vmatmul.f32.gmra.mxu0 %v2877_v2  ;;  %v2378_v2 = vadd.f32 %v7601_v50, %v2352_v22 }
 0xb71   :  { %v2381_v52 = vadd.f32 %v2378_v2, %v1731_v41 }
 0xbcc   :  { %v2909_v18 = vpop.f32.mrf.mxu1 }
 0xbd4   :  { %v2875_v7 = vpop.f32.mrf.mxu0  ;;  %v2913_v19 = vpop.f32.mrf.mxu1 }
 0xbd5   :  { %v2910_v21 = vadd.f32 %v2909_v18, %v2875_v7  ;;  %v2937_v44 = vpop.f32.mrf.mxu2 }
 0xbd6   :  { %v2966_v59 = vpop.f32.mrf.mxu3 }
 0xbd7   :  { %v2938_v31 = vadd.f32 %v2937_v44, %v2910_v21 }
 0xbd9   :  { %v2967_v17 = vadd.f32 %v2966_v59, %v2938_v31 }
 0xbdc   :  { %v2883_v46 = vpop.f32.mrf.mxu0  ;;  %v3022_v55 = vpop.f32.mrf.mxu1 }
 0xbdd   :  { %v2914_v10 = vadd.f32 %v2913_v19, %v2883_v46  ;;  %v2942_v25 = vpop.f32.mrf.mxu2 }
 0xbde   :  { %v2972_v39 = vpop.f32.mrf.mxu3 }
 0xbdf   :  { %v2943_v5 = vadd.f32 %v2942_v25, %v2914_v10 }
 0xbe1   :  { %v2973_v58 = vadd.f32 %v2972_v39, %v2943_v5 }
 0xbe4   :  { %v2996_v38 = vpop.f32.mrf.mxu0  ;;  %v3026_v51 = vpop.f32.mrf.mxu1 }
 0xbe5   :  { %v2997_v42 = vadd.f32 %v2996_v38, %v2967_v17 }
 0xbe7   :  { %v3023_v34 = vadd.f32 %v3022_v55, %v2997_v42 }
 0xbe9   :  { %v3029_v16 = vadd.f32 %v3023_v34, %v2380_v0 }
 0xbeb   :  { %v3035_v32 = vadd.f32 %v3033_v1, %v3029_v16 }
 0xbec   :  { %v3000_v48 = vpop.f32.mrf.mxu0 }
 0xbed   :  { %v7667_v33 = vadd.f32 %v6943_v15, %v3035_v32  ;;  %v3001_v35 = vadd.f32 %v3000_v48, %v2973_v58 }
 0xbef   :  { %v3027_v53 = vadd.f32 %v3026_v51, %v3001_v35  ;;  %v3039_v56 = vsel %vm112_vm0, %v7667_v33, 0.0 }
 0xbf0   :  { %3040 = vadd.xlane.f32.xlu1 %v3039_v56 }
 0xbf1   :  { %v3030_v37 = vadd.f32 %v3027_v53, %v2381_v52 }
 0xbf3   :  { %v3036_v54 = vadd.f32 %v3033_v1, %v3030_v37 }
 0xbf5   :  { %v7671_v50 = vadd.f32 %v6944_v57, %v3036_v54 }
 0xbf7   :  { %v3042_v36 = vsel %vm112_vm0, %v7671_v50, 0.0 }
 0xbf8   :  { %3043 = vadd.xlane.f32.xlu2 %v3042_v36  ;;  %v8249_v36 = vld [vmem:[#allocation16_spill] sm:$0xff] }
 0xc63   :  { %v3041_v40 = vpop.xlane.xlu1 %3040 }
 0xc64   :  { %v3045_v4 = vmul.f32 %v3041_v40, %v7201_v12 }
 0xc66   :  { %v3047_v18 = vsub.f32 %v7667_v33, %v3045_v4  ;;  %v8250_v4 = vld [vmem:[#allocation17_spill] sm:$0xff] }
 0xc68   :  { %v3049_v11 = vmul.f32 %v3047_v18, %v3047_v18 }
 0xc6a   :  { %v3051_v63 = vsel %vm112_vm0, %v3049_v11, 0.0  ;;  %v3129_v11 = vld [vmem:[%s8239_s4 + $0x38] sm:$0xff] }
 0xc6b   :  { %3052 = vadd.xlane.f32.xlu0 %v3051_v63  ;;  %v3044_v60 = vpop.xlane.xlu2 %3043  ;;  %v3156_v63 = vand.u32 4294901760, %v3129_v11 }
 0xc6c   :  { %v3046_v7 = vmul.f32 %v3044_v60, %v7201_v12 }
 0xc6d   :  { %v3198_v60 = vsub.f32 %v3129_v11, %v3156_v63 }
 0xc6e   :  { %v7680_v61 = vsub.f32 %v7671_v50, %v3046_v7  ;;  %v7699_v7 = vld [vmem:[%s8239_s4 + $0x20] sm:$0xff] }
 0xc70   :  { %v3050_v20 = vmul.f32 %v7680_v61, %v7680_v61 }
 0xc72   :  { %v3054_v13 = vsel %vm112_vm0, %v3050_v20, 0.0 }
 0xc73   :  { %3055 = vadd.xlane.f32.xlu1 %v3054_v13  ;;  %v3199_v13 = vand.u32 4294901760, %v3198_v60 }
 0xcde   :  { %v3053_v14 = vpop.xlane.xlu0 %3052 }
 0xcdf   :  { %v3057_v62 = vmul.f32 %v3053_v14, %v7215_v29  ;;  %v3158_v14 = vand.u32 4294901760, %v7699_v7 }
 0xce1   :  { %6891 = vrsqrt.f32 %v3057_v62  ;;  %vm3066_vm8 = vcmp.eq.f32.partialorder %v3057_v62, inf  ;;  %v3069_v45 = vand.u32 2147483648, %v3057_v62  ;;  %vm3068_vm9 = vcmp.eq.f32.partialorder %v3057_v62, 0.0 }
 0xce6   :  { %v3056_v19 = vpop.xlane.xlu1 %3055 }
 0xce7   :  { %v6892_v23 = vpop.eup %6891  ;;  %v3058_v21 = vmul.f32 %v3056_v19, %v7215_v29  ;;  %v7711_v19 = vld [vmem:[%s8239_s4 + $0x8] sm:$0xff] }
 0xce8   :  { %v3060_v44 = vmul.f32 %v6892_v23, %v3057_v62 }
 0xce9   :  { %6893 = vrsqrt.f32 %v3058_v21  ;;  %vm3078_vm10 = vcmp.eq.f32.partialorder %v3058_v21, inf  ;;  %v3081_v30 = vand.u32 2147483648, %v3058_v21  ;;  %vm3080_vm11 = vcmp.eq.f32.partialorder %v3058_v21, 0.0 }
 0xcea   :  { %v3061_v46 = vmul.f32 %v6892_v23, %v3060_v44  ;;  %v3200_v44 = vsub.f32 %v3198_v60, %v3199_v13 }
 0xcec   :  { %v3062_v9 = vmul.f32 0.5, %v3061_v46  ;;  %v3204_v46 = vsub.f32 %v7699_v7, %v3158_v14 }
 0xcee   :  { %v3063_v49 = vsub.f32 1.5, %v3062_v9 }
 0xcef   :  { %v6894_v6 = vpop.eup %6893 }
 0xcf0   :  { %v3064_v24 = vmul.f32 %v6892_v23, %v3063_v49  ;;  %v3072_v26 = vmul.f32 %v6894_v6, %v3058_v21  ;;  %v3160_v23 = vand.u32 4294901760, %v7711_v19 }
 0xcf2   :  { %v3065_v31 = vmul.f32 %v3064_v24, %v3057_v62  ;;  %v3073_v59 = vmul.f32 %v6894_v6, %v3072_v26  ;;  %v3210_v49 = vsub.f32 %v7711_v19, %v3160_v23  ;;  %v3201_v24 = vand.u32 4294901760, %v3200_v44 }
 0xcf4   :  { %v3074_v27 = vmul.f32 0.5, %v3073_v59  ;;  %v3067_v8 = vsel %vm3066_vm8, %v3057_v62, %v3065_v31 }
 0xcf5   :  { %v3070_v3 = vsel %vm3068_vm9, %v3069_v45, %v3067_v8  ;;  %v3205_v45 = vand.u32 4294901760, %v3204_v46  ;;  %v3211_v8 = vand.u32 4294901760, %v3210_v49 }
 0xcf6   :  { %v3075_v17 = vsub.f32 1.5, %v3074_v27  ;;  %v3083_v10 = vadd.f32 1e-06, %v3070_v3 }
 0xcf7   :  { %v3206_v27 = vsub.f32 %v3204_v46, %v3205_v45 }
 0xcf8   :  { %v3076_v55 = vmul.f32 %v6894_v6, %v3075_v17  ;;  %6895 = vrcp.f32 %v3083_v10  ;;  %v3096_v34 = vand.u32 2147483648, %v3083_v10  ;;  %v3094_v1 = vand.u32 2147483647, %v3083_v10 }
 0xcf9   :  { %vm3090_vm13 = vweird.f32 %v3083_v10  ;;  %v3207_v3 = vand.u32 4294901760, %v3206_v27  ;;  %v3212_v17 = vsub.f32 %v3210_v49, %v3211_v8 }
 0xcfa   :  { %v3077_v38 = vmul.f32 %v3076_v55, %v3058_v21  ;;  %v3097_v39 = vor.u32 1.1754944e-38, %v3096_v34  ;;  %vm3095_vm2 = vcmp.eq.f32.partialorder %v3094_v1, 8.507059e+37 }
 0xcfc   :  { %v3079_v28 = vsel %vm3078_vm10, %v3058_v21, %v3077_v38 }
 0xcfd   :  { %v3082_v42 = vsel %vm3080_vm11, %v3081_v30, %v3079_v28 }
 0xcfe   :  { %v6896_v47 = vpop.eup %6895  ;;  %v3084_v25 = vadd.f32 1e-06, %v3082_v42 }
 0xcff   :  { %v3086_v22 = vmul.f32 %v6896_v47, %v3083_v10  ;;  %vm3091_vm12 = vweird.f32 %v6896_v47  ;;  %v3213_v10 = vand.u32 4294901760, %v3212_v17 }
 0xd00   :  { %6897 = vrcp.f32 %v3084_v25  ;;  %vm3092_vm14 = vmor %vm3090_vm13, %vm3091_vm12  ;;  %v3110_v15 = vand.u32 2147483648, %v3084_v25  ;;  %v3108_v51 = vand.u32 2147483647, %v3084_v25  ;;  %vm3104_vm4 = vweird.f32 %v3084_v25 }
 0xd01   :  { %v3087_v5 = vsub.f32 1.0, %v3086_v22 }
 0xd02   :  { %v3111_v53 = vor.u32 1.1754944e-38, %v3110_v15  ;;  %vm3109_vm6 = vcmp.eq.f32.partialorder %v3108_v51, 8.507059e+37 }
 0xd03   :  { %v3088_v0 = vmul.f32 %v6896_v47, %v3087_v5 }
 0xd05   :  { %v3089_v43 = vadd.f32 %v6896_v47, %v3088_v0 }
 0xd06   :  { %v6898_v16 = vpop.eup %6897 }
 0xd07   :  { %v3093_v2 = vsel %vm3092_vm14, %v6896_v47, %v3089_v43  ;;  %v3100_v58 = vmul.f32 %v6898_v16, %v3084_v25  ;;  %vm3105_vm3 = vweird.f32 %v6898_v16 }
 0xd08   :  { %v3098_v32 = vsel %vm3095_vm2, %v3097_v39, %v3093_v2  ;;  %vm3106_vm5 = vmor %vm3104_vm4, %vm3105_vm3 }
 0xd09   :  { %v3113_v48 = vmul.f32 %v3098_v32, %v3047_v18  ;;  %v3101_v41 = vsub.f32 1.0, %v3100_v58  ;;  %v106_v32 = vld [vmem:[#allocation5 + $0x8] sm:$0xff] }
 0xd0b   :  { %3117 = vrot.lane.b32.xlu2 %v3113_v48, %s7113_s11  ;;  %v3102_v35 = vmul.f32 %v6898_v16, %v3101_v41 }
 0xd0d   :  { %v3103_v52 = vadd.f32 %v6898_v16, %v3102_v35 }
 0xd0f   :  { %v3107_v56 = vsel %vm3106_vm5, %v6898_v16, %v3103_v52  ;;  %v105_v16 = vld [vmem:[#allocation5] sm:$0xff] }
 0xd10   :  { %v3112_v37 = vsel %vm3109_vm6, %v3111_v53, %v3107_v56  ;;  %v3379_v39 = vsel %vm112_vm0, %v105_v16, 0  ;;  %v3382_v53 = vsel %vm112_vm0, %v106_v32, 0 }
 0xd11   :  { %v3114_v54 = vmul.f32 %v3112_v37, %v7680_v61  ;;  %v3130_v61 = vld [vmem:[%s8239_s4 + $0x50] sm:$0xff]  ;;  %v7733_v2 = vand.u32 4294901760, %v3379_v39 }
 0xd12   :  { %v3154_v20 = vand.u32 4294901760, %v3130_v61 }
 0xd13   :  { %3119 = vrot.lane.b32.xlu0 %v3114_v54, %s7113_s11  ;;  %3368 = vrot.lane.b32.xlu2 %v3130_v61, %s7111_s6  ;;  %v7737_v51 = vsub.f32 %v3379_v39, %v7733_v2  ;;  %v6945_v54 = vld [vmem:[#allocation10] sm:$0xff] }
 0xd14   :  { %v3192_v62 = vsub.f32 %v3130_v61, %v3154_v20  ;;  %3272 = vmatpush.msra.mxu1 %v3154_v20  ;;  %3155 = vmatpush.msra.mxu2 %v3154_v20 }
 0xd16   :  { %v3193_v21 = vand.u32 4294901760, %v3192_v62  ;;  %3238 = vmatpush.msra.mxu0 %v3192_v62  ;;  %3274 = vmatpush.msra.mxu1 %v3156_v63 }
 0xd17   :  { %3157 = vmatpush.msra.mxu2 %v3156_v63 }
 0xd18   :  { %v3194_v9 = vsub.f32 %v3192_v62, %v3193_v21  ;;  %3241 = vmatpush.msra.mxu0 %v3198_v60  ;;  %3276 = vmatpush.msra.mxu1 %v3158_v14 }
 0xd19   :  { %3159 = vmatpush.msra.mxu2 %v3158_v14 }
 0xd1a   :  { %v3195_v6 = vand.u32 4294901760, %v3194_v9  ;;  %3244 = vmatpush.msra.mxu0 %v3204_v46  ;;  %3278 = vmatpush.msra.mxu1 %v3160_v23 }
 0xd1b   :  { %3362 = vrot.lane.b32.xlu2 %v7711_v19, %s7111_s6  ;;  %3161 = vmatpush.msra.mxu2 %v3160_v23 }
 0xd1c   :  { %3196 = vmatpush.msra.mxu3 %v3195_v6  ;;  %3247 = vmatpush.msra.mxu0 %v3210_v49 }
 0xd1d   :  { %3307 = vmatpush.msrb.mxu2 %v3193_v21 }
 0xd1e   :  { %3202 = vmatpush.msra.mxu3 %v3201_v24 }
 0xd1f   :  { %3311 = vmatpush.msrb.mxu2 %v3199_v13 }
 0xd20   :  { %3208 = vmatpush.msra.mxu3 %v3207_v3 }
 0xd21   :  { %3315 = vmatpush.msrb.mxu2 %v3205_v45 }
 0xd22   :  { %3214 = vmatpush.msra.mxu3 %v3213_v10 }
 0xd23   :  { %3319 = vmatpush.msrb.mxu2 %v3211_v8 }
 0xd24   :  { %3342 = vmatpush.msrb.mxu3 %v3154_v20 }
 0xd26   :  { %3344 = vmatpush.msrb.mxu3 %v3156_v63 }
 0xd28   :  { %3346 = vmatpush.msrb.mxu3 %v3158_v14 }
 0xd2a   :  { %3348 = vmatpush.msrb.mxu3 %v3160_v23 }
 0xd65   :  { %v3118_v57 = vpop.permute.xlu2 %3117 }
 0xd66   :  { %v3123_v40 = vmul.f32 %v3118_v57, %v8249_v36  ;;  %v7740_v57 = vperm.slane %v6945_v54, 1 }
 0xd68   :  { %v3125_v18 = vadd.f32 %v3123_v40, %v8250_v4  ;;  %v3406_v40 = vand.u32 4294901760, %v7737_v51 }
 0xd6a   :  { %3134 = vrot.lane.b32.xlu1 %v3125_v18, %s7113_s11  ;;  %v3407_v13 = vsub.f32 %v7737_v51, %v3406_v40 }
 0xd6c   :  { %v3408_v9 = vand.u32 4294901760, %v3407_v13 }
 0xd6d   :  { %v3369_v42 = vpop.permute.xlu2 %3368 }
 0xd6e   :  { %v7727_v47 = vand.u32 4294901760, %v3369_v42 }
 0xd70   :  { %v3434_v22 = vsub.f32 %v3369_v42, %v7727_v47  ;;  %3397 = vmatpush.msrb.mxu0 %v7727_v47 }
 0xd72   :  { %3364 = vrot.lane.b32.xlu1 %v7699_v7, %s7111_s6  ;;  %v3435_v34 = vand.u32 4294901760, %v3434_v22 }
 0xd74   :  { %v3436_v1 = vsub.f32 %v3434_v22, %v3435_v34 }
 0xd75   :  { %v3363_v41 = vpop.permute.xlu2 %3362 }
 0xd76   :  { %v3437_v43 = vand.u32 4294901760, %v3436_v1  ;;  %v3402_v56 = vand.u32 4294901760, %v3363_v41 }
 0xd78   :  { %3438 = vmatpush.msrb.mxu1 %v3437_v43 }
 0xd85   :  { %v3120_v26 = vpop.permute.xlu0 %3119 }
 0xd86   :  { %v3124_v31 = vmul.f32 %v3120_v26, %v8249_v36 }
 0xd88   :  { %v3126_v59 = vadd.f32 %v3124_v31, %v8250_v4  ;;  %v3412_v4 = vand.u32 4294901760, %v3382_v53 }
 0xd8a   :  { %3136 = vrot.lane.b32.xlu0 %v3126_v59, %s7113_s11  ;;  %v3413_v14 = vsub.f32 %v3382_v53, %v3412_v4 }
 0xd8c   :  { %v3414_v49 = vand.u32 4294901760, %v3413_v14 }
 0xd8e   :  { %v3415_v59 = vsub.f32 %v3413_v14, %v3414_v49 }
 0xd90   :  { %v3416_v27 = vand.u32 4294901760, %v3415_v59 }
 0xd92   :  { %3366 = vrot.lane.b32.xlu0 %v3129_v11, %s7111_s6  ;;  %v3452_v11 = vsub.f32 %v3363_v41, %v3402_v56 }
 0xd94   :  { %v3453_v21 = vand.u32 4294901760, %v3452_v11 }
 0xd96   :  { %v3454_v24 = vsub.f32 %v3452_v11, %v3453_v21 }
 0xd98   :  { %v3455_v45 = vand.u32 4294901760, %v3454_v24 }
 0xd9a   :  { %3375 = vrot.lane.b32.xlu0 %v7740_v57, %s7111_s6 }
 0xddc   :  { %v3135_v55 = vpop.permute.xlu1 %3134 }
 0xddd   :  { %v3138_v38 = vsel %vm112_vm0, %v3135_v55, 0 }
 0xdde   :  { %v7723_v30 = vand.u32 4294901760, %v3138_v38 }
 0xde0   :  { %v3163_v28 = vsub.f32 %v3138_v38, %v7723_v30  ;;  %3216 = vmatmul.f32.vlgmr.msra.gmra.mxu3 %v7723_v30 }
 0xde1   :  { %3514 = vmatpush.msra.mxu3 %v7727_v47 }
 0xde2   :  { %v3164_v25 = vand.u32 4294901760, %v3163_v28  ;;  %3250 = vmatmul.f32.vlgmr.msra.gmra.mxu0 %v3163_v28 }
 0xde4   :  { %v3165_v5 = vsub.f32 %v3163_v28, %v3164_v25  ;;  %3282 = vmatmul.f32.vlgmr.msra.gmra.mxu1 %v3164_v25  ;;  %v3365_v58 = vpop.permute.xlu1 %3364 }
 0xde5   :  { %v3400_v35 = vand.u32 4294901760, %v3365_v58 }
 0xde6   :  { %v3166_v0 = vand.u32 4294901760, %v3165_v5 }
 0xde7   :  { %v3446_v36 = vsub.f32 %v3365_v58, %v3400_v35 }
 0xde8   :  { %3167 = vmatmul.f32.vlgmr.msra.gmra.mxu2 %v3166_v0 }
 0xde9   :  { %3480 = vmatpush.msra.mxu2 %v3434_v22  ;;  %v3447_v20 = vand.u32 4294901760, %v3446_v36 }
 0xdeb   :  { %v3448_v46 = vsub.f32 %v3446_v36, %v3447_v20 }
 0xded   :  { %v3449_v31 = vand.u32 4294901760, %v3448_v46 }
 0xdfc   :  { %v3137_v48 = vpop.permute.xlu0 %3136 }
 0xdfd   :  { %v3140_v15 = vsel %vm112_vm0, %v3137_v48, 0 }
 0xdfe   :  { %v3170_v52 = vand.u32 4294901760, %v3140_v15 }
 0xe00   :  { %v3171_v37 = vsub.f32 %v3140_v15, %v3170_v52  ;;  %3220 = vmatmul.f32.gmra.mxu3 %v3170_v52 }
 0xe02   :  { %3255 = vmatmul.f32.gmra.mxu0 %v3171_v37  ;;  %v3172_v18 = vand.u32 4294901760, %v3171_v37 }
 0xe04   :  { %v3367_v63 = vpop.permute.xlu0 %3366  ;;  %3288 = vmatmul.f32.gmra.mxu1 %v3172_v18  ;;  %v3173_v60 = vsub.f32 %v3171_v37, %v3172_v18 }
 0xe05   :  { %v3398_v61 = vand.u32 4294901760, %v3367_v63 }
 0xe06   :  { %v3174_v62 = vand.u32 4294901760, %v3173_v60 }
 0xe07   :  { %v3440_v23 = vsub.f32 %v3367_v63, %v3398_v61  ;;  %3399 = vmatpush.msrb.mxu0 %v3398_v61  ;;  %3516 = vmatpush.msra.mxu3 %v3398_v61 }
 0xe08   :  { %3175 = vmatmul.f32.gmra.mxu2 %v3174_v62  ;;  %3350 = vmatmul.f32.vlgmr.msrb.gmra.mxu3 %v7723_v30 }
 0xe09   :  { %v3441_v44 = vand.u32 4294901760, %v3440_v23  ;;  %3401 = vmatpush.msrb.mxu0 %v3400_v35  ;;  %3483 = vmatpush.msra.mxu2 %v3440_v23 }
 0xe0a   :  { %3518 = vmatpush.msra.mxu3 %v3400_v35 }
 0xe0b   :  { %3403 = vmatpush.msrb.mxu0 %v3402_v56  ;;  %v3442_v6 = vsub.f32 %v3440_v23, %v3441_v44  ;;  %3486 = vmatpush.msra.mxu2 %v3446_v36 }
 0xe0c   :  { %3520 = vmatpush.msra.mxu3 %v3402_v56  ;;  %3409 = vmatmul.f32.vlgmr.msrb.gmra.mxu0 %v3408_v9  ;;  %v3376_v43 = vpop.permute.xlu0 %3375 }
 0xe0d   :  { %3549 = vmatpush.msra.mxu0 %v3435_v34  ;;  %v3443_v26 = vand.u32 4294901760, %v3442_v6  ;;  %3489 = vmatpush.msra.mxu2 %v3452_v11 }
 0xe0f   :  { %3553 = vmatpush.msra.mxu0 %v3441_v44  ;;  %3444 = vmatpush.msrb.mxu1 %v3443_v26 }
 0xe10   :  { %3321 = vmatmul.f32.vlgmr.msrb.gmra.mxu2 %v7723_v30  ;;  %3354 = vmatmul.f32.gmra.mxu3 %v3170_v52 }
 0xe11   :  { %3450 = vmatpush.msrb.mxu1 %v3449_v31  ;;  %3557 = vmatpush.msra.mxu0 %v3447_v20 }
 0xe13   :  { %3456 = vmatpush.msrb.mxu1 %v3455_v45  ;;  %3561 = vmatpush.msra.mxu0 %v3453_v21 }
 0xe14   :  { %3458 = vmatmul.f32.vlgmr.msrb.gmra.mxu1 %v7733_v2  ;;  %3417 = vmatmul.f32.gmra.mxu0 %v3416_v27 }
 0xe15   :  { %3584 = vmatpush.msra.mxu1 %v7727_v47 }
 0xe17   :  { %3586 = vmatpush.msra.mxu1 %v3398_v61 }
 0xe18   :  { %3325 = vmatmul.f32.gmra.mxu2 %v3170_v52  ;;  %3524 = vmatmul.f32.vlgmr.msra.gmra.mxu3 %v3406_v40 }
 0xe19   :  { %3588 = vmatpush.msra.mxu1 %v3400_v35 }
 0xe1b   :  { %3590 = vmatpush.msra.mxu1 %v3402_v56 }
 0xe1c   :  { %3462 = vmatmul.f32.gmra.mxu1 %v3412_v4  ;;  %3563 = vmatmul.f32.vlgmr.msra.gmra.mxu0 %v7733_v2 }
 0xe20   :  { %3492 = vmatmul.f32.vlgmr.msra.gmra.mxu2 %v7737_v51  ;;  %3530 = vmatmul.f32.gmra.mxu3 %v3414_v49 }
 0xe24   :  { %3592 = vmatmul.f32.vlgmr.msra.gmra.mxu1 %v7733_v2  ;;  %3567 = vmatmul.f32.gmra.mxu0 %v3412_v4 }
 0xe28   :  { %3497 = vmatmul.f32.gmra.mxu2 %v3413_v14 }
 0xe2c   :  { %3596 = vmatmul.f32.gmra.mxu1 %v3412_v4 }
 0xe5f   :  { %v3251_v3 = vpop.f32.mrf.mxu0 }
 0xe61   :  { %v3283_v17 = vpop.f32.mrf.mxu1 }
 0xe63   :  { %v3217_v8 = vpop.f32.mrf.mxu3 }
 0xe6b   :  { %v3168_v10 = vpop.f32.mrf.mxu2 }
 0xe6c   :  { %v3169_v22 = vadd.f32 %v3168_v10, %v7740_v57 }
 0xe6e   :  { %v3218_v34 = vadd.f32 %v3217_v8, %v3169_v22 }
 0xe70   :  { %v3252_v39 = vadd.f32 %v3251_v3, %v3218_v34 }
 0xe72   :  { %v3284_v41 = vadd.f32 %v3283_v17, %v3252_v39 }
 0xe7f   :  { %v3256_v38 = vpop.f32.mrf.mxu0 }
 0xe81   :  { %v3289_v30 = vpop.f32.mrf.mxu1 }
 0xe83   :  { %v3221_v55 = vpop.f32.mrf.mxu3 }
 0xe89   :  { %v3410_v47 = vpop.f32.mrf.mxu0 }
 0xe8a   :  { %v3411_v32 = vadd.f32 %v3410_v47, %v3376_v43 }
 0xe8b   :  { %v3176_v28 = vpop.f32.mrf.mxu2  ;;  %v3351_v42 = vpop.f32.mrf.mxu3 }
 0xe8c   :  { %v3177_v16 = vadd.f32 %v3176_v28, %v7740_v57 }
 0xe8e   :  { %v3222_v48 = vadd.f32 %v3221_v55, %v3177_v16 }
 0xe90   :  { %v3257_v52 = vadd.f32 %v3256_v38, %v3222_v48 }
 0xe91   :  { %v3459_v25 = vpop.f32.mrf.mxu1  ;;  %v3418_v1 = vpop.f32.mrf.mxu0 }
 0xe92   :  { %v3460_v51 = vadd.f32 %v3459_v25, %v3411_v32  ;;  %v3419_v40 = vadd.f32 %v3418_v1, %v3376_v43  ;;  %v3290_v18 = vadd.f32 %v3289_v30, %v3257_v52 }
 0xe93   :  { %v3322_v5 = vpop.f32.mrf.mxu2  ;;  %v3355_v0 = vpop.f32.mrf.mxu3 }
 0xe94   :  { %v3323_v15 = vadd.f32 %v3322_v5, %v3284_v41 }
 0xe96   :  { %v7755_v54 = vadd.f32 %v3351_v42, %v3323_v15 }
 0xe98   :  { %v3601_v63 = vsel %vm445_vm15, %v7755_v54, 0 }
 0xe99   :  { %v3463_v58 = vpop.f32.mrf.mxu1  ;;  %v3564_v56 = vpop.f32.mrf.mxu0  ;;  %v3630_v62 = vand.u32 4294901760, %v3601_v63 }
 0xe9a   :  { %v3464_v61 = vadd.f32 %v3463_v58, %v3419_v40  ;;  %v7773_v40 = vld [vmem:[#allocation8] sm:$0xff] }
 0xe9b   :  { %v3326_v2 = vpop.f32.mrf.mxu2  ;;  %v3525_v35 = vpop.f32.mrf.mxu3  ;;  %v3631_v6 = vsub.f32 %v3601_v63, %v3630_v62 }
 0xe9c   :  { %v3327_v60 = vadd.f32 %v3326_v2, %v3290_v18 }
 0xe9d   :  { %v3632_v27 = vand.u32 4294901760, %v3631_v6 }
 0xe9e   :  { %v7763_v21 = vadd.f32 %v3355_v0, %v3327_v60 }
 0xe9f   :  { %v3633_v55 = vsub.f32 %v3631_v6, %v3632_v27 }
 0xea0   :  { %v3604_v31 = vsel %vm445_vm15, %v7763_v21, 0 }
 0xea1   :  { %v3593_v36 = vpop.f32.mrf.mxu1  ;;  %v3568_v44 = vpop.f32.mrf.mxu0  ;;  %v3638_v8 = vand.u32 4294901760, %v3604_v31  ;;  %v3634_v47 = vand.u32 4294901760, %v3633_v55 }
 0xea3   :  { %v3493_v53 = vpop.f32.mrf.mxu2  ;;  %v3531_v14 = vpop.f32.mrf.mxu3  ;;  %v3639_v38 = vsub.f32 %v3604_v31, %v3638_v8 }
 0xea4   :  { %v3494_v37 = vadd.f32 %v3493_v53, %v3460_v51 }
 0xea5   :  { %v3640_v25 = vand.u32 4294901760, %v3639_v38 }
 0xea6   :  { %v3526_v4 = vadd.f32 %v3525_v35, %v3494_v37 }
 0xea7   :  { %v3641_v34 = vsub.f32 %v3639_v38, %v3640_v25 }
 0xea8   :  { %v3565_v11 = vadd.f32 %v3564_v56, %v3526_v4 }
 0xea9   :  { %v3597_v49 = vpop.f32.mrf.mxu1  ;;  %v3642_v1 = vand.u32 4294901760, %v3641_v34 }
 0xeaa   :  { %v7759_v20 = vadd.f32 %v3593_v36, %v3565_v11 }
 0xeab   :  { %v3498_v13 = vpop.f32.mrf.mxu2 }
 0xeac   :  { %v3499_v23 = vadd.f32 %v3498_v13, %v3464_v61  ;;  %3854 = vrot.lane.b32.xlu0 %v7759_v20, %s7111_s6  ;;  %v3607_v9 = vsel %vm445_vm15, %v7759_v20, 0 }
 0xead   :  { %v3628_v26 = vand.u32 4294901760, %v3607_v9 }
 0xeae   :  { %v3532_v46 = vadd.f32 %v3531_v14, %v3499_v23  ;;  %v7777_v23 = vld [vmem:[#allocation8 + $0x8] sm:$0xff] }
 0xeaf   :  { %v3668_v17 = vsub.f32 %v3607_v9, %v3628_v26 }
 0xeb0   :  { %v3569_v24 = vadd.f32 %v3568_v44, %v3532_v46 }
 0xeb1   :  { %v3669_v28 = vand.u32 4294901760, %v3668_v17 }
 0xeb2   :  { %v7769_v59 = vadd.f32 %v3597_v49, %v3569_v24 }
 0xeb3   :  { %v3670_v5 = vsub.f32 %v3668_v17, %v3669_v28 }
 0xeb4   :  { %v3610_v45 = vsel %vm445_vm15, %v7769_v59, 0 }
 0xeb5   :  { %v3626_v3 = vand.u32 4294901760, %v3610_v45  ;;  %v3671_v0 = vand.u32 4294901760, %v3670_v5 }
 0xeb7   :  { %3627 = vmatpush.xpose.msrb.mxu2 %v3626_v3  ;;  %3728 = vmatpush.xpose.msrb.mxu1 %v3626_v3  ;;  %v3662_v10 = vsub.f32 %v3610_v45, %v3626_v3 }
 0xeb9   :  { %3698 = vmatpush.xpose.msrb.mxu0 %v3662_v10  ;;  %v3663_v30 = vand.u32 4294901760, %v3662_v10 }
 0xebb   :  { %3629 = vmatpush.xpose.msrb.mxu2 %v3628_v26  ;;  %3730 = vmatpush.xpose.msrb.mxu1 %v3628_v26  ;;  %v3664_v42 = vsub.f32 %v3662_v10, %v3663_v30 }
 0xebd   :  { %3701 = vmatpush.xpose.msrb.mxu0 %v3668_v17  ;;  %v3665_v22 = vand.u32 4294901760, %v3664_v42 }
 0xebe   :  { %3635 = vmatmul.f32.vlgmr.msrb.gmra.mxu2 %v3634_v47  ;;  %3734 = vmatmul.f32.vlgmr.msrb.gmra.mxu1 %v3632_v27 }
 0xebf   :  { %3761 = vmatpush.xpose.msra.mxu2 %v3663_v30  ;;  %3666 = vmatpush.xpose.msrb.mxu3 %v3665_v22 }
 0xec0   :  { %3704 = vmatmul.f32.vlgmr.msrb.gmra.mxu0 %v3631_v6 }
 0xec3   :  { %3765 = vmatpush.xpose.msra.mxu2 %v3669_v28  ;;  %3672 = vmatpush.xpose.msrb.mxu3 %v3671_v0 }
 0xec6   :  { %3643 = vmatmul.f32.gmra.mxu2 %v3642_v1  ;;  %3674 = vmatmul.f32.vlgmr.msrb.gmra.mxu3 %v3630_v62 }
 0xec7   :  { %3790 = vmatpush.xpose.msra.mxu3 %v3626_v3  ;;  %3740 = vmatmul.f32.gmra.mxu1 %v3640_v25 }
 0xec8   :  { %3709 = vmatmul.f32.gmra.mxu0 %v3639_v38 }
 0xecb   :  { %3792 = vmatpush.xpose.msra.mxu3 %v3628_v26 }
 0xece   :  { %3678 = vmatmul.f32.gmra.mxu3 %v3638_v8  ;;  %3767 = vmatmul.f32.vlgmr.msra.gmra.mxu2 %v3630_v62 }
 0xed6   :  { %3771 = vmatmul.f32.gmra.mxu2 %v3638_v8  ;;  %3794 = vmatmul.f32.vlgmr.msra.gmra.mxu3 %v3630_v62 }
 0xede   :  { %3798 = vmatmul.f32.gmra.mxu3 %v3638_v8 }
 0xf1e   :  { %v3855_v3 = vpop.permute.xlu0 %3854 }
 0xf1f   :  { %v3882_v30 = vand.u32 4294901760, %v3855_v3 }
 0xf21   :  { %v3922_v25 = vsub.f32 %v3855_v3, %v3882_v30 }
 0xf23   :  { %v3923_v1 = vand.u32 4294901760, %v3922_v25 }
 0xf3b   :  { %v3735_v41 = vpop.f32.mrf.mxu1 }
 0xf3d   :  { %v3705_v58 = vpop.f32.mrf.mxu0 }
 0xf41   :  { %v3636_v43 = vpop.f32.mrf.mxu2 }
 0xf44   :  { %v3741_v18 = vpop.f32.mrf.mxu1 }
 0xf45   :  { %v3710_v53 = vpop.f32.mrf.mxu0 }
 0xf49   :  { %v3644_v16 = vpop.f32.mrf.mxu2  ;;  %v3675_v39 = vpop.f32.mrf.mxu3 }
 0xf4a   :  { %v3676_v2 = vadd.f32 %v3675_v39, %v3636_v43 }
 0xf4c   :  { %v3706_v48 = vadd.f32 %v3705_v58, %v3676_v2  ;;  %v3924_v2 = vsub.f32 %v3922_v25, %v3923_v1 }
 0xf4e   :  { %v3736_v51 = vadd.f32 %v3735_v41, %v3706_v48 }
 0xf51   :  { %v3679_v32 = vpop.f32.mrf.mxu3  ;;  %v3768_v15 = vpop.f32.mrf.mxu2 }
 0xf52   :  { %v3680_v35 = vadd.f32 %v3679_v32, %v3644_v16  ;;  %v3769_v52 = vadd.f32 %v3768_v15, %v3736_v51  ;;  %v3925_v15 = vand.u32 4294901760, %v3924_v2 }
 0xf54   :  { %v3711_v37 = vadd.f32 %v3710_v53, %v3680_v35 }
 0xf56   :  { %v3742_v63 = vadd.f32 %v3741_v18, %v3711_v37 }
 0xf59   :  { %v3795_v56 = vpop.f32.mrf.mxu3  ;;  %v3772_v11 = vpop.f32.mrf.mxu2 }
 0xf5a   :  { %v3796_v36 = vadd.f32 %v3795_v56, %v3769_v52  ;;  %v3773_v61 = vadd.f32 %v3772_v11, %v3742_v63 }
 0xf5c   :  { %v3802_v4 = vmul.f32 0.35355338, %v3796_v36 }
 0xf5e   :  { %v3804_v60 = vadd.f32 %v3802_v4, %v7773_v40 }
 0xf60   :  { %v3806_v13 = vsel %vm648_vm1, %v3804_v60, -inf }
 0xf61   :  { %v3799_v14 = vpop.f32.mrf.mxu3  ;;  %3807 = vmax.xlane.f32.xlu1 %v3806_v13 }
 0xf62   :  { %v3800_v62 = vadd.f32 %v3799_v14, %v3773_v61 }
 0xf64   :  { %v3803_v44 = vmul.f32 0.35355338, %v3800_v62 }
 0xf66   :  { %v3805_v46 = vadd.f32 %v3803_v44, %v7777_v23 }
 0xf68   :  { %v3809_v9 = vsel %vm648_vm1, %v3805_v46, -inf }
 0xf69   :  { %3810 = vmax.xlane.f32.xlu2 %v3809_v9 }
 0xf7a   :  { %3856 = vrot.lane.b32.xlu1 %v7769_v59, %s7111_s6 }
 0xf81   :  { %4062 = vrot.lane.b32.xlu2 %v7769_v59, %s7115_s13 }
 0xf82   :  { %4060 = vrot.lane.b32.xlu1 %v7759_v20, %s7115_s13 }
 0xfd4   :  { %v3808_v49 = vpop.xlane.xlu1 %3807 }
 0xfd5   :  { %v3812_v6 = vsub.f32 %v3804_v60, %v3808_v49 }
 0xfd7   :  { %v3814_v24 = vmul.f32 1.442695, %v3812_v6 }
 0xfd9   :  { %6899 = vpow2.f32 %v3814_v24 }
 0xfdc   :  { %v3811_v26 = vpop.xlane.xlu2 %3810 }
 0xfdd   :  { %v3813_v31 = vsub.f32 %v3805_v46, %v3811_v26 }
 0xfdf   :  { %v7787_v45 = vpop.eup %6899  ;;  %v3816_v27 = vmul.f32 1.442695, %v3813_v31 }
 0xfe0   :  { %v3818_v8 = vsel %vm648_vm1, %v7787_v45, 0.0 }
 0xfe1   :  { %6901 = vpow2.f32 %v3816_v27  ;;  %3819 = vadd.xlane.f32.xlu0 %v3818_v8 }
 0xfe4   :  { %v4063_v17 = vpop.permute.xlu2 %4062 }
 0xfe5   :  { %v4070_v10 = vsel %vm445_vm15, %v4063_v17, 0 }
 0xfe6   :  { %v7792_v55 = vand.u32 4294901760, %v4070_v10 }
 0xfe7   :  { %v7794_v38 = vpop.eup %6901 }
 0xfe8   :  { %v7797_v28 = vsub.f32 %v4070_v10, %v7792_v55  ;;  %v3821_v42 = vsel %vm648_vm1, %v7794_v38, 0.0 }
 0xfe9   :  { %3822 = vadd.xlane.f32.xlu2 %v3821_v42 }
 0xfea   :  { %v4123_v47 = vand.u32 4294901760, %v7797_v28 }
 0xfec   :  { %v3857_v22 = vpop.permute.xlu1 %3856  ;;  %v4124_v5 = vsub.f32 %v7797_v28, %v4123_v47 }
 0xfed   :  { %v3880_v34 = vand.u32 4294901760, %v3857_v22 }
 0xfee   :  { %v4125_v43 = vand.u32 4294901760, %v4124_v5 }
 0xfef   :  { %v3916_v0 = vsub.f32 %v3857_v22, %v3880_v34  ;;  %3881 = vmatpush.msra.mxu0 %v3880_v34  ;;  %3982 = vmatpush.msrb.mxu3 %v3880_v34 }
 0xff1   :  { %v3917_v16 = vand.u32 4294901760, %v3916_v0  ;;  %3883 = vmatpush.msra.mxu0 %v3882_v30  ;;  %3952 = vmatpush.msrb.mxu2 %v3916_v0 }
 0xff2   :  { %3984 = vmatpush.msrb.mxu3 %v3882_v30 }
 0xff3   :  { %v3918_v39 = vsub.f32 %v3916_v0, %v3917_v16  ;;  %3955 = vmatpush.msrb.mxu2 %v3922_v25  ;;  %4015 = vmatpush.msrb.mxu0 %v3917_v16 }
 0xff4   :  { %4126 = vmatpush.xpose.msra.mxu3 %v4125_v43  ;;  %v4061_v58 = vpop.permute.xlu1 %4060 }
 0xff5   :  { %4087 = vmatpush.xpose.msra.mxu2 %v7792_v55  ;;  %v3919_v32 = vand.u32 4294901760, %v3918_v39  ;;  %v4068_v48 = vsel %vm445_vm15, %v4061_v58, 0  ;;  %4056 = vrot.lane.b32.xlu0 %v7755_v54, %s7115_s13 }
 0xff6   :  { %v7809_v41 = vand.u32 4294901760, %v4068_v48  ;;  %4019 = vmatpush.msrb.mxu0 %v3923_v1 }
 0xff7   :  { %3920 = vmatpush.msra.mxu1 %v3919_v32 }
 0xff8   :  { %v7812_v35 = vsub.f32 %v4068_v48, %v7809_v41 }
 0xff9   :  { %4089 = vmatpush.xpose.msra.mxu2 %v7809_v41  ;;  %3926 = vmatpush.msra.mxu1 %v3925_v15 }
 0xffa   :  { %v4129_v51 = vand.u32 4294901760, %v7812_v35 }
 0xffb   :  { %4044 = vmatpush.msrb.mxu1 %v3880_v34 }
 0xffc   :  { %v4130_v52 = vsub.f32 %v7812_v35, %v4129_v51 }
 0xffd   :  { %4046 = vmatpush.msrb.mxu1 %v3882_v30 }
 0xffe   :  { %v4131_v53 = vand.u32 4294901760, %v4130_v52 }
0x1000   :  { %4132 = vmatpush.xpose.msra.mxu3 %v4131_v53 }
0x1001   :  { %4058 = vrot.lane.b32.xlu2 %v7763_v21, %s7115_s13 }
0x1054   :  { %v3820_v56 = vpop.xlane.xlu0 %3819 }
0x1055   :  { %6903 = vrcp.f32 %v3820_v56  ;;  %v3835_v11 = vand.u32 2147483648, %v3820_v56  ;;  %v3833_v60 = vand.u32 2147483647, %v3820_v56  ;;  %vm3829_vm8 = vweird.f32 %v3820_v56 }
0x1057   :  { %v3836_v14 = vor.u32 1.1754944e-38, %v3835_v11  ;;  %vm3834_vm10 = vcmp.eq.f32.partialorder %v3833_v60, 8.507059e+37 }
0x105b   :  { %v6904_v37 = vpop.eup %6903 }
0x105c   :  { %v3825_v36 = vmul.f32 %v6904_v37, %v3820_v56  ;;  %v3823_v4 = vpop.xlane.xlu2 %3822  ;;  %vm3830_vm7 = vweird.f32 %v6904_v37 }
0x105d   :  { %6905 = vrcp.f32 %v3823_v4  ;;  %vm3831_vm9 = vmor %vm3829_vm8, %vm3830_vm7  ;;  %v3847_v6 = vand.u32 2147483647, %v3823_v4  ;;  %v3849_v24 = vand.u32 2147483648, %v3823_v4  ;;  %vm3843_vm12 = vweird.f32 %v3823_v4 }
0x105e   :  { %v3826_v18 = vsub.f32 1.0, %v3825_v36 }
0x105f   :  { %v3850_v10 = vor.u32 1.1754944e-38, %v3849_v24  ;;  %vm3848_vm14 = vcmp.eq.f32.partialorder %v3847_v6, 8.507059e+37 }
0x1060   :  { %v3827_v63 = vmul.f32 %v6904_v37, %v3826_v18 }
0x1062   :  { %v3828_v61 = vadd.f32 %v6904_v37, %v3827_v63 }
0x1063   :  { %v6906_v13 = vpop.eup %6905 }
0x1064   :  { %v3832_v62 = vsel %vm3831_vm9, %v6904_v37, %v3828_v61  ;;  %v3839_v44 = vmul.f32 %v6906_v13, %v3823_v4  ;;  %vm3844_vm11 = vweird.f32 %v6906_v13  ;;  %v4059_v22 = vpop.permute.xlu2 %4058 }
0x1065   :  { %v3837_v46 = vsel %vm3834_vm10, %v3836_v14, %v3832_v62  ;;  %vm3845_vm13 = vmor %vm3843_vm12, %vm3844_vm11  ;;  %v4066_v43 = vsel %vm445_vm15, %v4059_v22, 0 }
0x1066   :  { %v3852_v9 = vmul.f32 %v7787_v45, %v3837_v46  ;;  %v3840_v49 = vsub.f32 1.0, %v3839_v44  ;;  %v4098_v58 = vand.u32 4294901760, %v4066_v43 }
0x1067   :  { %v4057_v26 = vpop.permute.xlu0 %4056 }
0x1068   :  { %v3841_v31 = vmul.f32 %v6906_v13, %v3840_v49  ;;  %v4064_v27 = vsel %vm445_vm15, %v4057_v26, 0  ;;  %v3861_v8 = vsel %vm648_vm1, %v3852_v9, 0  ;;  %v4099_v48 = vsub.f32 %v4066_v43, %v4098_v58 }
0x1069   :  { %v3884_v3 = vand.u32 4294901760, %v3861_v8  ;;  %v4090_v30 = vand.u32 4294901760, %v4064_v27 }
0x106a   :  { %v3842_v17 = vadd.f32 %v6906_v13, %v3841_v31  ;;  %v4100_v53 = vand.u32 4294901760, %v4099_v48 }
0x106b   :  { %3928 = vmatmul.f32.vlgmr.msra.gmra.mxu1 %v3884_v3  ;;  %v3885_v42 = vsub.f32 %v3861_v8, %v3884_v3  ;;  %v4091_v0 = vsub.f32 %v4064_v27, %v4090_v30 }
0x106c   :  { %v3846_v25 = vsel %vm3845_vm13, %v6906_v13, %v3842_v17  ;;  %4188 = vmatpush.xpose.msra.mxu1 %v7792_v55  ;;  %v4101_v56 = vsub.f32 %v4099_v48, %v4100_v53 }
0x106d   :  { %v3851_v45 = vsel %vm3848_vm14, %v3850_v10, %v3846_v25  ;;  %3958 = vmatmul.f32.vlgmr.msrb.gmra.mxu2 %v3885_v42  ;;  %v3886_v5 = vand.u32 4294901760, %v3885_v42  ;;  %v4092_v32 = vand.u32 4294901760, %v4091_v0 }
0x106e   :  { %4221 = vmatpush.xpose.msrb.mxu2 %v4123_v47  ;;  %v3853_v34 = vmul.f32 %v7794_v38, %v3851_v45 }
0x106f   :  { %3988 = vmatmul.f32.vlgmr.msrb.gmra.mxu3 %v3886_v5  ;;  %v3887_v1 = vsub.f32 %v3885_v42, %v3886_v5  ;;  %v4093_v15 = vsub.f32 %v4091_v0, %v4092_v32 }
0x1070   :  { %4190 = vmatpush.xpose.msra.mxu1 %v7809_v41  ;;  %4250 = vmatpush.xpose.msrb.mxu3 %v7792_v55  ;;  %v3864_v16 = vsel %vm648_vm1, %v3853_v34, 0 }
0x1071   :  { %v3888_v39 = vand.u32 4294901760, %v3887_v1  ;;  %v3892_v2 = vand.u32 4294901760, %v3864_v16 }
0x1072   :  { %4225 = vmatpush.xpose.msrb.mxu2 %v4129_v51  ;;  %v4094_v51 = vand.u32 4294901760, %v4093_v15 }
0x1073   :  { %3889 = vmatmul.f32.vlgmr.msra.gmra.mxu0 %v3888_v39  ;;  %3932 = vmatmul.f32.gmra.mxu1 %v3892_v2  ;;  %v3893_v47 = vsub.f32 %v3864_v16, %v3892_v2 }
0x1074   :  { %4158 = vmatpush.xpose.msra.mxu0 %v7797_v28  ;;  %4252 = vmatpush.xpose.msrb.mxu3 %v7809_v41  ;;  %v4102_v28 = vand.u32 4294901760, %v4101_v56 }
0x1075   :  { %3963 = vmatmul.f32.gmra.mxu2 %v3893_v47  ;;  %v3894_v38 = vand.u32 4294901760, %v3893_v47 }
0x1077   :  { %3994 = vmatmul.f32.gmra.mxu3 %v3894_v38  ;;  %v3895_v55 = vsub.f32 %v3893_v47, %v3894_v38 }
0x1078   :  { %4161 = vmatpush.xpose.msra.mxu0 %v7812_v35 }
0x1079   :  { %v3896_v52 = vand.u32 4294901760, %v3895_v55 }
0x107b   :  { %3897 = vmatmul.f32.gmra.mxu0 %v3896_v52  ;;  %4048 = vmatmul.f32.vlgmr.msrb.gmra.mxu1 %v3884_v3 }
0x107d   :  { %4095 = vmatmul.f32.vlgmr.msra.gmra.mxu2 %v4094_v51 }
0x107f   :  { %4134 = vmatmul.f32.vlgmr.msra.gmra.mxu3 %v4090_v30 }
0x1083   :  { %4021 = vmatmul.f32.vlgmr.msrb.gmra.mxu0 %v3884_v3  ;;  %4052 = vmatmul.f32.gmra.mxu1 %v3892_v2 }
0x1085   :  { %4103 = vmatmul.f32.gmra.mxu2 %v4102_v28 }
0x1087   :  { %4138 = vmatmul.f32.gmra.mxu3 %v4098_v58 }
0x108b   :  { %4025 = vmatmul.f32.gmra.mxu0 %v3892_v2  ;;  %4194 = vmatmul.f32.vlgmr.msra.gmra.mxu1 %v4092_v32 }
0x108d   :  { %4227 = vmatmul.f32.vlgmr.msrb.gmra.mxu2 %v4090_v30 }
0x108f   :  { %4254 = vmatmul.f32.vlgmr.msrb.gmra.mxu3 %v4090_v30 }
0x1093   :  { %4164 = vmatmul.f32.vlgmr.msra.gmra.mxu0 %v4091_v0  ;;  %4200 = vmatmul.f32.gmra.mxu1 %v4100_v53 }
0x1095   :  { %4231 = vmatmul.f32.gmra.mxu2 %v4098_v58 }
0x1097   :  { %4258 = vmatmul.f32.gmra.mxu3 %v4098_v58 }
0x109b   :  { %4169 = vmatmul.f32.gmra.mxu0 %v4099_v48 }
0x10e8   :  { %v7833_v41 = vpop.f32.mrf.mxu1 }
0x10f0   :  { %v7835_v35 = vpop.f32.mrf.mxu0  ;;  %v7837_v37 = vpop.f32.mrf.mxu2 }
0x10f1   :  { %v7839_v36 = vpop.f32.mrf.mxu1 }
0x10f2   :  { %v7841_v4 = vpop.f32.mrf.mxu3 }
0x10f8   :  { %v7843_v18 = vpop.f32.mrf.mxu0  ;;  %v7845_v11 = vpop.f32.mrf.mxu2 }
0x10f9   :  { %v7849_v60 = vpop.f32.mrf.mxu1 }
0x10fa   :  { %v7847_v63 = vpop.f32.mrf.mxu3 }
0x1100   :  { %v7851_v61 = vpop.f32.mrf.mxu0  ;;  %v4096_v13 = vpop.f32.mrf.mxu2 }
0x1101   :  { %v7853_v62 = vpop.f32.mrf.mxu1 }
0x1102   :  { %v4135_v14 = vpop.f32.mrf.mxu3 }
0x1103   :  { %v4136_v49 = vadd.f32 %v4135_v14, %v4096_v13 }
0x1108   :  { %v7855_v44 = vpop.f32.mrf.mxu0  ;;  %v4104_v46 = vpop.f32.mrf.mxu2 }
0x1109   :  { %v4195_v6 = vpop.f32.mrf.mxu1 }
0x110a   :  { %v4139_v9 = vpop.f32.mrf.mxu3 }
0x110b   :  { %v4140_v17 = vadd.f32 %v4139_v9, %v4104_v46 }
0x1110   :  { %v4165_v24 = vpop.f32.mrf.mxu0  ;;  %v4228_v31 = vpop.f32.mrf.mxu2 }
0x1111   :  { %v4166_v26 = vadd.f32 %v4165_v24, %v4136_v49  ;;  %v4201_v45 = vpop.f32.mrf.mxu1 }
0x1112   :  { %v4255_v8 = vpop.f32.mrf.mxu3 }
0x1113   :  { %v4196_v27 = vadd.f32 %v4195_v6, %v4166_v26 }
0x1115   :  { %v4229_v3 = vadd.f32 %v4228_v31, %v4196_v27 }
0x1117   :  { %v4256_v10 = vadd.f32 %v4255_v8, %v4229_v3 }
0x1118   :  { %v4170_v30 = vpop.f32.mrf.mxu0  ;;  %v4232_v34 = vpop.f32.mrf.mxu2 }
0x1119   :  { %v4262_v42 = vmul.f32 0.35355338, %v4256_v10  ;;  %v4171_v25 = vadd.f32 %v4170_v30, %v4140_v17 }
0x111a   :  { %v4259_v43 = vpop.f32.mrf.mxu3 }
0x111b   :  { %v4202_v22 = vadd.f32 %v4201_v45, %v4171_v25  ;;  %v4264_v5 = vadd.f32 %v4262_v42, %v7773_v40 }
0x111d   :  { %v4233_v0 = vadd.f32 %v4232_v34, %v4202_v22  ;;  %v4266_v1 = vsel %vm648_vm1, %v4264_v5, -inf }
0x111e   :  { %4267 = vmax.xlane.f32.xlu1 %v4266_v1 }
0x111f   :  { %v4260_v16 = vadd.f32 %v4259_v43, %v4233_v0 }
0x1121   :  { %v4263_v39 = vmul.f32 0.35355338, %v4260_v16 }
0x1123   :  { %v4265_v2 = vadd.f32 %v4263_v39, %v7777_v23 }
0x1125   :  { %v4269_v58 = vsel %vm648_vm1, %v4265_v2, -inf }
0x1126   :  { %4270 = vmax.xlane.f32.xlu0 %v4269_v58 }
0x113a   :  { %4316 = vrot.lane.b32.xlu0 %v7769_v59, %s7114_s12 }
0x1142   :  { %4702 = vrot.lane.b32.xlu0 %v7711_v19, %s7117_s1 }
0x114a   :  { %4892 = vrot.lane.b32.xlu0 %v7759_v20, %s7119_s15 }
0x1191   :  { %v4268_v40 = vpop.xlane.xlu1 %4267 }
0x1192   :  { %v4272_v32 = vsub.f32 %v4264_v5, %v4268_v40 }
0x1194   :  { %v4274_v47 = vmul.f32 1.442695, %v4272_v32 }
0x1196   :  { %6907 = vpow2.f32 %v4274_v47 }
0x1199   :  { %v4271_v38 = vpop.xlane.xlu0 %4270 }
0x119a   :  { %v4273_v48 = vsub.f32 %v4265_v2, %v4271_v38 }
0x119c   :  { %v6908_v15 = vpop.eup %6907  ;;  %v4276_v55 = vmul.f32 1.442695, %v4273_v48 }
0x119d   :  { %v4278_v52 = vsel %vm648_vm1, %v6908_v15, 0.0 }
0x119e   :  { %6909 = vpow2.f32 %v4276_v55  ;;  %4279 = vadd.xlane.f32.xlu2 %v4278_v52 }
0x11a4   :  { %v7868_v53 = vpop.eup %6909 }
0x11a5   :  { %v4281_v19 = vsel %vm648_vm1, %v7868_v53, 0.0 }
0x11a6   :  { %4282 = vadd.xlane.f32.xlu1 %v4281_v19 }
0x11ac   :  { %v4317_v51 = vpop.permute.xlu0 %4316 }
0x11ad   :  { %v4340_v56 = vand.u32 4294901760, %v4317_v51 }
0x11af   :  { %v4376_v28 = vsub.f32 %v4317_v51, %v4340_v56  ;;  %4341 = vmatpush.msrb.mxu0 %v4340_v56  ;;  %4442 = vmatpush.msra.mxu3 %v4340_v56 }
0x11b1   :  { %v4377_v13 = vand.u32 4294901760, %v4376_v28  ;;  %4412 = vmatpush.msra.mxu2 %v4376_v28 }
0x11b3   :  { %v4378_v14 = vsub.f32 %v4376_v28, %v4377_v13 }
0x11b4   :  { %v4703_v1 = vpop.permute.xlu0 %4702 }
0x11b5   :  { %v4379_v46 = vand.u32 4294901760, %v4378_v14  ;;  %v7882_v39 = vand.u32 4294901760, %v4703_v1 }
0x11b6   :  { %4314 = vrot.lane.b32.xlu2 %v7759_v20, %s7114_s12 }
0x11b7   :  { %4380 = vmatpush.msrb.mxu1 %v4379_v46 }
0x11be   :  { %4894 = vrot.lane.b32.xlu2 %v7769_v59, %s7119_s15 }
0x11bf   :  { %4516 = vrot.lane.b32.xlu1 %v7699_v7, %s7117_s1 }
0x11c6   :  { %4890 = vrot.lane.b32.xlu2 %v7763_v21, %s7119_s15 }
0x11c7   :  { %4888 = vrot.lane.b32.xlu1 %v7755_v54, %s7119_s15 }
0x1211   :  { %v4280_v9 = vpop.xlane.xlu2 %4279 }
0x1212   :  { %6911 = vrcp.f32 %v4280_v9  ;;  %v4295_v8 = vand.u32 2147483648, %v4280_v9  ;;  %v4293_v17 = vand.u32 2147483647, %v4280_v9  ;;  %vm4289_vm3 = vweird.f32 %v4280_v9 }
0x1214   :  { %v4296_v25 = vor.u32 1.1754944e-38, %v4295_v8  ;;  %vm4294_vm5 = vcmp.eq.f32.partialorder %v4293_v17, 8.507059e+37 }
0x1218   :  { %v6912_v49 = vpop.eup %6911 }
0x1219   :  { %v4285_v6 = vmul.f32 %v6912_v49, %v4280_v9  ;;  %v4315_v24 = vpop.permute.xlu2 %4314  ;;  %v4283_v26 = vpop.xlane.xlu1 %4282  ;;  %vm4290_vm2 = vweird.f32 %v6912_v49 }
0x121a   :  { %v4342_v31 = vand.u32 4294901760, %v4315_v24  ;;  %6913 = vrcp.f32 %v4283_v26  ;;  %vm4291_vm4 = vmor %vm4289_vm3, %vm4290_vm2  ;;  %v4309_v2 = vand.u32 2147483648, %v4283_v26  ;;  %v4307_v40 = vand.u32 2147483647, %v4283_v26 }
0x121b   :  { %v4286_v27 = vsub.f32 1.0, %v4285_v6  ;;  %vm4303_vm7 = vweird.f32 %v4283_v26 }
0x121c   :  { %v4382_v3 = vsub.f32 %v4315_v24, %v4342_v31  ;;  %4343 = vmatpush.msrb.mxu0 %v4342_v31  ;;  %4444 = vmatpush.msra.mxu3 %v4342_v31  ;;  %v4310_v48 = vor.u32 1.1754944e-38, %v4309_v2  ;;  %vm4308_vm9 = vcmp.eq.f32.partialorder %v4307_v40, 8.507059e+37 }
0x121d   :  { %v4287_v7 = vmul.f32 %v6912_v49, %v4286_v27 }
0x121e   :  { %4475 = vmatpush.msra.mxu0 %v4377_v13  ;;  %4415 = vmatpush.msra.mxu2 %v4382_v3  ;;  %v4383_v10 = vand.u32 4294901760, %v4382_v3 }
0x121f   :  { %v4288_v30 = vadd.f32 %v6912_v49, %v4287_v7 }
0x1220   :  { %v6914_v42 = vpop.eup %6913  ;;  %4479 = vmatpush.msra.mxu0 %v4383_v10  ;;  %v4384_v45 = vsub.f32 %v4382_v3, %v4383_v10 }
0x1221   :  { %v4292_v22 = vsel %vm4291_vm4, %v6912_v49, %v4288_v30  ;;  %v4299_v5 = vmul.f32 %v6914_v42, %v4283_v26  ;;  %vm4304_vm6 = vweird.f32 %v6914_v42 }
0x1222   :  { %v4297_v34 = vsel %vm4294_vm5, %v4296_v25, %v4292_v22  ;;  %v4385_v0 = vand.u32 4294901760, %v4384_v45  ;;  %vm4305_vm8 = vmor %vm4303_vm7, %vm4304_vm6  ;;  %v3930_v25 = vadd.f32 %v7833_v41, %v7835_v35 }
0x1223   :  { %v4312_v43 = vmul.f32 %v6908_v15, %v4297_v34  ;;  %v4300_v16 = vsub.f32 1.0, %v4299_v5  ;;  %v7886_v15 = vsub.f32 %v4703_v1, %v7882_v39 }
0x1224   :  { %4386 = vmatpush.msrb.mxu1 %v4385_v0  ;;  %v3960_v22 = vadd.f32 %v7837_v37, %v3930_v25 }
0x1225   :  { %v4301_v58 = vmul.f32 %v6914_v42, %v4300_v16  ;;  %v4321_v32 = vsel %vm648_vm1, %v4312_v43, 0  ;;  %v4762_v13 = vand.u32 4294901760, %v7886_v15  ;;  %v3934_v43 = vadd.f32 %v7839_v36, %v7843_v18 }
0x1226   :  { %4504 = vmatpush.msra.mxu1 %v4340_v56  ;;  %v4344_v47 = vand.u32 4294901760, %v4321_v32  ;;  %v3990_v1 = vadd.f32 %v7841_v4, %v3960_v22 }
0x1227   :  { %v4302_v38 = vadd.f32 %v6914_v42, %v4301_v58  ;;  %v4763_v6 = vsub.f32 %v7886_v15, %v4762_v13  ;;  %v3965_v40 = vadd.f32 %v7845_v11, %v3934_v43  ;;  %v4893_v11 = vpop.permute.xlu0 %4892 }
0x1228   :  { %4506 = vmatpush.msra.mxu1 %v4342_v31  ;;  %v4345_v55 = vsub.f32 %v4321_v32, %v4344_v47  ;;  %v4023_v58 = vadd.f32 %v7851_v61, %v3990_v1 }
0x1229   :  { %4388 = vmatmul.f32.vlgmr.msrb.gmra.mxu1 %v4344_v47  ;;  %v4306_v52 = vsel %vm4305_vm8, %v6914_v42, %v4302_v38  ;;  %v4764_v8 = vand.u32 4294901760, %v4763_v6  ;;  %v4895_v38 = vpop.permute.xlu2 %4894  ;;  %v3996_v4 = vadd.f32 %v7847_v63, %v3965_v40  ;;  %v4900_v63 = vsel %vm445_vm15, %v4893_v11, 0 }
0x122a   :  { %v4311_v19 = vsel %vm4308_vm9, %v4310_v48, %v4306_v52  ;;  %4418 = vmatmul.f32.vlgmr.msra.gmra.mxu2 %v4345_v55  ;;  %v4346_v51 = vand.u32 4294901760, %v4345_v55  ;;  %v4050_v37 = vadd.f32 %v7849_v60, %v4023_v58  ;;  %v4902_v36 = vsel %vm445_vm15, %v4895_v38, 0 }
0x122b   :  { %v4313_v56 = vmul.f32 %v7868_v53, %v4311_v19  ;;  %v4027_v61 = vadd.f32 %v7855_v44, %v3996_v4 }
0x122c   :  { %4448 = vmatmul.f32.vlgmr.msra.gmra.mxu3 %v4346_v51  ;;  %v4347_v28 = vsub.f32 %v4345_v55, %v4346_v51  ;;  %v4706_v18 = vsel %vm445_vm15, %v4050_v37, 0 }
0x122d   :  { %v4324_v14 = vsel %vm648_vm1, %v4313_v56, 0  ;;  %v4054_v6 = vadd.f32 %v7853_v62, %v4027_v61 }
0x122e   :  { %v4348_v46 = vand.u32 4294901760, %v4347_v28  ;;  %v4352_v9 = vand.u32 4294901760, %v4324_v14 }
0x122f   :  { %v4709_v62 = vsel %vm445_vm15, %v4054_v6, 0 }
0x1230   :  { %4349 = vmatmul.f32.vlgmr.msrb.gmra.mxu0 %v4348_v46  ;;  %v4353_v49 = vsub.f32 %v4324_v14, %v4352_v9  ;;  %v7909_v14 = vand.u32 4294901760, %v4902_v36  ;;  %v7911_v46 = vand.u32 4294901760, %v4706_v18 }
0x1231   :  { %4392 = vmatmul.f32.gmra.mxu1 %v4352_v9  ;;  %v4517_v24 = vpop.permute.xlu1 %4516  ;;  %v4891_v38 = vpop.permute.xlu2 %4890 }
0x1232   :  { %v4540_v26 = vand.u32 4294901760, %v4517_v24  ;;  %4423 = vmatmul.f32.gmra.mxu2 %v4353_v49  ;;  %v4354_v31 = vand.u32 4294901760, %v4353_v49 }
0x1234   :  { %v4575_v53 = vsub.f32 %v4517_v24, %v4540_v26  ;;  %4454 = vmatmul.f32.gmra.mxu3 %v4354_v31  ;;  %v4355_v27 = vsub.f32 %v4353_v49, %v4354_v31  ;;  %4541 = vmatpush.msrb.mxu2 %v4540_v26  ;;  %v4920_v31 = vand.u32 4294901760, %v4900_v63 }
0x1235   :  { %4634 = vmatpush.msrb.mxu1 %v4540_v26 }
0x1236   :  { %v4576_v3 = vand.u32 4294901760, %v4575_v53  ;;  %v4356_v7 = vand.u32 4294901760, %v4355_v27  ;;  %4606 = vmatpush.msrb.mxu0 %v4575_v53 }
0x1238   :  { %v4577_v17 = vsub.f32 %v4575_v53, %v4576_v3  ;;  %4357 = vmatmul.f32.gmra.mxu0 %v4356_v7  ;;  %4666 = vmatpush.msra.mxu2 %v4576_v3  ;;  %v7917_v53 = vsub.f32 %v4902_v36, %v7909_v14 }
0x1239   :  { %4508 = vmatmul.f32.vlgmr.msra.gmra.mxu1 %v4344_v47 }
0x123a   :  { %4765 = vmatpush.msra.mxu1 %v4764_v8  ;;  %v4578_v10 = vand.u32 4294901760, %v4577_v17  ;;  %v4729_v8 = vsub.f32 %v4706_v18, %v7911_v46 }
0x123c   :  { %4579 = vmatpush.msrb.mxu3 %v4578_v10  ;;  %v4730_v25 = vand.u32 4294901760, %v4729_v8 }
0x123e   :  { %4692 = vmatpush.msra.mxu3 %v4540_v26 }
0x1240   :  { %4481 = vmatmul.f32.vlgmr.msra.gmra.mxu0 %v4344_v47 }
0x1241   :  { %4512 = vmatmul.f32.gmra.mxu1 %v4352_v9  ;;  %4727 = vmatpush.msra.mxu0 %v7882_v39 }
0x1248   :  { %4485 = vmatmul.f32.gmra.mxu0 %v4352_v9 }
0x12a6   :  { %v4389_v30 = vpop.f32.mrf.mxu1 }
0x12ad   :  { %v4350_v42 = vpop.f32.mrf.mxu0  ;;  %v4419_v34 = vpop.f32.mrf.mxu2 }
0x12ae   :  { %v4393_v45 = vpop.f32.mrf.mxu1  ;;  %v4390_v5 = vadd.f32 %v4389_v30, %v4350_v42  ;;  %v4960_v30 = vsub.f32 %v4900_v63, %v4920_v31  ;;  %v4955_v42 = vand.u32 4294901760, %v7917_v53 }
0x12af   :  { %v4449_v2 = vpop.f32.mrf.mxu3 }
0x12b0   :  { %v4420_v16 = vadd.f32 %v4419_v34, %v4390_v5  ;;  %v4961_v5 = vand.u32 4294901760, %v4960_v30  ;;  %v4956_v34 = vsub.f32 %v7917_v53, %v4955_v42 }
0x12b2   :  { %v4450_v32 = vadd.f32 %v4449_v2, %v4420_v16  ;;  %v4957_v16 = vand.u32 4294901760, %v4956_v34  ;;  %v4962_v2 = vsub.f32 %v4960_v30, %v4961_v5 }
0x12b5   :  { %v4358_v0 = vpop.f32.mrf.mxu0  ;;  %v4424_v55 = vpop.f32.mrf.mxu2 }
0x12b6   :  { %v4394_v47 = vadd.f32 %v4393_v45, %v4358_v0  ;;  %v4509_v41 = vpop.f32.mrf.mxu1  ;;  %v4736_v45 = vand.u32 4294901760, %v4709_v62  ;;  %v4731_v0 = vsub.f32 %v4729_v8, %v4730_v25 }
0x12b7   :  { %v4455_v56 = vpop.f32.mrf.mxu3 }
0x12b8   :  { %v4425_v52 = vadd.f32 %v4424_v55, %v4394_v47  ;;  %v4737_v1 = vsub.f32 %v4709_v62, %v4736_v45  ;;  %v4732_v58 = vand.u32 4294901760, %v4731_v0  ;;  %v4898_v55 = vsel %vm445_vm15, %v4891_v38, 0  ;;  %v7985_v38 = vld [vmem:[#allocation8] sm:$0xff] }
0x12b9   :  { %v4930_v4 = vand.u32 4294901760, %v4898_v55 }
0x12ba   :  { %v4456_v60 = vadd.f32 %v4455_v56, %v4425_v52  ;;  %v4738_v40 = vand.u32 4294901760, %v4737_v1 }
0x12bd   :  { %v4482_v35 = vpop.f32.mrf.mxu0 }
0x12be   :  { %v4483_v48 = vadd.f32 %v4482_v35, %v4450_v32  ;;  %v4513_v26 = vpop.f32.mrf.mxu1  ;;  %v4739_v32 = vsub.f32 %v4737_v1, %v4738_v40 }
0x12c0   :  { %v4510_v19 = vadd.f32 %v4509_v41, %v4483_v48  ;;  %v4740_v47 = vand.u32 4294901760, %v4739_v32  ;;  %v4889_v41 = vpop.permute.xlu1 %4888 }
0x12c1   :  { %v4896_v35 = vsel %vm445_vm15, %v4889_v41, 0 }
0x12c2   :  { %v4520_v51 = vsel %vm445_vm15, %v4510_v19, 0  ;;  %v4922_v37 = vand.u32 4294901760, %v4896_v35  ;;  %v4931_v19 = vsub.f32 %v4898_v55, %v4930_v4 }
0x12c3   :  { %v4542_v28 = vand.u32 4294901760, %v4520_v51 }
0x12c4   :  { %v4923_v48 = vsub.f32 %v4896_v35, %v4922_v37  ;;  %v4932_v61 = vand.u32 4294901760, %v4931_v19 }
0x12c5   :  { %v4543_v9 = vsub.f32 %v4520_v51, %v4542_v28  ;;  %v4486_v49 = vpop.f32.mrf.mxu0  ;;  %4581 = vmatmul.f32.vlgmr.msrb.gmra.mxu3 %v4542_v28 }
0x12c6   :  { %v4487_v24 = vadd.f32 %v4486_v49, %v4456_v60  ;;  %4820 = vmatpush.msrb.mxu3 %v7882_v39  ;;  %v4924_v52 = vand.u32 4294901760, %v4923_v48  ;;  %v4933_v11 = vsub.f32 %v4931_v19, %v4932_v61 }
0x12c7   :  { %v4544_v44 = vand.u32 4294901760, %v4543_v9  ;;  %4609 = vmatmul.f32.vlgmr.msrb.gmra.mxu0 %v4543_v9 }
0x12c8   :  { %v4514_v27 = vadd.f32 %v4513_v26, %v4487_v24  ;;  %4852 = vmatpush.msrb.mxu0 %v4762_v13  ;;  %v4925_v36 = vsub.f32 %v4923_v48, %v4924_v52  ;;  %v4934_v51 = vand.u32 4294901760, %v4933_v11 }
0x12c9   :  { %v4545_v3 = vsub.f32 %v4543_v9, %v4544_v44  ;;  %4638 = vmatmul.f32.vlgmr.msrb.gmra.mxu1 %v4544_v44 }
0x12ca   :  { %v4523_v7 = vsel %vm445_vm15, %v4514_v27, 0  ;;  %4878 = vmatpush.msrb.mxu1 %v7882_v39  ;;  %v4926_v18 = vand.u32 4294901760, %v4925_v36 }
0x12cb   :  { %v4546_v17 = vand.u32 4294901760, %v4545_v3  ;;  %v4550_v10 = vand.u32 4294901760, %v4523_v7 }
0x12cd   :  { %4547 = vmatmul.f32.vlgmr.msrb.gmra.mxu2 %v4546_v17  ;;  %4585 = vmatmul.f32.gmra.mxu3 %v4550_v10  ;;  %v4551_v13 = vsub.f32 %v4523_v7, %v4550_v10 }
0x12ce   :  { %4792 = vmatpush.msrb.mxu2 %v7886_v15  ;;  %v4963_v15 = vand.u32 4294901760, %v4962_v2 }
0x12cf   :  { %4614 = vmatmul.f32.gmra.mxu0 %v4551_v13  ;;  %v4552_v22 = vand.u32 4294901760, %v4551_v13 }
0x12d1   :  { %4644 = vmatmul.f32.gmra.mxu1 %v4552_v22  ;;  %v4553_v39 = vsub.f32 %v4551_v13, %v4552_v22 }
0x12d3   :  { %v4554_v43 = vand.u32 4294901760, %v4553_v39 }
0x12d5   :  { %4555 = vmatmul.f32.gmra.mxu2 %v4554_v43  ;;  %4694 = vmatmul.f32.vlgmr.msra.gmra.mxu3 %v4542_v28 }
0x12d6   :  { %4958 = vmatpush.xpose.msra.mxu3 %v4957_v16 }
0x12d7   :  { %4733 = vmatmul.f32.vlgmr.msra.gmra.mxu0 %v4732_v58 }
0x12d8   :  { %4990 = vmatpush.xpose.msra.mxu0 %v7917_v53 }
0x12d9   :  { %4767 = vmatmul.f32.vlgmr.msra.gmra.mxu1 %v7911_v46 }
0x12da   :  { %4964 = vmatpush.xpose.msra.mxu3 %v4963_v15  ;;  %5020 = vmatpush.xpose.msra.mxu1 %v7909_v14 }
0x12dc   :  { %4993 = vmatpush.xpose.msra.mxu0 %v4960_v30 }
0x12dd   :  { %4668 = vmatmul.f32.vlgmr.msra.gmra.mxu2 %v4542_v28  ;;  %4698 = vmatmul.f32.gmra.mxu3 %v4550_v10 }
0x12de   :  { %4919 = vmatpush.xpose.msra.mxu2 %v7909_v14  ;;  %5022 = vmatpush.xpose.msra.mxu1 %v4920_v31 }
0x12df   :  { %4741 = vmatmul.f32.gmra.mxu0 %v4740_v47 }
0x12e1   :  { %4771 = vmatmul.f32.gmra.mxu1 %v4736_v45 }
0x12e2   :  { %4921 = vmatpush.xpose.msra.mxu2 %v4920_v31 }
0x12e5   :  { %4672 = vmatmul.f32.gmra.mxu2 %v4550_v10  ;;  %4824 = vmatmul.f32.vlgmr.msrb.gmra.mxu3 %v4730_v25 }
0x12e6   :  { %5082 = vmatpush.xpose.msrb.mxu3 %v7909_v14 }
0x12e7   :  { %4854 = vmatmul.f32.vlgmr.msrb.gmra.mxu0 %v7911_v46 }
0x12e9   :  { %4880 = vmatmul.f32.vlgmr.msrb.gmra.mxu1 %v7911_v46 }
0x12ea   :  { %5084 = vmatpush.xpose.msrb.mxu3 %v4920_v31 }
0x12ed   :  { %4795 = vmatmul.f32.vlgmr.msrb.gmra.mxu2 %v4729_v8  ;;  %4830 = vmatmul.f32.gmra.mxu3 %v4738_v40 }
0x12ee   :  { %5053 = vmatpush.xpose.msrb.mxu2 %v4955_v42 }
0x12ef   :  { %4858 = vmatmul.f32.gmra.mxu0 %v4736_v45 }
0x12f1   :  { %4884 = vmatmul.f32.gmra.mxu1 %v4736_v45 }
0x12f2   :  { %5057 = vmatpush.xpose.msrb.mxu2 %v4961_v5 }
0x12f5   :  { %4800 = vmatmul.f32.gmra.mxu2 %v4737_v1  ;;  %4966 = vmatmul.f32.vlgmr.msra.gmra.mxu3 %v4922_v37 }
0x12f7   :  { %4996 = vmatmul.f32.vlgmr.msra.gmra.mxu0 %v4923_v48 }
0x12f9   :  { %5026 = vmatmul.f32.vlgmr.msra.gmra.mxu1 %v4924_v52 }
0x12fd   :  { %4927 = vmatmul.f32.vlgmr.msra.gmra.mxu2 %v4926_v18  ;;  %4970 = vmatmul.f32.gmra.mxu3 %v4930_v4 }
0x12ff   :  { %5001 = vmatmul.f32.gmra.mxu0 %v4931_v19 }
0x1301   :  { %5032 = vmatmul.f32.gmra.mxu1 %v4932_v61 }
0x1305   :  { %4935 = vmatmul.f32.gmra.mxu2 %v4934_v51  ;;  %5086 = vmatmul.f32.vlgmr.msrb.gmra.mxu3 %v4922_v37 }
0x130d   :  { %5059 = vmatmul.f32.vlgmr.msrb.gmra.mxu2 %v4922_v37  ;;  %5090 = vmatmul.f32.gmra.mxu3 %v4930_v4 }
0x1315   :  { %5063 = vmatmul.f32.gmra.mxu2 %v4930_v4 }
0x1344   :  { %v7939_v28 = vpop.f32.mrf.mxu0 }
0x1346   :  { %v7941_v14 = vpop.f32.mrf.mxu1 }
0x1348   :  { %v7937_v56 = vpop.f32.mrf.mxu3 }
0x134c   :  { %v7947_v63 = vpop.f32.mrf.mxu0 }
0x134e   :  { %v7953_v6 = vpop.f32.mrf.mxu1 }
0x1350   :  { %v7943_v60 = vpop.f32.mrf.mxu2  ;;  %v7945_v46 = vpop.f32.mrf.mxu3 }
0x1354   :  { %v7955_v24 = vpop.f32.mrf.mxu0 }
0x1356   :  { %v7961_v31 = vpop.f32.mrf.mxu1 }
0x1358   :  { %v7949_v9 = vpop.f32.mrf.mxu2  ;;  %v7951_v49 = vpop.f32.mrf.mxu3 }
0x135c   :  { %v7967_v8 = vpop.f32.mrf.mxu0 }
0x135e   :  { %v7969_v3 = vpop.f32.mrf.mxu1 }
0x1360   :  { %v7957_v44 = vpop.f32.mrf.mxu2  ;;  %v7959_v26 = vpop.f32.mrf.mxu3 }
0x1364   :  { %v7975_v17 = vpop.f32.mrf.mxu0 }
0x1366   :  { %v7977_v10 = vpop.f32.mrf.mxu1 }
0x1368   :  { %v7963_v53 = vpop.f32.mrf.mxu2  ;;  %v7965_v27 = vpop.f32.mrf.mxu3 }
0x136c   :  { %v7981_v25 = vpop.f32.mrf.mxu0 }
0x136e   :  { %v7983_v13 = vpop.f32.mrf.mxu1 }
0x1370   :  { %v7971_v62 = vpop.f32.mrf.mxu2  ;;  %v7973_v7 = vpop.f32.mrf.mxu3 }
0x1374   :  { %v4997_v34 = vpop.f32.mrf.mxu0 }
0x1376   :  { %v5027_v39 = vpop.f32.mrf.mxu1 }
0x1378   :  { %v7979_v30 = vpop.f32.mrf.mxu2  ;;  %v4967_v42 = vpop.f32.mrf.mxu3 }
0x137c   :  { %v5002_v15 = vpop.f32.mrf.mxu0 }
0x137e   :  { %v5033_v35 = vpop.f32.mrf.mxu1 }
0x1380   :  { %v4928_v45 = vpop.f32.mrf.mxu2  ;;  %v4971_v22 = vpop.f32.mrf.mxu3 }
0x1381   :  { %v4968_v5 = vadd.f32 %v4967_v42, %v4928_v45 }
0x1383   :  { %v4998_v1 = vadd.f32 %v4997_v34, %v4968_v5 }
0x1385   :  { %v5028_v16 = vadd.f32 %v5027_v39, %v4998_v1 }
0x1388   :  { %v4936_v0 = vpop.f32.mrf.mxu2  ;;  %v5087_v2 = vpop.f32.mrf.mxu3 }
0x1389   :  { %v4972_v43 = vadd.f32 %v4971_v22, %v4936_v0 }
0x138b   :  { %v5003_v32 = vadd.f32 %v5002_v15, %v4972_v43 }
0x138d   :  { %v5034_v37 = vadd.f32 %v5033_v35, %v5003_v32  ;;  %v6947_v32 = vld [vmem:[%s8239_s4 + $0x38] sm:$0xff] }
0x1390   :  { %v5060_v58 = vpop.f32.mrf.mxu2  ;;  %v5091_v19 = vpop.f32.mrf.mxu3 }
0x1391   :  { %v5061_v40 = vadd.f32 %v5060_v58, %v5028_v16 }
0x1393   :  { %v5088_v47 = vadd.f32 %v5087_v2, %v5061_v40 }
0x1395   :  { %v5094_v41 = vmul.f32 0.35355338, %v5088_v47 }
0x1397   :  { %v5096_v48 = vadd.f32 %v7985_v38, %v5094_v41 }
0x1398   :  { %v5064_v55 = vpop.f32.mrf.mxu2 }
0x1399   :  { %v5065_v4 = vadd.f32 %v5064_v55, %v5034_v37  ;;  %v5098_v52 = vsel %vm648_vm1, %v5096_v48, -inf }
0x139a   :  { %5099 = vmax.xlane.f32.xlu0 %v5098_v52 }
0x139b   :  { %v5092_v36 = vadd.f32 %v5091_v19, %v5065_v4 }
0x139d   :  { %v5095_v18 = vmul.f32 0.35355338, %v5092_v36 }
0x139f   :  { %v5097_v61 = vadd.f32 %v5095_v18, %v7777_v23 }
0x13a1   :  { %v5101_v11 = vsel %vm648_vm1, %v5097_v61, -inf }
0x13a2   :  { %5102 = vmax.xlane.f32.xlu1 %v5101_v11 }
0x13bb   :  { %5148 = vrot.lane.b32.xlu1 %v7769_v59, %s7118_s3 }
0x13c3   :  { %5540 = vrot.lane.b32.xlu1 %v7759_v20, %s7122_s18 }
0x140d   :  { %v5100_v51 = vpop.xlane.xlu0 %5099 }
0x140e   :  { %v5104_v42 = vsub.f32 %v5096_v48, %v5100_v51 }
0x1410   :  { %v5106_v45 = vmul.f32 1.442695, %v5104_v42 }
0x1412   :  { %6915 = vpow2.f32 %v5106_v45 }
0x1415   :  { %v5103_v22 = vpop.xlane.xlu1 %5102 }
0x1416   :  { %v5105_v5 = vsub.f32 %v5097_v61, %v5103_v22 }
0x1418   :  { %v6916_v34 = vpop.eup %6915  ;;  %v5108_v0 = vmul.f32 1.442695, %v5105_v5 }
0x1419   :  { %v5110_v1 = vsel %vm648_vm1, %v6916_v34, 0.0 }
0x141a   :  { %6917 = vpow2.f32 %v5108_v0  ;;  %5111 = vadd.xlane.f32.xlu2 %v5110_v1 }
0x1420   :  { %v7996_v23 = vpop.eup %6917 }
0x1421   :  { %v5113_v39 = vsel %vm648_vm1, %v7996_v23, 0.0 }
0x1422   :  { %5114 = vadd.xlane.f32.xlu0 %v5113_v39 }
0x142d   :  { %v5149_v43 = vpop.permute.xlu1 %5148 }
0x142e   :  { %v5172_v16 = vand.u32 4294901760, %v5149_v43 }
0x1430   :  { %v5208_v2 = vsub.f32 %v5149_v43, %v5172_v16  ;;  %5173 = vmatpush.msrb.mxu0 %v5172_v16  ;;  %5274 = vmatpush.msra.mxu3 %v5172_v16 }
0x1432   :  { %v5209_v58 = vand.u32 4294901760, %v5208_v2  ;;  %5146 = vrot.lane.b32.xlu2 %v7759_v20, %s7118_s3  ;;  %5244 = vmatpush.msra.mxu2 %v5208_v2 }
0x1434   :  { %v5210_v40 = vsub.f32 %v5208_v2, %v5209_v58 }
0x1436   :  { %v5211_v15 = vand.u32 4294901760, %v5210_v40  ;;  %5348 = vrot.lane.b32.xlu0 %v6947_v32, %s7117_s1 }
0x1438   :  { %5212 = vmatpush.msrb.mxu1 %v5211_v15 }
0x143a   :  { %5536 = vrot.lane.b32.xlu2 %v7755_v54, %s7122_s18 }
0x143e   :  { %5542 = vrot.lane.b32.xlu0 %v7769_v59, %s7122_s18 }
0x1446   :  { %5538 = vrot.lane.b32.xlu0 %v7763_v21, %s7122_s18 }
0x148d   :  { %v5112_v47 = vpop.xlane.xlu2 %5111 }
0x148e   :  { %6919 = vrcp.f32 %v5112_v47  ;;  %v5127_v52 = vand.u32 2147483648, %v5112_v47  ;;  %v5125_v36 = vand.u32 2147483647, %v5112_v47  ;;  %vm5121_vm11 = vweird.f32 %v5112_v47 }
0x1490   :  { %v5128_v11 = vor.u32 1.1754944e-38, %v5127_v52  ;;  %vm5126_vm13 = vcmp.eq.f32.partialorder %v5125_v36, 8.507059e+37  ;;  %v5541_v52 = vpop.permute.xlu1 %5540 }
0x1494   :  { %v6920_v41 = vpop.eup %6919 }
0x1495   :  { %v5117_v35 = vmul.f32 %v6920_v41, %v5112_v47  ;;  %v5147_v37 = vpop.permute.xlu2 %5146  ;;  %v5115_v48 = vpop.xlane.xlu0 %5114  ;;  %vm5122_vm10 = vweird.f32 %v6920_v41 }
0x1496   :  { %v5174_v55 = vand.u32 4294901760, %v5147_v37  ;;  %6921 = vrcp.f32 %v5115_v48  ;;  %vm5123_vm12 = vmor %vm5121_vm11, %vm5122_vm10  ;;  %v5141_v39 = vand.u32 2147483648, %v5115_v48  ;;  %v5139_v2 = vand.u32 2147483647, %v5115_v48 }
0x1497   :  { %v5118_v4 = vsub.f32 1.0, %v5117_v35  ;;  %vm5135_vm2 = vweird.f32 %v5115_v48 }
0x1498   :  { %v5214_v19 = vsub.f32 %v5147_v37, %v5174_v55  ;;  %5175 = vmatpush.msrb.mxu0 %v5174_v55  ;;  %5276 = vmatpush.msra.mxu3 %v5174_v55  ;;  %v5142_v32 = vor.u32 1.1754944e-38, %v5141_v39  ;;  %vm5140_vm4 = vcmp.eq.f32.partialorder %v5139_v2, 8.507059e+37 }
0x1499   :  { %v5119_v54 = vmul.f32 %v6920_v41, %v5118_v4 }
0x149a   :  { %5307 = vmatpush.msra.mxu0 %v5209_v58  ;;  %5247 = vmatpush.msra.mxu2 %v5214_v19  ;;  %v5215_v18 = vand.u32 4294901760, %v5214_v19 }
0x149b   :  { %v5120_v21 = vadd.f32 %v6920_v41, %v5119_v54 }
0x149c   :  { %v6922_v61 = vpop.eup %6921  ;;  %5311 = vmatpush.msra.mxu0 %v5215_v18  ;;  %v5216_v51 = vsub.f32 %v5214_v19, %v5215_v18  ;;  %v5548_v18 = vsel %vm445_vm15, %v5541_v52, 0 }
0x149d   :  { %v5124_v42 = vsel %vm5123_vm12, %v6920_v41, %v5120_v21  ;;  %v5131_v45 = vmul.f32 %v6922_v61, %v5115_v48  ;;  %vm5136_vm14 = vweird.f32 %v6922_v61 }
0x149e   :  { %v5129_v22 = vsel %vm5126_vm13, %v5128_v11, %v5124_v42  ;;  %v5217_v5 = vand.u32 4294901760, %v5216_v51  ;;  %vm5137_vm3 = vmor %vm5135_vm2, %vm5136_vm14  ;;  %v8016_v11 = vand.u32 4294901760, %v5548_v18 }
0x149f   :  { %v5144_v0 = vmul.f32 %v6916_v34, %v5129_v22  ;;  %v5132_v1 = vsub.f32 1.0, %v5131_v45 }
0x14a0   :  { %5218 = vmatpush.msrb.mxu1 %v5217_v5  ;;  %v8020_v39 = vsub.f32 %v5548_v18, %v8016_v11 }
0x14a1   :  { %v5133_v43 = vmul.f32 %v6922_v61, %v5132_v1  ;;  %v5153_v58 = vsel %vm648_vm1, %v5144_v0, 0 }
0x14a2   :  { %5336 = vmatpush.msra.mxu1 %v5172_v16  ;;  %v5176_v40 = vand.u32 4294901760, %v5153_v58 }
0x14a3   :  { %v5134_v15 = vadd.f32 %v6922_v61, %v5133_v43 }
0x14a4   :  { %5338 = vmatpush.msra.mxu1 %v5174_v55  ;;  %v5177_v47 = vsub.f32 %v5153_v58, %v5176_v40  ;;  %v5609_v58 = vand.u32 4294901760, %v8020_v39 }
0x14a5   :  { %5220 = vmatmul.f32.vlgmr.msrb.gmra.mxu1 %v5176_v40  ;;  %v5138_v41 = vsel %vm5137_vm3, %v6922_v61, %v5134_v15 }
0x14a6   :  { %v5143_v34 = vsel %vm5140_vm4, %v5142_v32, %v5138_v41  ;;  %5250 = vmatmul.f32.vlgmr.msra.gmra.mxu2 %v5177_v47  ;;  %v5178_v35 = vand.u32 4294901760, %v5177_v47 }
0x14a7   :  { %v5145_v37 = vmul.f32 %v7996_v23, %v5143_v34 }
0x14a8   :  { %v5349_v4 = vpop.permute.xlu0 %5348  ;;  %5280 = vmatmul.f32.vlgmr.msra.gmra.mxu3 %v5178_v35  ;;  %v5179_v16 = vsub.f32 %v5177_v47, %v5178_v35  ;;  %v5610_v47 = vsub.f32 %v8020_v39, %v5609_v58 }
0x14a9   :  { %v5372_v19 = vand.u32 4294901760, %v5349_v4  ;;  %v5156_v54 = vsel %vm648_vm1, %v5145_v37, 0 }
0x14aa   :  { %v5180_v48 = vand.u32 4294901760, %v5179_v16  ;;  %v5184_v55 = vand.u32 4294901760, %v5156_v54  ;;  %v5611_v41 = vand.u32 4294901760, %v5610_v47 }
0x14ab   :  { %v5407_v36 = vsub.f32 %v5349_v4, %v5372_v19  ;;  %5466 = vmatpush.msrb.mxu1 %v5372_v19  ;;  %5373 = vmatpush.msrb.mxu2 %v5372_v19 }
0x14ac   :  { %5181 = vmatmul.f32.vlgmr.msrb.gmra.mxu0 %v5180_v48  ;;  %v5185_v21 = vsub.f32 %v5156_v54, %v5184_v55 }
0x14ad   :  { %5224 = vmatmul.f32.gmra.mxu1 %v5184_v55  ;;  %v5408_v61 = vand.u32 4294901760, %v5407_v36  ;;  %5438 = vmatpush.msrb.mxu0 %v5407_v36 }
0x14ae   :  { %5255 = vmatmul.f32.gmra.mxu2 %v5185_v21  ;;  %v5186_v23 = vand.u32 4294901760, %v5185_v21 }
0x14af   :  { %v5409_v51 = vsub.f32 %v5407_v36, %v5408_v61  ;;  %5498 = vmatpush.msra.mxu2 %v5408_v61  ;;  %v5537_v61 = vpop.permute.xlu2 %5536 }
0x14b0   :  { %v5543_v42 = vpop.permute.xlu0 %5542  ;;  %5286 = vmatmul.f32.gmra.mxu3 %v5186_v23  ;;  %v5187_v45 = vsub.f32 %v5185_v21, %v5186_v23 }
0x14b1   :  { %v5410_v22 = vand.u32 4294901760, %v5409_v51  ;;  %v5550_v5 = vsel %vm445_vm15, %v5543_v42, 0 }
0x14b2   :  { %v5566_v0 = vand.u32 4294901760, %v5550_v5  ;;  %v5188_v1 = vand.u32 4294901760, %v5187_v45  ;;  %v5544_v45 = vsel %vm445_vm15, %v5537_v61, 0 }
0x14b3   :  { %5411 = vmatpush.msrb.mxu3 %v5410_v22 }
0x14b4   :  { %v8022_v43 = vsub.f32 %v5550_v5, %v5566_v0  ;;  %5189 = vmatmul.f32.gmra.mxu0 %v5188_v1 }
0x14b5   :  { %5340 = vmatmul.f32.vlgmr.msra.gmra.mxu1 %v5176_v40  ;;  %5524 = vmatpush.msra.mxu3 %v5372_v19 }
0x14b6   :  { %v5603_v2 = vand.u32 4294901760, %v8022_v43 }
0x14b8   :  { %v5604_v15 = vsub.f32 %v8022_v43, %v5603_v2 }
0x14ba   :  { %v5605_v32 = vand.u32 4294901760, %v5604_v15  ;;  %v5570_v15 = vand.u32 4294901760, %v5544_v45 }
0x14bc   :  { %5313 = vmatmul.f32.vlgmr.msra.gmra.mxu0 %v5176_v40  ;;  %5606 = vmatpush.xpose.msra.mxu1 %v5605_v32 }
0x14bd   :  { %5344 = vmatmul.f32.gmra.mxu1 %v5184_v55  ;;  %5567 = vmatpush.xpose.msra.mxu0 %v5566_v0 }
0x14c0   :  { %5612 = vmatpush.xpose.msra.mxu1 %v5611_v41 }
0x14c1   :  { %5569 = vmatpush.xpose.msra.mxu0 %v8016_v11 }
0x14c4   :  { %5317 = vmatmul.f32.gmra.mxu0 %v5184_v55 }
0x1522   :  { %v5221_v34 = vpop.f32.mrf.mxu1 }
0x1529   :  { %v5182_v35 = vpop.f32.mrf.mxu0  ;;  %v5251_v16 = vpop.f32.mrf.mxu2 }
0x152a   :  { %v5225_v37 = vpop.f32.mrf.mxu1  ;;  %v5222_v4 = vadd.f32 %v5221_v34, %v5182_v35  ;;  %v5539_v34 = vpop.permute.xlu0 %5538 }
0x152b   :  { %v5281_v54 = vpop.f32.mrf.mxu3 }
0x152c   :  { %v5252_v19 = vadd.f32 %v5251_v16, %v5222_v4  ;;  %v5571_v16 = vsub.f32 %v5544_v45, %v5570_v15 }
0x152e   :  { %v5282_v48 = vadd.f32 %v5281_v54, %v5252_v19  ;;  %v5546_v19 = vsel %vm445_vm15, %v5539_v34, 0 }
0x1531   :  { %v5190_v52 = vpop.f32.mrf.mxu0  ;;  %v5256_v23 = vpop.f32.mrf.mxu2 }
0x1532   :  { %v5226_v36 = vadd.f32 %v5225_v37, %v5190_v52  ;;  %v5341_v18 = vpop.f32.mrf.mxu1 }
0x1533   :  { %v5287_v22 = vpop.f32.mrf.mxu3 }
0x1534   :  { %v5257_v51 = vadd.f32 %v5256_v23, %v5226_v36 }
0x1536   :  { %v5288_v1 = vadd.f32 %v5287_v22, %v5257_v51 }
0x1539   :  { %v5314_v40 = vpop.f32.mrf.mxu0 }
0x153a   :  { %v5315_v21 = vadd.f32 %v5314_v40, %v5282_v48  ;;  %v5345_v37 = vpop.f32.mrf.mxu1  ;;  %v5578_v40 = vand.u32 4294901760, %v5546_v19 }
0x153c   :  { %v5342_v42 = vadd.f32 %v5341_v18, %v5315_v21  ;;  %v5572_v18 = vand.u32 4294901760, %v5571_v16  ;;  %v5579_v23 = vsub.f32 %v5546_v19, %v5578_v40 }
0x153e   :  { %v5352_v55 = vsel %vm445_vm15, %v5342_v42, 0  ;;  %v5573_v61 = vsub.f32 %v5571_v16, %v5572_v18 }
0x153f   :  { %v5374_v5 = vand.u32 4294901760, %v5352_v55 }
0x1540   :  { %v5574_v42 = vand.u32 4294901760, %v5573_v61 }
0x1541   :  { %v5375_v32 = vsub.f32 %v5352_v55, %v5374_v5  ;;  %v5318_v47 = vpop.f32.mrf.mxu0  ;;  %5413 = vmatmul.f32.vlgmr.msrb.gmra.mxu3 %v5374_v5 }
0x1542   :  { %v5319_v41 = vadd.f32 %v5318_v47, %v5288_v1  ;;  %5668 = vmatpush.xpose.msrb.mxu3 %v5566_v0 }
0x1543   :  { %v5376_v35 = vand.u32 4294901760, %v5375_v32  ;;  %5441 = vmatmul.f32.vlgmr.msrb.gmra.mxu0 %v5375_v32 }
0x1544   :  { %v5346_v4 = vadd.f32 %v5345_v37, %v5319_v41  ;;  %5701 = vmatpush.xpose.msrb.mxu0 %v5603_v2 }
0x1545   :  { %v5377_v52 = vsub.f32 %v5375_v32, %v5376_v35  ;;  %5470 = vmatmul.f32.vlgmr.msrb.gmra.mxu1 %v5376_v35 }
0x1546   :  { %v5355_v54 = vsel %vm445_vm15, %v5346_v4, 0  ;;  %5670 = vmatpush.xpose.msrb.mxu3 %v8016_v11  ;;  %5730 = vmatpush.xpose.msrb.mxu1 %v5566_v0 }
0x1547   :  { %v5378_v48 = vand.u32 4294901760, %v5377_v52  ;;  %v5382_v36 = vand.u32 4294901760, %v5355_v54 }
0x1548   :  { %5705 = vmatpush.xpose.msrb.mxu0 %v5609_v58  ;;  %v5580_v58 = vand.u32 4294901760, %v5579_v23 }
0x1549   :  { %5379 = vmatmul.f32.vlgmr.msrb.gmra.mxu2 %v5378_v48  ;;  %5417 = vmatmul.f32.gmra.mxu3 %v5382_v36  ;;  %v5383_v21 = vsub.f32 %v5355_v54, %v5382_v36 }
0x154a   :  { %5638 = vmatpush.xpose.msrb.mxu2 %v8022_v43  ;;  %5732 = vmatpush.xpose.msrb.mxu1 %v8016_v11  ;;  %v5581_v45 = vsub.f32 %v5579_v23, %v5580_v58 }
0x154b   :  { %5446 = vmatmul.f32.gmra.mxu0 %v5383_v21  ;;  %v5384_v2 = vand.u32 4294901760, %v5383_v21 }
0x154c   :  { %v5582_v43 = vand.u32 4294901760, %v5581_v45 }
0x154d   :  { %5476 = vmatmul.f32.gmra.mxu1 %v5384_v2  ;;  %v5385_v51 = vsub.f32 %v5383_v21, %v5384_v2 }
0x154e   :  { %5641 = vmatpush.xpose.msrb.mxu2 %v8020_v39 }
0x154f   :  { %v5386_v0 = vand.u32 4294901760, %v5385_v51 }
0x1551   :  { %5387 = vmatmul.f32.gmra.mxu2 %v5386_v0  ;;  %5526 = vmatmul.f32.vlgmr.msra.gmra.mxu3 %v5374_v5 }
0x1553   :  { %5575 = vmatmul.f32.vlgmr.msra.gmra.mxu0 %v5574_v42 }
0x1555   :  { %5614 = vmatmul.f32.vlgmr.msra.gmra.mxu1 %v5570_v15 }
0x1559   :  { %5500 = vmatmul.f32.vlgmr.msra.gmra.mxu2 %v5374_v5  ;;  %5530 = vmatmul.f32.gmra.mxu3 %v5382_v36 }
0x155b   :  { %5583 = vmatmul.f32.gmra.mxu0 %v5582_v43 }
0x155d   :  { %5618 = vmatmul.f32.gmra.mxu1 %v5578_v40 }
0x1561   :  { %5504 = vmatmul.f32.gmra.mxu2 %v5382_v36  ;;  %5674 = vmatmul.f32.vlgmr.msrb.gmra.mxu3 %v5572_v18 }
0x1563   :  { %5707 = vmatmul.f32.vlgmr.msrb.gmra.mxu0 %v5570_v15 }
0x1565   :  { %5734 = vmatmul.f32.vlgmr.msrb.gmra.mxu1 %v5570_v15 }
0x1569   :  { %5644 = vmatmul.f32.vlgmr.msrb.gmra.mxu2 %v5571_v16  ;;  %5680 = vmatmul.f32.gmra.mxu3 %v5580_v58 }
0x156b   :  { %5711 = vmatmul.f32.gmra.mxu0 %v5578_v40 }
0x156d   :  { %5738 = vmatmul.f32.gmra.mxu1 %v5578_v40 }
0x1571   :  { %5649 = vmatmul.f32.gmra.mxu2 %v5579_v23 }
0x15c0   :  { %v5442_v39 = vpop.f32.mrf.mxu0 }
0x15c2   :  { %v5471_v55 = vpop.f32.mrf.mxu1 }
0x15c4   :  { %v5414_v11 = vpop.f32.mrf.mxu3 }
0x15c8   :  { %v5447_v47 = vpop.f32.mrf.mxu0 }
0x15ca   :  { %v5477_v34 = vpop.f32.mrf.mxu1 }
0x15cc   :  { %v5380_v22 = vpop.f32.mrf.mxu2  ;;  %v5418_v32 = vpop.f32.mrf.mxu3 }
0x15cd   :  { %v5415_v1 = vadd.f32 %v5414_v11, %v5380_v22 }
0x15cf   :  { %v5443_v5 = vadd.f32 %v5442_v39, %v5415_v1 }
0x15d0   :  { %v5576_v16 = vpop.f32.mrf.mxu0 }
0x15d1   :  { %v5472_v41 = vadd.f32 %v5471_v55, %v5443_v5 }
0x15d2   :  { %v5615_v19 = vpop.f32.mrf.mxu1 }
0x15d3   :  { %v5616_v51 = vadd.f32 %v5615_v19, %v5576_v16  ;;  %v6948_v19 = vld [vmem:[#allocation8 + $0x8] sm:$0xff] }
0x15d4   :  { %v5388_v35 = vpop.f32.mrf.mxu2  ;;  %v5527_v52 = vpop.f32.mrf.mxu3 }
0x15d5   :  { %v5419_v37 = vadd.f32 %v5418_v32, %v5388_v35 }
0x15d7   :  { %v5448_v4 = vadd.f32 %v5447_v47, %v5419_v37 }
0x15d8   :  { %v5584_v40 = vpop.f32.mrf.mxu0 }
0x15d9   :  { %v5478_v15 = vadd.f32 %v5477_v34, %v5448_v4 }
0x15da   :  { %v5619_v61 = vpop.f32.mrf.mxu1 }
0x15db   :  { %v5620_v55 = vadd.f32 %v5619_v61, %v5584_v40 }
0x15dc   :  { %v5501_v54 = vpop.f32.mrf.mxu2  ;;  %v5531_v18 = vpop.f32.mrf.mxu3 }
0x15dd   :  { %v5502_v48 = vadd.f32 %v5501_v54, %v5472_v41 }
0x15df   :  { %v8037_v36 = vadd.f32 %v5527_v52, %v5502_v48 }
0x15e0   :  { %v5708_v45 = vpop.f32.mrf.mxu0 }
0x15e2   :  { %v5735_v11 = vpop.f32.mrf.mxu1 }
0x15e4   :  { %v5505_v21 = vpop.f32.mrf.mxu2  ;;  %v5675_v0 = vpop.f32.mrf.mxu3 }
0x15e5   :  { %v5506_v2 = vadd.f32 %v5505_v21, %v5478_v15 }
0x15e7   :  { %v8039_v23 = vadd.f32 %v5531_v18, %v5506_v2 }
0x15e8   :  { %v5712_v35 = vpop.f32.mrf.mxu0 }
0x15ea   :  { %v5739_v52 = vpop.f32.mrf.mxu1 }
0x15ec   :  { %v5645_v42 = vpop.f32.mrf.mxu2  ;;  %v5681_v47 = vpop.f32.mrf.mxu3 }
0x15ed   :  { %v5646_v58 = vadd.f32 %v5645_v42, %v5616_v51 }
0x15ef   :  { %v5676_v43 = vadd.f32 %v5675_v0, %v5646_v58 }
0x15f1   :  { %v5709_v39 = vadd.f32 %v5708_v45, %v5676_v43 }
0x15f3   :  { %v5736_v22 = vadd.f32 %v5735_v11, %v5709_v39 }
0x15f4   :  { %v5650_v1 = vpop.f32.mrf.mxu2 }
0x15f5   :  { %v5651_v32 = vadd.f32 %v5650_v1, %v5620_v55  ;;  %v5742_v5 = vmul.f32 0.35355338, %v5736_v22  ;;  %v6949_v55 = vld [vmem:[%s8239_s4 + $0x50] sm:$0xff] }
0x15f7   :  { %v5682_v41 = vadd.f32 %v5681_v47, %v5651_v32  ;;  %v5744_v34 = vadd.f32 %v7985_v38, %v5742_v5 }
0x15f9   :  { %v5713_v37 = vadd.f32 %v5712_v35, %v5682_v41  ;;  %v5746_v4 = vsel %vm648_vm1, %v5744_v34, -inf }
0x15fa   :  { %5747 = vmax.xlane.f32.xlu1 %v5746_v4 }
0x15fb   :  { %v5740_v15 = vadd.f32 %v5739_v52, %v5713_v37 }
0x15fd   :  { %v5743_v16 = vmul.f32 0.35355338, %v5740_v15 }
0x15ff   :  { %v5745_v54 = vadd.f32 %v6948_v19, %v5743_v16 }
0x1601   :  { %v5749_v48 = vsel %vm648_vm1, %v5745_v54, -inf }
0x1602   :  { %5750 = vmax.xlane.f32.xlu2 %v5749_v48 }
0x161a   :  { %5796 = vrot.lane.b32.xlu2 %v7769_v59, %s7121_s17 }
0x1622   :  { %6184 = vrot.lane.b32.xlu2 %v7740_v57, %s7117_s1 }
0x166d   :  { %v5748_v38 = vpop.xlane.xlu1 %5747 }
0x166e   :  { %v5752_v18 = vsub.f32 %v5744_v34, %v5748_v38 }
0x1670   :  { %v5754_v40 = vmul.f32 1.442695, %v5752_v18 }
0x1672   :  { %6923 = vpow2.f32 %v5754_v40 }
0x1675   :  { %v5751_v21 = vpop.xlane.xlu2 %5750 }
0x1676   :  { %v5753_v2 = vsub.f32 %v5745_v54, %v5751_v21 }
0x1678   :  { %v6924_v61 = vpop.eup %6923  ;;  %v5756_v51 = vmul.f32 1.442695, %v5753_v2 }
0x1679   :  { %v5758_v0 = vsel %vm648_vm1, %v6924_v61, 0.0 }
0x167a   :  { %6925 = vpow2.f32 %v5756_v51  ;;  %5759 = vadd.xlane.f32.xlu0 %v5758_v0 }
0x167d   :  { %v5797_v42 = vpop.permute.xlu2 %5796 }
0x167e   :  { %v8049_v58 = vand.u32 4294901760, %v5797_v42 }
0x1680   :  { %v6926_v45 = vpop.eup %6925  ;;  %v5856_v59 = vsub.f32 %v5797_v42, %v8049_v58  ;;  %5821 = vmatpush.msra.mxu2 %v8049_v58  ;;  %5922 = vmatpush.msra.mxu1 %v8049_v58 }
0x1681   :  { %v5761_v57 = vsel %vm648_vm1, %v6926_v45, 0.0 }
0x1682   :  { %v5857_v43 = vand.u32 4294901760, %v5856_v59  ;;  %5762 = vadd.xlane.f32.xlu1 %v5761_v57  ;;  %5892 = vmatpush.msra.mxu0 %v5856_v59 }
0x1684   :  { %v5858_v11 = vsub.f32 %v5856_v59, %v5857_v43 }
0x1686   :  { %v5859_v39 = vand.u32 4294901760, %v5858_v11 }
0x1688   :  { %5860 = vmatpush.msra.mxu3 %v5859_v39 }
0x168e   :  { %5794 = vrot.lane.b32.xlu0 %v7759_v20, %s7121_s17 }
0x169b   :  { %5996 = vrot.lane.b32.xlu1 %v6949_v55, %s7117_s1 }
0x16ed   :  { %v5760_v22 = vpop.xlane.xlu0 %5759 }
0x16ee   :  { %6927 = vrcp.f32 %v5760_v22  ;;  %v5775_v41 = vand.u32 2147483648, %v5760_v22  ;;  %v5773_v35 = vand.u32 2147483647, %v5760_v22  ;;  %vm5769_vm6 = vweird.f32 %v5760_v22 }
0x16f0   :  { %v5776_v4 = vor.u32 1.1754944e-38, %v5775_v41  ;;  %vm5774_vm8 = vcmp.eq.f32.partialorder %v5773_v35, 8.507059e+37 }
0x16f4   :  { %v6928_v1 = vpop.eup %6927 }
0x16f5   :  { %v5765_v32 = vmul.f32 %v6928_v1, %v5760_v22  ;;  %v5763_v5 = vpop.xlane.xlu1 %5762  ;;  %vm5770_vm5 = vweird.f32 %v6928_v1 }
0x16f6   :  { %6929 = vrcp.f32 %v5763_v5  ;;  %vm5771_vm7 = vmor %vm5769_vm6, %vm5770_vm5  ;;  %v5787_v48 = vand.u32 2147483647, %v5763_v5  ;;  %v5789_v38 = vand.u32 2147483648, %v5763_v5  ;;  %vm5783_vm10 = vweird.f32 %v5763_v5 }
0x16f7   :  { %v5766_v47 = vsub.f32 1.0, %v5765_v32 }
0x16f8   :  { %v5790_v59 = vor.u32 1.1754944e-38, %v5789_v38  ;;  %vm5788_vm12 = vcmp.eq.f32.partialorder %v5787_v48, 8.507059e+37 }
0x16f9   :  { %v5767_v34 = vmul.f32 %v6928_v1, %v5766_v47 }
0x16fb   :  { %v5768_v37 = vadd.f32 %v6928_v1, %v5767_v34 }
0x16fc   :  { %v6930_v20 = vpop.eup %6929 }
0x16fd   :  { %v5772_v52 = vsel %vm5771_vm7, %v6928_v1, %v5768_v37  ;;  %v5779_v15 = vmul.f32 %v6930_v20, %v5763_v5  ;;  %vm5784_vm9 = vweird.f32 %v6930_v20 }
0x16fe   :  { %v5777_v16 = vsel %vm5774_vm8, %v5776_v4, %v5772_v52  ;;  %vm5785_vm11 = vmor %vm5783_vm10, %vm5784_vm9  ;;  %vm6517_vm10 = vcmask 523264  }
0x16ff   :  { %v5792_v19 = vmul.f32 %v6924_v61, %v5777_v16  ;;  %v5780_v54 = vsub.f32 1.0, %v5779_v15 }
0x1700   :  { %v5795_v18 = vpop.permute.xlu0 %5794 }
0x1701   :  { %v5781_v40 = vmul.f32 %v6930_v20, %v5780_v54  ;;  %v5822_v21 = vand.u32 4294901760, %v5795_v18  ;;  %v5801_v2 = vsel %vm648_vm1, %v5792_v19, 0 }
0x1702   :  { %v5824_v51 = vand.u32 4294901760, %v5801_v2 }
0x1703   :  { %v5782_v0 = vadd.f32 %v6930_v20, %v5781_v40  ;;  %v5862_v42 = vsub.f32 %v5795_v18, %v5822_v21  ;;  %5823 = vmatpush.msra.mxu2 %v5822_v21  ;;  %5924 = vmatpush.msra.mxu1 %v5822_v21 }
0x1704   :  { %v5825_v57 = vsub.f32 %v5801_v2, %v5824_v51 }
0x1705   :  { %5955 = vmatpush.msrb.mxu2 %v5857_v43  ;;  %5895 = vmatpush.msra.mxu0 %v5862_v42  ;;  %v5863_v61 = vand.u32 4294901760, %v5862_v42  ;;  %v5786_v11 = vsel %vm5785_vm11, %v6930_v20, %v5782_v0 }
0x1706   :  { %5898 = vmatmul.f32.vlgmr.msra.gmra.mxu0 %v5825_v57  ;;  %v5826_v39 = vand.u32 4294901760, %v5825_v57  ;;  %v5791_v55 = vsel %vm5788_vm12, %v5790_v59, %v5786_v11 }
0x1707   :  { %5959 = vmatpush.msrb.mxu2 %v5863_v61  ;;  %v5864_v22 = vsub.f32 %v5862_v42, %v5863_v61  ;;  %v5793_v1 = vmul.f32 %v6926_v45, %v5791_v55 }
0x1708   :  { %5928 = vmatmul.f32.vlgmr.msra.gmra.mxu1 %v5826_v39  ;;  %v5827_v32 = vsub.f32 %v5825_v57, %v5826_v39 }
0x1709   :  { %v5865_v5 = vand.u32 4294901760, %v5864_v22  ;;  %v5804_v47 = vsel %vm648_vm1, %v5793_v1, 0 }
0x170a   :  { %v5828_v41 = vand.u32 4294901760, %v5827_v32  ;;  %v5832_v34 = vand.u32 4294901760, %v5804_v47 }
0x170b   :  { %5866 = vmatpush.msra.mxu3 %v5865_v5 }
0x170c   :  { %5829 = vmatmul.f32.vlgmr.msra.gmra.mxu2 %v5828_v41  ;;  %5868 = vmatmul.f32.vlgmr.msra.gmra.mxu3 %v5824_v51  ;;  %v5833_v43 = vsub.f32 %v5804_v47, %v5832_v34 }
0x170d   :  { %5984 = vmatpush.msrb.mxu3 %v8049_v58  ;;  %v5997_v45 = vpop.permute.xlu1 %5996 }
0x170e   :  { %5903 = vmatmul.f32.gmra.mxu0 %v5833_v43  ;;  %v5834_v35 = vand.u32 4294901760, %v5833_v43  ;;  %v6020_v4 = vand.u32 4294901760, %v5997_v45 }
0x170f   :  { %5986 = vmatpush.msrb.mxu3 %v5822_v21 }
0x1710   :  { %5934 = vmatmul.f32.gmra.mxu1 %v5834_v35  ;;  %v5835_v37 = vsub.f32 %v5833_v43, %v5834_v35  ;;  %v6055_v52 = vsub.f32 %v5997_v45, %v6020_v4  ;;  %6021 = vmatpush.msrb.mxu0 %v6020_v4 }
0x1711   :  { %6114 = vmatpush.msra.mxu3 %v6020_v4 }
0x1712   :  { %v5836_v20 = vand.u32 4294901760, %v5835_v37  ;;  %v6056_v15 = vand.u32 4294901760, %v6055_v52  ;;  %6086 = vmatpush.msra.mxu2 %v6055_v52 }
0x1714   :  { %5837 = vmatmul.f32.gmra.mxu2 %v5836_v20  ;;  %5872 = vmatmul.f32.gmra.mxu3 %v5832_v34  ;;  %v6057_v58 = vsub.f32 %v6055_v52, %v6056_v15 }
0x1715   :  { %6146 = vmatpush.msra.mxu0 %v6056_v15 }
0x1716   :  { %v6058_v16 = vand.u32 4294901760, %v6057_v58 }
0x1718   :  { %6059 = vmatpush.msrb.mxu1 %v6058_v16 }
0x171a   :  { %6172 = vmatpush.msra.mxu1 %v6020_v4 }
0x171c   :  { %5961 = vmatmul.f32.vlgmr.msrb.gmra.mxu2 %v5824_v51  ;;  %5988 = vmatmul.f32.vlgmr.msrb.gmra.mxu3 %v5824_v51 }
0x1724   :  { %5965 = vmatmul.f32.gmra.mxu2 %v5832_v34  ;;  %5992 = vmatmul.f32.gmra.mxu3 %v5832_v34 }
0x1783   :  { %v5899_v48 = vpop.f32.mrf.mxu0 }
0x1785   :  { %v5929_v2 = vpop.f32.mrf.mxu1 }
0x178b   :  { %v5904_v61 = vpop.f32.mrf.mxu0 }
0x178d   :  { %v5935_v22 = vpop.f32.mrf.mxu1 }
0x178f   :  { %v5830_v19 = vpop.f32.mrf.mxu2  ;;  %v5869_v54 = vpop.f32.mrf.mxu3 }
0x1790   :  { %v5870_v38 = vadd.f32 %v5869_v54, %v5830_v19  ;;  %v4583_v19 = vadd.f32 %v7937_v56, %v7943_v60 }
0x1792   :  { %v5900_v21 = vadd.f32 %v5899_v48, %v5870_v38  ;;  %v4611_v54 = vadd.f32 %v7939_v28, %v4583_v19  ;;  %v4587_v48 = vadd.f32 %v7945_v46, %v7949_v9 }
0x1794   :  { %v5930_v0 = vadd.f32 %v5929_v2, %v5900_v21  ;;  %v4640_v38 = vadd.f32 %v7941_v14, %v4611_v54 }
0x1797   :  { %v5838_v18 = vpop.f32.mrf.mxu2  ;;  %v5873_v40 = vpop.f32.mrf.mxu3 }
0x1798   :  { %v5874_v51 = vadd.f32 %v5873_v40, %v5838_v18  ;;  %v4670_v18 = vadd.f32 %v7957_v44, %v4640_v38  ;;  %v4616_v40 = vadd.f32 %v7947_v63, %v4587_v48  ;;  %v8116_v38 = vld [vmem:[#allocation10] sm:$0xff] }
0x179a   :  { %v5905_v11 = vadd.f32 %v5904_v61, %v5874_v51  ;;  %v4696_v21 = vadd.f32 %v7951_v49, %v4670_v18  ;;  %v4646_v51 = vadd.f32 %v7953_v6, %v4616_v40  ;;  %v8119_v18 = vperm.slane %v8116_v38, 4 }
0x179c   :  { %v5936_v32 = vadd.f32 %v5935_v22, %v5905_v11  ;;  %v4735_v56 = vadd.f32 %v7955_v24, %v4696_v21 }
0x179e   :  { %v4769_v46 = vadd.f32 %v7961_v31, %v4735_v56 }
0x179f   :  { %v5962_v42 = vpop.f32.mrf.mxu2  ;;  %v5989_v59 = vpop.f32.mrf.mxu3 }
0x17a0   :  { %v5963_v57 = vadd.f32 %v5962_v42, %v5930_v0  ;;  %v4674_v0 = vadd.f32 %v7963_v53, %v4646_v51  ;;  %v4797_v14 = vadd.f32 %v7971_v62, %v4769_v46 }
0x17a2   :  { %v5990_v39 = vadd.f32 %v5989_v59, %v5963_v57  ;;  %v4700_v28 = vadd.f32 %v7959_v26, %v4674_v0  ;;  %v4826_v59 = vadd.f32 %v7965_v27, %v4797_v14  ;;  %v6277_v14 = vld [vmem:[%s8239_s4 + $0x28] sm:$0xff] }
0x17a4   :  { %v6000_v55 = vsel %vm445_vm15, %v5990_v39, 0  ;;  %v4743_v44 = vadd.f32 %v7967_v8, %v4700_v28  ;;  %v4856_v24 = vadd.f32 %v7975_v17, %v4826_v59  ;;  %v6278_v28 = vld [vmem:[%s8239_s4 + $0x40] sm:$0xff]  ;;  %v6276_v59 = vld [vmem:[%s8239_s4 + $0x10] sm:$0xff] }
0x17a5   :  { %v6022_v1 = vand.u32 4294901760, %v6000_v55  ;;  %v6301_v46 = vand.u32 4294901760, %v6278_v28 }
0x17a6   :  { %v4773_v6 = vadd.f32 %v7969_v3, %v4743_v44  ;;  %v4882_v8 = vadd.f32 %v7977_v10, %v4856_v24  ;;  %v6305_v24 = vand.u32 4294901760, %v6276_v59 }
0x17a7   :  { %v6023_v5 = vsub.f32 %v6000_v55, %v6022_v1  ;;  %v5966_v47 = vpop.f32.mrf.mxu2  ;;  %6061 = vmatmul.f32.vlgmr.msrb.gmra.mxu1 %v6022_v1  ;;  %v5993_v43 = vpop.f32.mrf.mxu3  ;;  %v6343_v44 = vsub.f32 %v6278_v28, %v6301_v46 }
0x17a8   :  { %v5967_v41 = vadd.f32 %v5966_v47, %v5936_v32  ;;  %v4802_v26 = vadd.f32 %v7979_v30, %v4773_v6  ;;  %v5534_v27 = vadd.f32 %v8037_v36, %v4882_v8  ;;  %v6185_v32 = vpop.permute.xlu2 %6184 }
0x17a9   :  { %v6024_v34 = vand.u32 4294901760, %v6023_v5  ;;  %6089 = vmatmul.f32.vlgmr.msra.gmra.mxu2 %v6023_v5 }
0x17aa   :  { %v5994_v35 = vadd.f32 %v5993_v43, %v5967_v41  ;;  %v4832_v39 = vadd.f32 %v7973_v7, %v4802_v26 }
0x17ab   :  { %v6025_v37 = vsub.f32 %v6023_v5, %v6024_v34  ;;  %6118 = vmatmul.f32.vlgmr.msra.gmra.mxu3 %v6024_v34 }
0x17ac   :  { %v6003_v20 = vsel %vm445_vm15, %v5994_v35, 0  ;;  %v4860_v5 = vadd.f32 %v7981_v25, %v4832_v39 }
0x17ad   :  { %v6026_v45 = vand.u32 4294901760, %v6025_v37  ;;  %v6030_v4 = vand.u32 4294901760, %v6003_v20 }
0x17ae   :  { %v4886_v43 = vadd.f32 %v7983_v13, %v4860_v5 }
0x17af   :  { %v6031_v52 = vsub.f32 %v6003_v20, %v6030_v4  ;;  %6027 = vmatmul.f32.vlgmr.msrb.gmra.mxu0 %v6026_v45  ;;  %6065 = vmatmul.f32.gmra.mxu1 %v6030_v4 }
0x17b0   :  { %v5535_v37 = vadd.f32 %v8039_v23, %v4886_v43 }
0x17b1   :  { %6094 = vmatmul.f32.gmra.mxu2 %v6031_v52  ;;  %v6032_v15 = vand.u32 4294901760, %v6031_v52 }
0x17b3   :  { %6124 = vmatmul.f32.gmra.mxu3 %v6032_v15  ;;  %v6033_v58 = vsub.f32 %v6031_v52, %v6032_v15 }
0x17b5   :  { %v6034_v16 = vand.u32 4294901760, %v6033_v58 }
0x17b7   :  { %6035 = vmatmul.f32.gmra.mxu0 %v6034_v16  ;;  %6174 = vmatmul.f32.vlgmr.msra.gmra.mxu1 %v6022_v1 }
0x17bf   :  { %6148 = vmatmul.f32.vlgmr.msra.gmra.mxu0 %v6022_v1  ;;  %6178 = vmatmul.f32.gmra.mxu1 %v6030_v4 }
0x17c7   :  { %6152 = vmatmul.f32.gmra.mxu0 %v6030_v4 }
0x1824   :  { %v6062_v2 = vpop.f32.mrf.mxu1 }
0x182c   :  { %v6028_v60 = vpop.f32.mrf.mxu0  ;;  %v6066_v9 = vpop.f32.mrf.mxu1 }
0x182d   :  { %v6063_v63 = vadd.f32 %v6062_v2, %v6028_v60  ;;  %v6090_v42 = vpop.f32.mrf.mxu2 }
0x182e   :  { %v6119_v57 = vpop.f32.mrf.mxu3 }
0x182f   :  { %v6091_v53 = vadd.f32 %v6090_v42, %v6063_v63  ;;  %v6303_v63 = vand.u32 4294901760, %v6277_v14 }
0x1831   :  { %v6120_v61 = vadd.f32 %v6119_v57, %v6091_v53  ;;  %v6344_v53 = vand.u32 4294901760, %v6343_v44  ;;  %v6349_v57 = vsub.f32 %v6277_v14, %v6303_v63 }
0x1834   :  { %v6036_v49 = vpop.f32.mrf.mxu0  ;;  %v6175_v11 = vpop.f32.mrf.mxu1 }
0x1835   :  { %v6067_v31 = vadd.f32 %v6066_v9, %v6036_v49  ;;  %v6095_v22 = vpop.f32.mrf.mxu2 }
0x1836   :  { %v6125_v47 = vpop.f32.mrf.mxu3 }
0x1837   :  { %v6096_v1 = vadd.f32 %v6095_v22, %v6067_v31  ;;  %v6350_v31 = vand.u32 4294901760, %v6349_v57 }
0x1839   :  { %v6126_v30 = vadd.f32 %v6125_v47, %v6096_v1  ;;  %v6351_v39 = vsub.f32 %v6349_v57, %v6350_v31 }
0x183b   :  { %v6352_v22 = vand.u32 4294901760, %v6351_v39 }
0x183c   :  { %v6149_v62 = vpop.f32.mrf.mxu0  ;;  %v6179_v35 = vpop.f32.mrf.mxu1 }
0x183d   :  { %v6150_v55 = vadd.f32 %v6149_v62, %v6120_v61  ;;  %v6345_v61 = vsub.f32 %v6343_v44, %v6344_v53 }
0x183f   :  { %v6176_v3 = vadd.f32 %v6175_v11, %v6150_v55  ;;  %v6355_v11 = vsub.f32 %v6276_v59, %v6305_v24  ;;  %v6346_v62 = vand.u32 4294901760, %v6345_v61 }
0x1841   :  { %v6182_v17 = vadd.f32 %v6176_v3, %v5534_v27  ;;  %v6356_v8 = vand.u32 4294901760, %v6355_v11 }
0x1843   :  { %v6187_v41 = vadd.f32 %v6185_v32, %v6182_v17  ;;  %v6357_v27 = vsub.f32 %v6355_v11, %v6356_v8 }
0x1844   :  { %v6153_v34 = vpop.f32.mrf.mxu0 }
0x1845   :  { %v8092_v7 = vadd.f32 %v6187_v41, %v7667_v33  ;;  %v6154_v10 = vadd.f32 %v6153_v34, %v6126_v30  ;;  %v6358_v5 = vand.u32 4294901760, %v6357_v27  ;;  %v6511_v27 = vld [vmem:[%s8240_s5 + $0x30] sm:$0xff] }
0x1847   :  { %v6180_v36 = vadd.f32 %v6179_v35, %v6154_v10  ;;  %v6191_v20 = vsel %vm112_vm0, %v8092_v7, 0.0 }
0x1848   :  { %6192 = vadd.xlane.f32.xlu0 %v6191_v20 }
0x1849   :  { %v6183_v25 = vadd.f32 %v6180_v36, %v5535_v37 }
0x184b   :  { %v6188_v45 = vadd.f32 %v6185_v32, %v6183_v25 }
0x184d   :  { %v8098_v4 = vadd.f32 %v6188_v45, %v7671_v50 }
0x184f   :  { %v6194_v13 = vsel %vm112_vm0, %v8098_v4, 0.0 }
0x1850   :  { %6195 = vadd.xlane.f32.xlu1 %v6194_v13 }
0x18bb   :  { %v6193_v33 = vpop.xlane.xlu0 %6192 }
0x18bc   :  { %v6197_v52 = vmul.f32 %v6193_v33, %v7201_v12 }
0x18be   :  { %v8104_v15 = vsub.f32 %v8092_v7, %v6197_v52 }
0x18c0   :  { %v6201_v23 = vmul.f32 %v8104_v15, %v8104_v15 }
0x18c2   :  { %v6203_v58 = vsel %vm112_vm0, %v6201_v23, 0.0 }
0x18c3   :  { %v6196_v16 = vpop.xlane.xlu1 %6195  ;;  %6204 = vadd.xlane.f32.xlu2 %v6203_v58 }
0x18c4   :  { %v6198_v50 = vmul.f32 %v6196_v16, %v7201_v12  ;;  %v6279_v12 = vld [vmem:[%s8239_s4 + $0x58] sm:$0xff] }
0x18c5   :  { %v6299_v40 = vand.u32 4294901760, %v6279_v12 }
0x18c6   :  { %v8111_v19 = vsub.f32 %v8098_v4, %v6198_v50 }
0x18c7   :  { %v6337_v21 = vsub.f32 %v6279_v12, %v6299_v40  ;;  %6417 = vmatpush.msrb.mxu1 %v6299_v40  ;;  %6300 = vmatpush.msrb.mxu2 %v6299_v40 }
0x18c8   :  { %v6202_v54 = vmul.f32 %v8111_v19, %v8111_v19 }
0x18c9   :  { %v6338_v0 = vand.u32 4294901760, %v6337_v21  ;;  %6383 = vmatpush.msrb.mxu0 %v6337_v21  ;;  %6419 = vmatpush.msrb.mxu1 %v6301_v46 }
0x18ca   :  { %v6206_v48 = vsel %vm112_vm0, %v6202_v54, 0.0  ;;  %6302 = vmatpush.msrb.mxu2 %v6301_v46 }
0x18cb   :  { %6207 = vadd.xlane.f32.xlu0 %v6206_v48  ;;  %v6339_v56 = vsub.f32 %v6337_v21, %v6338_v0  ;;  %6386 = vmatpush.msrb.mxu0 %v6343_v44 }
0x18cc   :  { %6421 = vmatpush.msrb.mxu1 %v6303_v63  ;;  %6304 = vmatpush.msrb.mxu2 %v6303_v63 }
0x18cd   :  { %v6340_v60 = vand.u32 4294901760, %v6339_v56  ;;  %6389 = vmatpush.msrb.mxu0 %v6349_v57 }
0x18ce   :  { %6423 = vmatpush.msrb.mxu1 %v6305_v24  ;;  %6306 = vmatpush.msrb.mxu2 %v6305_v24 }
0x18cf   :  { %6341 = vmatpush.msrb.mxu3 %v6340_v60  ;;  %6392 = vmatpush.msrb.mxu0 %v6355_v11 }
0x18d0   :  { %6452 = vmatpush.msra.mxu2 %v6338_v0 }
0x18d1   :  { %6347 = vmatpush.msrb.mxu3 %v6346_v62 }
0x18d2   :  { %6456 = vmatpush.msra.mxu2 %v6344_v53 }
0x18d3   :  { %6353 = vmatpush.msrb.mxu3 %v6352_v22 }
0x18d4   :  { %6460 = vmatpush.msra.mxu2 %v6350_v31 }
0x18d5   :  { %6359 = vmatpush.msrb.mxu3 %v6358_v5 }
0x18d6   :  { %6464 = vmatpush.msra.mxu2 %v6356_v8 }
0x18d7   :  { %6487 = vmatpush.msra.mxu3 %v6299_v40 }
0x18d9   :  { %6489 = vmatpush.msra.mxu3 %v6301_v46 }
0x18db   :  { %6271 = vrot.lane.b32.xlu2 %v8119_v18, %s7111_s6  ;;  %6491 = vmatpush.msra.mxu3 %v6303_v63 }
0x18dd   :  { %6493 = vmatpush.msra.mxu3 %v6305_v24 }
0x1936   :  { %v6205_v2 = vpop.xlane.xlu2 %6204 }
0x1937   :  { %v6209_v51 = vmul.f32 %v6205_v2, %v7215_v29 }
0x1939   :  { %6931 = vrsqrt.f32 %v6209_v51  ;;  %vm6218_vm15 = vcmp.eq.f32.partialorder %v6209_v51, inf  ;;  %v6221_v30 = vand.u32 2147483648, %v6209_v51  ;;  %vm6220_vm1 = vcmp.eq.f32.partialorder %v6209_v51, 0.0 }
0x193e   :  { %v6208_v9 = vpop.xlane.xlu0 %6207  ;;  %v6272_v56 = vpop.permute.xlu2 %6271 }
0x193f   :  { %v6932_v42 = vpop.eup %6931  ;;  %v6210_v49 = vmul.f32 %v6208_v9, %v7215_v29 }
0x1940   :  { %v6212_v6 = vmul.f32 %v6932_v42, %v6209_v51 }
0x1941   :  { %6933 = vrsqrt.f32 %v6210_v49  ;;  %vm6230_vm13 = vcmp.eq.f32.partialorder %v6210_v49, inf  ;;  %v6233_v20 = vand.u32 2147483648, %v6210_v49  ;;  %vm6232_vm14 = vcmp.eq.f32.partialorder %v6210_v49, 0.0 }
0x1942   :  { %v6213_v26 = vmul.f32 %v6932_v42, %v6212_v6 }
0x1944   :  { %v6214_v29 = vmul.f32 0.5, %v6213_v26 }
0x1946   :  { %v6215_v55 = vsub.f32 1.5, %v6214_v29 }
0x1947   :  { %v6934_v1 = vpop.eup %6933 }
0x1948   :  { %v6216_v3 = vmul.f32 %v6932_v42, %v6215_v55  ;;  %v6224_v32 = vmul.f32 %v6934_v1, %v6210_v49  ;;  %v6512_v55 = vld [vmem:[%s8240_s5 + $0x38] sm:$0xff] }
0x1949   :  { %v8151_v22 = vand.u32 4294901760, %v6512_v55 }
0x194a   :  { %v6217_v17 = vmul.f32 %v6216_v3, %v6209_v51  ;;  %v6225_v47 = vmul.f32 %v6934_v1, %v6224_v32  ;;  %v8159_v3 = vand.u32 4294901760, %v6511_v27 }
0x194b   :  { %6533 = vmatpush.msra.mxu0 %v8151_v22 }
0x194c   :  { %v6226_v41 = vmul.f32 0.5, %v6225_v47  ;;  %v6219_v34 = vsel %vm6218_vm15, %v6209_v51, %v6217_v17  ;;  %v8168_v5 = vsub.f32 %v6511_v27, %v8159_v3  ;;  %v6509_v47 = vld [vmem:[%s8240_s5 + $0x20] sm:$0xff] }
0x194d   :  { %v6222_v43 = vsel %vm6220_vm1, %v6221_v30, %v6219_v34  ;;  %6535 = vmatpush.msra.mxu0 %v8159_v3 }
0x194e   :  { %v6227_v10 = vsub.f32 1.5, %v6226_v41  ;;  %v6235_v35 = vadd.f32 1e-06, %v6222_v43  ;;  %v6581_v41 = vand.u32 4294901760, %v8168_v5  ;;  %v8186_v43 = vand.u32 4294901760, %v6509_v47 }
0x1950   :  { %v6228_v37 = vmul.f32 %v6934_v1, %v6227_v10  ;;  %6935 = vrcp.f32 %v6235_v35  ;;  %v6248_v58 = vand.u32 2147483648, %v6235_v35  ;;  %v6246_v50 = vand.u32 2147483647, %v6235_v35  ;;  %v6508_v10 = vld [vmem:[%s8240_s5 + $0x18] sm:$0xff] }
0x1951   :  { %vm6242_vm3 = vweird.f32 %v6235_v35  ;;  %v8157_v1 = vsub.f32 %v6512_v55, %v8151_v22 }
0x1952   :  { %v6229_v36 = vmul.f32 %v6228_v37, %v6210_v49  ;;  %v6249_v12 = vor.u32 1.1754944e-38, %v6248_v58  ;;  %vm6247_vm5 = vcmp.eq.f32.partialorder %v6246_v50, 8.507059e+37  ;;  %v6582_v37 = vsub.f32 %v8168_v5, %v6581_v41 }
0x1953   :  { %v6575_v32 = vand.u32 4294901760, %v8157_v1 }
0x1954   :  { %v6231_v25 = vsel %vm6230_vm13, %v6210_v49, %v6229_v36 }
0x1955   :  { %v6234_v45 = vsel %vm6232_vm14, %v6233_v20, %v6231_v25  ;;  %v6576_v30 = vsub.f32 %v8157_v1, %v6575_v32  ;;  %v6592_v20 = vsub.f32 %v6509_v47, %v8186_v43  ;;  %v8198_v25 = vand.u32 4294901760, %v6508_v10 }
0x1956   :  { %v6936_v13 = vpop.eup %6935  ;;  %v6236_v33 = vadd.f32 1e-06, %v6234_v45  ;;  %v6507_v45 = vld [vmem:[%s8240_s5 + $0x10] sm:$0xff] }
0x1957   :  { %v6238_v52 = vmul.f32 %v6936_v13, %v6235_v35  ;;  %vm6243_vm2 = vweird.f32 %v6936_v13  ;;  %v6577_v35 = vand.u32 4294901760, %v6576_v30  ;;  %v6598_v58 = vsub.f32 %v6508_v10, %v8198_v25 }
0x1958   :  { %6937 = vrcp.f32 %v6236_v33  ;;  %vm6244_vm4 = vmor %vm6242_vm3, %vm6243_vm2  ;;  %v6262_v60 = vand.u32 2147483648, %v6236_v33  ;;  %v6260_v14 = vand.u32 2147483647, %v6236_v33  ;;  %vm6256_vm7 = vweird.f32 %v6236_v33 }
0x1959   :  { %v6239_v23 = vsub.f32 1.0, %v6238_v52  ;;  %6578 = vmatpush.msra.mxu1 %v6577_v35  ;;  %v6593_v52 = vand.u32 4294901760, %v6592_v20 }
0x195a   :  { %v6263_v63 = vor.u32 1.1754944e-38, %v6262_v60  ;;  %vm6261_vm9 = vcmp.eq.f32.partialorder %v6260_v14, 8.507059e+37 }
0x195b   :  { %v6240_v16 = vmul.f32 %v6936_v13, %v6239_v23  ;;  %v6542_v23 = vand.u32 4294901760, %v6507_v45 }
0x195d   :  { %v6241_v54 = vadd.f32 %v6936_v13, %v6240_v16  ;;  %v6506_v16 = vld [vmem:[%s8240_s5 + $0x8] sm:$0xff] }
0x195e   :  { %v6938_v48 = vpop.eup %6937 }
0x195f   :  { %v6245_v40 = vsel %vm6244_vm4, %v6936_v13, %v6241_v54  ;;  %v6252_v21 = vmul.f32 %v6938_v48, %v6236_v33  ;;  %vm6257_vm6 = vweird.f32 %v6938_v48  ;;  %v6583_v13 = vand.u32 4294901760, %v6582_v37 }
0x1960   :  { %v6250_v2 = vsel %vm6247_vm5, %v6249_v12, %v6245_v40  ;;  %vm6258_vm8 = vmor %vm6256_vm7, %vm6257_vm6  ;;  %v6594_v54 = vsub.f32 %v6592_v20, %v6593_v52  ;;  %v6544_v12 = vand.u32 4294901760, %v6506_v16  ;;  %v6599_v40 = vand.u32 4294901760, %v6598_v58 }
0x1961   :  { %v6265_v51 = vmul.f32 %v6250_v2, %v8104_v15  ;;  %v6253_v0 = vsub.f32 1.0, %v6252_v21  ;;  %6584 = vmatpush.msra.mxu1 %v6583_v13  ;;  %v6505_v21 = vld [vmem:[%s8240_s5] sm:$0xff] }
0x1962   :  { %v6595_v2 = vand.u32 4294901760, %v6594_v54  ;;  %v6600_v60 = vsub.f32 %v6598_v58, %v6599_v40 }
0x1963   :  { %v6268_v28 = vmul.f32 %v8119_v18, %v6265_v51  ;;  %v6254_v46 = vmul.f32 %v6938_v48, %v6253_v0  ;;  %v6610_v0 = vsub.f32 %v6506_v16, %v6544_v12 }
0x1965   :  { %v6255_v9 = vadd.f32 %v6938_v48, %v6254_v46  ;;  %v6274_v44 = vadd.f32 %v6272_v56, %v6268_v28  ;;  %v6611_v46 = vand.u32 4294901760, %v6610_v0 }
0x1967   :  { %v6259_v42 = vsel %vm6258_vm8, %v6938_v48, %v6255_v9  ;;  %v6282_v49 = vsel %vm112_vm0, %v6274_v44, 0  ;;  %v6604_v48 = vsub.f32 %v6507_v45, %v6542_v23  ;;  %v6601_v9 = vand.u32 4294901760, %v6600_v60 }
0x1968   :  { %v6264_v59 = vsel %vm6261_vm9, %v6263_v63, %v6259_v42  ;;  %v6307_v6 = vand.u32 4294901760, %v6282_v49  ;;  %v6612_v63 = vsub.f32 %v6610_v0, %v6611_v46 }
0x1969   :  { %v6266_v15 = vmul.f32 %v6264_v59, %v8111_v19  ;;  %v6605_v51 = vand.u32 4294901760, %v6604_v48 }
0x196a   :  { %v6308_v53 = vsub.f32 %v6282_v49, %v6307_v6  ;;  %6361 = vmatmul.f32.vlgmr.msrb.gmra.mxu3 %v6307_v6  ;;  %v6613_v49 = vand.u32 4294901760, %v6612_v63 }
0x196b   :  { %v6269_v57 = vmul.f32 %v8119_v18, %v6266_v15  ;;  %v8144_v18 = vperm.slane %v8116_v38, 2  ;;  %6682 = vmatpush.msrb.mxu3 %v8151_v22  ;;  %v6510_v38 = vld [vmem:[%s8240_s5 + $0x28] sm:$0xff]  ;;  %v6606_v28 = vsub.f32 %v6604_v48, %v6605_v51  ;;  %s7124_s5 = smov [#allocation11]  }
0x196c   :  { %v6309_v24 = vand.u32 4294901760, %v6308_v53  ;;  %6395 = vmatmul.f32.vlgmr.msrb.gmra.mxu0 %v6308_v53  ;;  %v8171_v17 = vand.u32 4294901760, %v6510_v38  ;;  %s6800_s8 = sshll.u32 %s7124_s5, 4  ;;  %s6801_s8 = int_to_ptr.vmem [resolvable:$true] %s6800_s8 }
0x196d   :  { %v6275_v26 = vadd.f32 %v6272_v56, %v6269_v57  ;;  %6514 = vrot.lane.b32.xlu1 %v8144_v18, %s7113_s11  ;;  %6684 = vmatpush.msrb.mxu3 %v8159_v3  ;;  %v6546_v56 = vand.u32 4294901760, %v6505_v21  ;;  %v6607_v44 = vand.u32 4294901760, %v6606_v28 }
0x196e   :  { %v6310_v61 = vsub.f32 %v6308_v53, %v6309_v24  ;;  %6427 = vmatmul.f32.vlgmr.msrb.gmra.mxu1 %v6309_v24  ;;  %v8183_v34 = vsub.f32 %v6510_v38, %v8171_v17  ;;  %6537 = vmatpush.msra.mxu0 %v8171_v17 }
0x196f   :  { %v6285_v31 = vsel %vm112_vm0, %v6275_v26, 0  ;;  %6686 = vmatpush.msrb.mxu3 %v8171_v17  ;;  %v6616_v14 = vsub.f32 %v6505_v21, %v6546_v56 }
0x1970   :  { %v6311_v11 = vand.u32 4294901760, %v6310_v61  ;;  %v6315_v29 = vand.u32 4294901760, %v6285_v31  ;;  %v6587_v36 = vand.u32 4294901760, %v8183_v34  ;;  %6539 = vmatpush.msra.mxu0 %v8186_v43 }
0x1971   :  { %6688 = vmatpush.msrb.mxu3 %v8186_v43  ;;  %v6617_v42 = vand.u32 4294901760, %v6616_v14 }
0x1972   :  { %v6316_v62 = vsub.f32 %v6285_v31, %v6315_v29  ;;  %6312 = vmatmul.f32.vlgmr.msrb.gmra.mxu2 %v6311_v11  ;;  %6365 = vmatmul.f32.gmra.mxu3 %v6315_v29  ;;  %v6588_v33 = vsub.f32 %v8183_v34, %v6587_v36 }
0x1973   :  { %6640 = vmatpush.msrb.mxu2 %v8157_v1  ;;  %6690 = vmatpush.msrb.mxu3 %v8198_v25  ;;  %v6618_v59 = vsub.f32 %v6616_v14, %v6617_v42 }
0x1974   :  { %6400 = vmatmul.f32.gmra.mxu0 %v6316_v62  ;;  %v6317_v39 = vand.u32 4294901760, %v6316_v62  ;;  %v6589_v50 = vand.u32 4294901760, %v6588_v33 }
0x1975   :  { %6643 = vmatpush.msrb.mxu2 %v8168_v5  ;;  %6541 = vmatpush.msra.mxu0 %v8198_v25 }
0x1976   :  { %6433 = vmatmul.f32.gmra.mxu1 %v6317_v39  ;;  %v6318_v19 = vsub.f32 %v6316_v62, %v6317_v39  ;;  %6692 = vmatpush.msrb.mxu3 %v6542_v23 }
0x1977   :  { %6646 = vmatpush.msrb.mxu2 %v8183_v34  ;;  %6590 = vmatpush.msra.mxu1 %v6589_v50 }
0x1978   :  { %v6319_v8 = vand.u32 4294901760, %v6318_v19  ;;  %6543 = vmatpush.msra.mxu0 %v6542_v23  ;;  %6694 = vmatpush.msrb.mxu3 %v6544_v12 }
0x1979   :  { %6649 = vmatpush.msrb.mxu2 %v6592_v20  ;;  %6596 = vmatpush.msra.mxu1 %v6595_v2 }
0x197a   :  { %6320 = vmatmul.f32.gmra.mxu2 %v6319_v8  ;;  %6495 = vmatmul.f32.vlgmr.msra.gmra.mxu3 %v6307_v6 }
0x197b   :  { %6652 = vmatpush.msrb.mxu2 %v6598_v58  ;;  %6545 = vmatpush.msra.mxu0 %v6544_v12 }
0x197c   :  { %6696 = vmatpush.msrb.mxu3 %v6546_v56  ;;  %6602 = vmatpush.msra.mxu1 %v6601_v9 }
0x197d   :  { %6655 = vmatpush.msrb.mxu2 %v6604_v48  ;;  %6547 = vmatpush.msra.mxu0 %v6546_v56 }
0x197e   :  { %6608 = vmatpush.msra.mxu1 %v6607_v44 }
0x197f   :  { %6658 = vmatpush.msrb.mxu2 %v6610_v0  ;;  %6721 = vmatpush.msrb.mxu0 %v6575_v32 }
0x1980   :  { %6614 = vmatpush.msra.mxu1 %v6613_v49 }
0x1981   :  { %6661 = vmatpush.msrb.mxu2 %v6616_v14  ;;  %6725 = vmatpush.msrb.mxu0 %v6581_v41 }
0x1982   :  { %6466 = vmatmul.f32.vlgmr.msra.gmra.mxu2 %v6307_v6  ;;  %6499 = vmatmul.f32.gmra.mxu3 %v6315_v29  ;;  %v6619_v6 = vand.u32 4294901760, %v6618_v59 }
0x1983   :  { %6729 = vmatpush.msrb.mxu0 %v6587_v36 }
0x1984   :  { %6620 = vmatpush.msra.mxu1 %v6619_v6 }
0x1985   :  { %6733 = vmatpush.msrb.mxu0 %v6593_v52 }
0x1986   :  { %6768 = vmatpush.msrb.mxu1 %v8151_v22 }
0x1987   :  { %6737 = vmatpush.msrb.mxu0 %v6599_v40 }
0x1988   :  { %6770 = vmatpush.msrb.mxu1 %v8159_v3 }
0x1989   :  { %6741 = vmatpush.msrb.mxu0 %v6605_v51 }
0x198a   :  { %6470 = vmatmul.f32.gmra.mxu2 %v6315_v29  ;;  %6772 = vmatpush.msrb.mxu1 %v8171_v17 }
0x198b   :  { %6745 = vmatpush.msrb.mxu0 %v6611_v46 }
0x198c   :  { %6774 = vmatpush.msrb.mxu1 %v8186_v43 }
0x198d   :  { %6749 = vmatpush.msrb.mxu0 %v6617_v42 }
0x198e   :  { %6776 = vmatpush.msrb.mxu1 %v8198_v25 }
0x1990   :  { %6778 = vmatpush.msrb.mxu1 %v6542_v23 }
0x1992   :  { %6780 = vmatpush.msrb.mxu1 %v6544_v12 }
0x1994   :  { %6782 = vmatpush.msrb.mxu1 %v6546_v56 }
0x19df   :  { %v6515_v58 = vpop.permute.xlu1 %6514 }
0x19e9   :  { %v6396_v61 = vpop.f32.mrf.mxu0 }
0x19eb   :  { %v6428_v62 = vpop.f32.mrf.mxu1 }
0x19ed   :  { %v6362_v15 = vpop.f32.mrf.mxu3 }
0x19f1   :  { %v6401_v27 = vpop.f32.mrf.mxu0 }
0x19f3   :  { %v6434_v32 = vpop.f32.mrf.mxu1 }
0x19f5   :  { %v6313_v53 = vpop.f32.mrf.mxu2  ;;  %v6366_v24 = vpop.f32.mrf.mxu3 }
0x19f6   :  { %v6314_v57 = vadd.f32 %v6313_v53, %v8144_v18 }
0x19f8   :  { %v6363_v26 = vadd.f32 %v6362_v15, %v6314_v57 }
0x19fa   :  { %v6397_v29 = vadd.f32 %v6396_v61, %v6363_v26 }
0x19fc   :  { %v6429_v19 = vadd.f32 %v6428_v62, %v6397_v29 }
0x19fd   :  { %v6321_v31 = vpop.f32.mrf.mxu2  ;;  %v6496_v8 = vpop.f32.mrf.mxu3 }
0x19fe   :  { %v6322_v11 = vadd.f32 %v6321_v31, %v8144_v18 }
0x1a00   :  { %v6367_v39 = vadd.f32 %v6366_v24, %v6322_v11 }
0x1a02   :  { %v6402_v3 = vadd.f32 %v6401_v27, %v6367_v39 }
0x1a04   :  { %v6435_v17 = vadd.f32 %v6434_v32, %v6402_v3 }
0x1a05   :  { %v6467_v55 = vpop.f32.mrf.mxu2  ;;  %v6500_v34 = vpop.f32.mrf.mxu3 }
0x1a06   :  { %v6468_v22 = vadd.f32 %v6467_v55, %v6429_v19 }
0x1a08   :  { %v6497_v1 = vadd.f32 %v6496_v8, %v6468_v22 }
0x1a0a   :  { %v6503_v38 = vmax.f32 %v6497_v1, 0.0 }
0x1a0c   :  { %v6519_v5 = vsel %vm6517_vm10, %v6503_v38, 0 }
0x1a0d   :  { %v6548_v47 = vand.u32 4294901760, %v6519_v5  ;;  %v6471_v30 = vpop.f32.mrf.mxu2 }
0x1a0e   :  { %v6472_v41 = vadd.f32 %v6471_v30, %v6435_v17 }
0x1a0f   :  { %v6549_v18 = vsub.f32 %v6519_v5, %v6548_v47  ;;  %6622 = vmatmul.f32.vlgmr.msra.gmra.mxu1 %v6548_v47 }
0x1a10   :  { %v6501_v43 = vadd.f32 %v6500_v34, %v6472_v41 }
0x1a11   :  { %v6550_v10 = vand.u32 4294901760, %v6549_v18  ;;  %6664 = vmatmul.f32.vlgmr.msrb.gmra.mxu2 %v6549_v18 }
0x1a12   :  { %v6504_v35 = vmax.f32 %v6501_v43, 0.0 }
0x1a13   :  { %v6551_v37 = vsub.f32 %v6549_v18, %v6550_v10  ;;  %6700 = vmatmul.f32.vlgmr.msrb.gmra.mxu3 %v6550_v10 }
0x1a14   :  { %v6522_v36 = vsel %vm6517_vm10, %v6504_v35, 0 }
0x1a15   :  { %v6552_v20 = vand.u32 4294901760, %v6551_v37  ;;  %v6556_v25 = vand.u32 4294901760, %v6522_v36 }
0x1a17   :  { %6553 = vmatmul.f32.vlgmr.msra.gmra.mxu0 %v6552_v20  ;;  %6626 = vmatmul.f32.gmra.mxu1 %v6556_v25  ;;  %v6557_v45 = vsub.f32 %v6522_v36, %v6556_v25 }
0x1a19   :  { %6669 = vmatmul.f32.gmra.mxu2 %v6557_v45  ;;  %v6558_v13 = vand.u32 4294901760, %v6557_v45 }
0x1a1b   :  { %6706 = vmatmul.f32.gmra.mxu3 %v6558_v13  ;;  %v6559_v33 = vsub.f32 %v6557_v45, %v6558_v13 }
0x1a1d   :  { %v6560_v52 = vand.u32 4294901760, %v6559_v33 }
0x1a1f   :  { %6561 = vmatmul.f32.gmra.mxu0 %v6560_v52  ;;  %6784 = vmatmul.f32.vlgmr.msrb.gmra.mxu1 %v6548_v47 }
0x1a27   :  { %6751 = vmatmul.f32.vlgmr.msrb.gmra.mxu0 %v6548_v47  ;;  %6788 = vmatmul.f32.gmra.mxu1 %v6556_v25 }
0x1a2f   :  { %6755 = vmatmul.f32.gmra.mxu0 %v6556_v25 }
0x1a8c   :  { %v6623_v23 = vpop.f32.mrf.mxu1 }
0x1a94   :  { %v6554_v16 = vpop.f32.mrf.mxu0  ;;  %v6627_v54 = vpop.f32.mrf.mxu1 }
0x1a95   :  { %v6555_v50 = vadd.f32 %v6554_v16, %v6515_v58  ;;  %v6665_v12 = vpop.f32.mrf.mxu2 }
0x1a96   :  { %v6701_v51 = vpop.f32.mrf.mxu3 }
0x1a97   :  { %v6624_v48 = vadd.f32 %v6623_v23, %v6555_v50 }
0x1a99   :  { %v6666_v21 = vadd.f32 %v6665_v12, %v6624_v48 }
0x1a9b   :  { %v6702_v0 = vadd.f32 %v6701_v51, %v6666_v21 }
0x1a9c   :  { %v6562_v40 = vpop.f32.mrf.mxu0  ;;  %v6785_v60 = vpop.f32.mrf.mxu1 }
0x1a9d   :  { %v6563_v2 = vadd.f32 %v6562_v40, %v6515_v58  ;;  %v6670_v14 = vpop.f32.mrf.mxu2 }
0x1a9e   :  { %v6707_v42 = vpop.f32.mrf.mxu3 }
0x1a9f   :  { %v6628_v56 = vadd.f32 %v6627_v54, %v6563_v2 }
0x1aa1   :  { %v6671_v9 = vadd.f32 %v6670_v14, %v6628_v56 }
0x1aa3   :  { %v6708_v49 = vadd.f32 %v6707_v42, %v6671_v9 }
0x1aa4   :  { %v6752_v28 = vpop.f32.mrf.mxu0  ;;  %v6789_v15 = vpop.f32.mrf.mxu1 }
0x1aa5   :  { %v6753_v46 = vadd.f32 %v6752_v28, %v6702_v0 }
0x1aa7   :  { %v6786_v44 = vadd.f32 %v6785_v60, %v6753_v46 }
0x1aa9   :  { %v6792_v63 = vadd.f32 %v6786_v44, %v8092_v7 }
0x1aab   :  { %6794 = vst.msk [vmem:[#allocation11] sm:$0xff] %vm112_vm0, %v6792_v63 }
0x1aac   :  { %v6756_v59 = vpop.f32.mrf.mxu0 }
0x1aad   :  { %v6757_v6 = vadd.f32 %v6756_v59, %v6708_v49 }
0x1aaf   :  { %v6790_v53 = vadd.f32 %v6789_v15, %v6757_v6 }
0x1ab1   :  { %v6793_v57 = vadd.f32 %v6790_v53, %v8098_v4 }
0x1ab3   :  { %6795 = vst.msk [vmem:[#allocation11 + $0x8] sm:$0xff] %vm112_vm0, %v6793_v57 }
0x1ab4   :  { %6808 = dma.vmem_to_hbm [thread:$0]  %s6801_s8, 256, %s6803_s14, [#allocation4], %s7104_s9, %s7104_s9, %s7105_s10  }
0x1ab5   :  { %7101 = dma.done.wait [#allocation4], 256  }
0x1ab6   :  { %7102 = vsyncadd [#allocation4], 4294967040 }
0x1ab7   :  { %6813 = vsyncpa [#allocation3], 1 }
0x1ab8   :  { %6814 = vsyncpa [#allocation6], 1 }
0x1ab9   :  { %6815 = vsyncpa [#allocation9], 1 }
0x1aba   :  { %6816 = vsyncpa [#allocation4], 1 }

</bundles_post_ra>
